<compile_context>
chip_gen: v6e
topology: v6e:2x2x1
jax: 0.10.0
libtpu: 0.0.40
codegen_flags: <defaults>
</compile_context>

<pallas_src>
import functools
import math

import jax
import jax.numpy as jnp
from jax.experimental import pallas as pl
from jax.experimental.pallas import tpu as pltpu


def _round_up(x, m):
    return ((x + m - 1) // m) * m


def _time_lstm_kernel(xu_ref, t_ref, w_ref, wd_ref,
                      out_o_ref, out_h_ref, out_c_ref,
                      h_scratch, c_scratch,
                      *, seq_len, needs_mask):
    # xu_ref : (T, TB, 4*Hp) f32   -- precomputed x @ U_all, gate-aligned & padded
    # t_ref  : (T, TB, 1)    f32   -- timestamps
    # w_ref  : (Hp, 4*Hp)    bf16  -- recurrent weights, gate-aligned & padded
    # wd_ref : (Hp, Hp)      bf16  -- time-gate weights, padded
    T = xu_ref.shape[0]
    Hp = wd_ref.shape[0]

    # (Re-)initialize the recurrent state at the start of each batch tile's sequence.
    @pl.when(pl.program_id(1) == 0)
    def _():
        h_scratch[...] = jnp.zeros_like(h_scratch)
        c_scratch[...] = jnp.zeros_like(c_scratch)

    # Resident weights: load once per grid step, outside the unrolled time loop.
    w = w_ref[...]
    wd = wd_ref[...]
    seq_base = pl.program_id(1) * T

    h = h_scratch[...]
    c = c_scratch[...]

    # Static unroll over the T timesteps of this block (indices are Python ints
    # -> purely static VMEM indexing; no dynamic-slice lowering needed).
    for s in range(T):
        # Time-gate adjustment of the cell state.
        c_s1 = jnp.tanh(jnp.dot(c.astype(wd.dtype), wd,
                                preferred_element_type=jnp.float32))
        t_s = t_ref[s]                                   # (TB, 1), lane-broadcast
        c_adj = (c - c_s1) + c_s1 * t_s

        # Recurrent gate matmul; x @ U_all was hoisted out of the kernel.
        gates = jnp.dot(h.astype(w.dtype), w,
                        preferred_element_type=jnp.float32) + xu_ref[s]
        # NOTE: the reference TimeLSTM applies sigmoid to ALL four chunks
        # (including the candidate cell) -- keep it that way.
        g = jax.nn.sigmoid(gates)
        f = g[:, 0 * Hp:1 * Hp]                          # 128-lane aligned views
        i = g[:, 1 * Hp:2 * Hp]
        o = g[:, 2 * Hp:3 * Hp]
        c_tmp = g[:, 3 * Hp:4 * Hp]

        c_new = f * c_adj + i * c_tmp
        h_new = o * jnp.tanh(c_new)

        # Per-step output gate (lane-dense (TB, Hp) store).
        out_o_ref[s] = o.astype(out_o_ref.dtype)

        if needs_mask:
            # Steps beyond the true sequence length (seq padded up to a multiple
            # of T) must not advance the recurrent state.
            valid = (seq_base + s) < seq_len
            h_new = jnp.where(valid, h_new, h)
            c_new = jnp.where(valid, c_new, c)

        h, c = h_new, c_new

    h_scratch[...] = h
    c_scratch[...] = c

    # Only the last sequence block writes the final state.
    @pl.when(pl.program_id(1) == pl.num_programs(1) - 1)
    def _():
        out_h_ref[...] = h.astype(out_h_ref.dtype)
        out_c_ref[...] = c.astype(out_c_ref.dtype)


def time_lstm_forward(inputs, timestamps, W_all, U_all, W_d,
                      *, block_t=8, batch_block=None,
                      matmul_dtype=jnp.bfloat16, reverse=False):
    """inputs: (B, seq, E), timestamps: (B, seq).

    Returns (outputs (B, seq, H), (h, c)) matching PyTorch TimeLSTM.forward
    with hidden_states=None.
    """
    # TODO(synk): optional initial hidden_states are not plumbed into the kernel
    # (zeros assumed, matching the module's default path).
    B, seq, E = inputs.shape
    H = W_d.shape[0]
    assert W_all.shape == (H, 4 * H) and U_all.shape == (E, 4 * H)

    f32 = jnp.float32
    Hp = _round_up(H, 128)          # lane-aligned hidden size (gate slices & stores)
    Bp = _round_up(B, 8)            # sublane-aligned batch
    T = max(1, min(block_t, seq))   # timesteps per grid step
    seq_p = _round_up(seq, T)
    if batch_block is None:
        # Lower this (multiple of 8 dividing Bp) to shard batch tiles across
        # v7x TensorCores / megacore when the batch is large.
        batch_block = Bp
    assert batch_block % 8 == 0 and Bp % batch_block == 0

    # ---- gate-aligned, padded weights -------------------------------------
    def pad_gate_cols(wmat):        # (R, 4H) -> (R, 4Hp); gate k in cols [k*Hp, k*Hp+H)
        out = jnp.zeros((wmat.shape[0], 4 * Hp), f32)
        for k in range(4):
            out = out.at[:, k * Hp:k * Hp + H].set(
                wmat[:, k * H:(k + 1) * H].astype(f32))
        return out

    W_pad = jnp.zeros((Hp, 4 * Hp), f32).at[:H, :].set(pad_gate_cols(W_all))
    U_pad = pad_gate_cols(U_all)                                    # (E, 4Hp)
    Wd_pad = jnp.zeros((Hp, Hp), f32).at[:H, :H].set(W_d.astype(f32))

    # ---- time-major, batch/seq-padded inputs -------------------------------
    x_tm = jnp.zeros((seq_p, Bp, E), f32)
    x_tm = x_tm.at[:seq, :B, :].set(jnp.transpose(inputs, (1, 0, 2)).astype(f32))
    t_tm = jnp.zeros((seq_p, Bp, 1), f32)
    t_tm = t_tm.at[:seq, :B, 0].set(jnp.transpose(timestamps, (1, 0)).astype(f32))

    # ---- hoisted input projection: one big parallel MXU matmul -------------
    xu = jnp.einsum('sbe,ef->sbf',
                    x_tm.astype(matmul_dtype), U_pad.astype(matmul_dtype),
                    preferred_element_type=f32)                     # (seq_p, Bp, 4Hp)

    w_k = W_pad.astype(matmul_dtype)
    wd_k = Wd_pad.astype(matmul_dtype)

    n_batch_tiles = Bp // batch_block
    n_seq_blocks = seq_p // T

    kernel = functools.partial(_time_lstm_kernel,
                               seq_len=seq, needs_mask=(seq_p != seq))

    grid_spec = pltpu.PrefetchScalarGridSpec(
        num_scalar_prefetch=0,
        grid=(n_batch_tiles, n_seq_blocks),
        in_specs=[
            pl.BlockSpec((T, batch_block, 4 * Hp), lambda b, s: (s, b, 0)),  # XU
            pl.BlockSpec((T, batch_block, 1), lambda b, s: (s, b, 0)),       # timestamps
            pl.BlockSpec((Hp, 4 * Hp), lambda b, s: (0, 0)),                 # W_all (resident)
            pl.BlockSpec((Hp, Hp), lambda b, s: (0, 0)),                     # W_d   (resident)
        ],
        out_specs=[
            pl.BlockSpec((T, batch_block, Hp), lambda b, s: (s, b, 0)),      # per-step o
            pl.BlockSpec((batch_block, Hp), lambda b, s: (b, 0)),            # final h
            pl.BlockSpec((batch_block, Hp), lambda b, s: (b, 0)),            # final c
        ],
        scratch_shapes=[
            pltpu.VMEM((batch_block, Hp), f32),   # h carry
            pltpu.VMEM((batch_block, Hp), f32),   # c carry
        ],
    )

    out_o, h_last, c_last = pl.pallas_call(
        kernel,
        out_shape=(
            jax.ShapeDtypeStruct((seq_p, Bp, Hp), f32),
            jax.ShapeDtypeStruct((Bp, Hp), f32),
            jax.ShapeDtypeStruct((Bp, Hp), f32),
        ),
        grid_spec=grid_spec,
        compiler_params=pltpu.CompilerParams(
            # batch tiles are independent (megacore / v7x dual-TC); seq is serial.
            dimension_semantics=("parallel", "arbitrary"),
            # Above the 32 MiB scoped default, below physical VMEM on all gens
            # (incl. v7x 64 MiB).  Re-derive if H is scaled up a lot.
            vmem_limit_bytes=48 * 1024 * 1024,
        ),
    )(xu, t_tm, w_k, wd_k)

    outputs = jnp.transpose(out_o[:seq, :B, :H], (1, 0, 2))   # (B, seq, H)
    if reverse:  # PyTorch reverse=True only reverses the stacked outputs list.
        outputs = outputs[:, ::-1]
    return outputs, (h_last[:B, :H], c_last[:B, :H])


def time_lstm_reference(inputs, timestamps, W_all, U_all, W_d):
    """Pure-JAX f32 reference mirroring the PyTorch loop exactly (validation)."""
    B, seq, E = inputs.shape
    H = W_d.shape[0]
    h = jnp.zeros((B, H), jnp.float32)
    c = jnp.zeros((B, H), jnp.float32)
    outs = []
    Wf, Wi, Wo, Wc = jnp.split(W_all, 4, axis=1)
    Uf, Ui, Uo, Uc = jnp.split(U_all, 4, axis=1)
    for s in range(seq):
        c_s1 = jnp.tanh(c @ W_d)
        c_s2 = c_s1 * timestamps[:, s:s + 1]
        c_adj = (c - c_s1) + c_s2
        x_s = inputs[:, s]
        f = jax.nn.sigmoid(h @ Wf + x_s @ Uf)
        i = jax.nn.sigmoid(h @ Wi + x_s @ Ui)
        o = jax.nn.sigmoid(h @ Wo + x_s @ Uo)
        c_tmp = jax.nn.sigmoid(h @ Wc + x_s @ Uc)
        c = f * c_adj + i * c_tmp
        h = o * jnp.tanh(c)
        outs.append(o)
    return jnp.stack(outs, 1), (h, c)


if __name__ == "__main__":
    B, SEQ, E, H = 4, 12, 16, 32   # SEQ=12 with block_t=8 exercises the tail mask

    key = jax.random.PRNGKey(0)
    k_x, k_t, k_w, k_u, k_d = jax.random.split(key, 5)

    # Parameter init matching the module: uniform(-stdv, stdv), stdv = 1/sqrt(H).
    stdv = 1.0 / math.sqrt(H)
    W_all = jax.random.uniform(k_w, (H, 4 * H), jnp.float32, -stdv, stdv)
    U_all = jax.random.uniform(k_u, (E, 4 * H), jnp.float32, -stdv, stdv)
    W_d = jax.random.uniform(k_d, (H, H), jnp.float32, -stdv, stdv)

    inputs = jax.random.normal(k_x, (B, SEQ, E), jnp.float32)
    timestamps = jax.random.uniform(k_t, (B, SEQ), jnp.float32, 0.0, 2.0)

    ref_out, (ref_h, ref_c) = time_lstm_reference(inputs, timestamps, W_all, U_all, W_d)

    # 1) f32-weight path: checks kernel structure (padding / fused gates / masking).
    out32, (h32, c32) = time_lstm_forward(inputs, timestamps, W_all, U_all, W_d,
                                          block_t=8, matmul_dtype=jnp.float32)
    jax.block_until_ready((out32, h32, c32))
    assert jnp.allclose(out32, ref_out, atol=2e-3, rtol=2e-3), "f32 outputs mismatch"
    assert jnp.allclose(h32, ref_h, atol=2e-3, rtol=2e-3), "f32 h mismatch"
    assert jnp.allclose(c32, ref_c, atol=2e-3, rtol=2e-3), "f32 c mismatch"

    # 2) Default bf16-matmul / f32-accumulate path (performance configuration).
    outbf, (hbf, cbf) = time_lstm_forward(inputs, timestamps, W_all, U_all, W_d,
                                          block_t=8)
    jax.block_until_ready((outbf, hbf, cbf))
    assert jnp.allclose(outbf, ref_out, atol=3e-2, rtol=3e-2), "bf16 outputs mismatch"
    assert jnp.allclose(hbf, ref_h, atol=3e-2, rtol=3e-2), "bf16 h mismatch"
    assert jnp.allclose(cbf, ref_c, atol=3e-2, rtol=3e-2), "bf16 c mismatch"

    print("KERNEL_OK")
</pallas_src>

<mosaic_0001>
module attributes {stable_mosaic.version = 11 : i64} {
  func.func @_time_lstm_kernel(%arg0: i32, %arg1: i32, %arg2: memref<8x8x512xf32, #tpu.memory_space<vmem>>, %arg3: memref<8x8x1xf32, #tpu.memory_space<vmem>>, %arg4: memref<128x512xf32, #tpu.memory_space<vmem>>, %arg5: memref<128x128xf32, #tpu.memory_space<vmem>>, %arg6: memref<8x8x128xf32, #tpu.memory_space<vmem>>, %arg7: memref<8x128xf32, #tpu.memory_space<vmem>>, %arg8: memref<8x128xf32, #tpu.memory_space<vmem>>, %arg9: memref<8x128xf32, #tpu.memory_space<vmem>>, %arg10: memref<8x128xf32, #tpu.memory_space<vmem>>) attributes {dimension_semantics = [#tpu.dimension_semantics<parallel>, #tpu.dimension_semantics<arbitrary>], iteration_bounds = array<i64: 1, 2>, scalar_prefetch = 0 : i64, scratch_operands = 2 : i64, tpu.core_type = #tpu.core_type<tc>, window_params = [{transform_indices = @transform_0, window_bounds = array<i64: 8, 8, 512>}, {transform_indices = @transform_1, window_bounds = array<i64: 8, 8, 1>}, {pipeline_mode = #tpu.pipeline_mode<synchronous>, transform_indices = @transform_2, window_bounds = array<i64: 128, 512>}, {pipeline_mode = #tpu.pipeline_mode<synchronous>, transform_indices = @transform_3, window_bounds = array<i64: 128, 128>}, {transform_indices = @transform_4, window_bounds = array<i64: 8, 8, 128>}, {transform_indices = @transform_5, window_bounds = array<i64: 8, 128>}, {transform_indices = @transform_6, window_bounds = array<i64: 8, 128>}]} {
    %c0_i32 = arith.constant 0 : i32
    %0 = arith.cmpi eq, %arg1, %c0_i32 : i32
    %1 = arith.extui %0 : i1 to i32
    %c0_i32_0 = arith.constant 0 : i32
    %2 = arith.cmpi ne, %1, %c0_i32_0 : i32
    scf.if %2 {
      %cst_110 = arith.constant 0.000000e+00 : f32
      %277 = vector.broadcast %cst_110 : f32 to vector<8x128xf32>
      %c0_111 = arith.constant 0 : index
      %c0_112 = arith.constant 0 : index
      %278 = vector.load %arg9[%c0_111, %c0_112] : memref<8x128xf32, #tpu.memory_space<vmem>>, vector<8x128xf32>
      tpu.vector_store %arg9[%c0_111, %c0_112], %277 {strides = array<i32>} : memref<8x128xf32, #tpu.memory_space<vmem>>, vector<8x128xf32>,
      %cst_113 = arith.constant 0.000000e+00 : f32
      %279 = vector.broadcast %cst_113 : f32 to vector<8x128xf32>
      %c0_114 = arith.constant 0 : index
      %c0_115 = arith.constant 0 : index
      %280 = vector.load %arg10[%c0_114, %c0_115] : memref<8x128xf32, #tpu.memory_space<vmem>>, vector<8x128xf32>
      tpu.vector_store %arg10[%c0_114, %c0_115], %279 {strides = array<i32>} : memref<8x128xf32, #tpu.memory_space<vmem>>, vector<8x128xf32>,
    } else {
    }
    %c0 = arith.constant 0 : index
    %c0_1 = arith.constant 0 : index
    %3 = vector.load %arg4[%c0, %c0_1] : memref<128x512xf32, #tpu.memory_space<vmem>>, vector<128x512xf32>
    %c0_2 = arith.constant 0 : index
    %c0_3 = arith.constant 0 : index
    %4 = vector.load %arg5[%c0_2, %c0_3] : memref<128x128xf32, #tpu.memory_space<vmem>>, vector<128x128xf32>
    %c8_i32 = arith.constant 8 : i32
    %5 = arith.muli %arg1, %c8_i32 : i32
    %c0_4 = arith.constant 0 : index
    %c0_5 = arith.constant 0 : index
    %6 = vector.load %arg9[%c0_4, %c0_5] : memref<8x128xf32, #tpu.memory_space<vmem>>, vector<8x128xf32>
    %c0_6 = arith.constant 0 : index
    %c0_7 = arith.constant 0 : index
    %7 = vector.load %arg10[%c0_6, %c0_7] : memref<8x128xf32, #tpu.memory_space<vmem>>, vector<8x128xf32>
    %cst = arith.constant dense<0.000000e+00> : vector<8x128xf32>
    %8 = tpu.matmul %7, %4, %cst {dimension_numbers = #tpu.dot_dimension_numbers<[1], [0], [0], [1], [0, 0, 1, 1], [], []>} : vector<8x128xf32>, vector<128x128xf32>, vector<8x128xf32> -> vector<8x128xf32>
    %9 = math.tanh %8 : vector<8x128xf32>
    %c0_8 = arith.constant 0 : index
    %c0_9 = arith.constant 0 : index
    %c0_10 = arith.constant 0 : index
    %10 = vector.load %arg3[%c0_8, %c0_9, %c0_10] : memref<8x8x1xf32, #tpu.memory_space<vmem>>, vector<1x8x1xf32>
    %11 = vector.shape_cast %10 : vector<1x8x1xf32> to vector<8x1xf32>
    %12 = arith.subf %7, %9 : vector<8x128xf32>
    %13 = vector.broadcast %11 : vector<8x1xf32> to vector<8x128xf32>
    %14 = arith.mulf %9, %13 : vector<8x128xf32>
    %15 = arith.addf %12, %14 : vector<8x128xf32>
    %cst_11 = arith.constant dense<0.000000e+00> : vector<8x512xf32>
    %16 = tpu.matmul %6, %3, %cst_11 {dimension_numbers = #tpu.dot_dimension_numbers<[1], [0], [0], [1], [0, 0, 1, 1], [], []>} : vector<8x128xf32>, vector<128x512xf32>, vector<8x512xf32> -> vector<8x512xf32>
    %c0_12 = arith.constant 0 : index
    %c0_13 = arith.constant 0 : index
    %c0_14 = arith.constant 0 : index
    %17 = vector.load %arg2[%c0_12, %c0_13, %c0_14] : memref<8x8x512xf32, #tpu.memory_space<vmem>>, vector<1x8x512xf32>
    %18 = vector.shape_cast %17 : vector<1x8x512xf32> to vector<8x512xf32>
    %19 = arith.addf %16, %18 : vector<8x512xf32>
    %20 = arith.negf %19 : vector<8x512xf32>
    %21 = math.exp %20 : vector<8x512xf32>
    %cst_15 = arith.constant 1.000000e+00 : f32
    %22 = vector.broadcast %cst_15 : f32 to vector<8x512xf32>
    %23 = arith.addf %22, %21 : vector<8x512xf32>
    %24 = arith.divf %22, %23 : vector<8x512xf32>
    %25 = vector.extract_strided_slice %24 {offsets = [0, 0], sizes = [8, 128], strides = [1, 1]} : vector<8x512xf32> to vector<8x128xf32>
    %26 = vector.extract_strided_slice %24 {offsets = [0, 128], sizes = [8, 128], strides = [1, 1]} : vector<8x512xf32> to vector<8x128xf32>
    %27 = vector.extract_strided_slice %24 {offsets = [0, 256], sizes = [8, 128], strides = [1, 1]} : vector<8x512xf32> to vector<8x128xf32>
    %28 = vector.extract_strided_slice %24 {offsets = [0, 384], sizes = [8, 128], strides = [1, 1]} : vector<8x512xf32> to vector<8x128xf32>
    %29 = arith.mulf %25, %15 : vector<8x128xf32>
    %30 = arith.mulf %26, %28 : vector<8x128xf32>
    %31 = arith.addf %29, %30 : vector<8x128xf32>
    %32 = math.tanh %31 : vector<8x128xf32>
    %33 = arith.mulf %27, %32 : vector<8x128xf32>
    %c0_16 = arith.constant 0 : index
    %c0_17 = arith.constant 0 : index
    %c0_18 = arith.constant 0 : index
    %34 = vector.load %arg6[%c0_16, %c0_17, %c0_18] : memref<8x8x128xf32, #tpu.memory_space<vmem>>, vector<1x8x128xf32>
    %35 = vector.shape_cast %34 : vector<1x8x128xf32> to vector<8x128xf32>
    %36 = vector.shape_cast %27 : vector<8x128xf32> to vector<1x8x128xf32>
    tpu.vector_store %arg6[%c0_16, %c0_17, %c0_18], %36 {strides = array<i32>} : memref<8x8x128xf32, #tpu.memory_space<vmem>>, vector<1x8x128xf32>,
    %c0_i32_19 = arith.constant 0 : i32
    %37 = arith.addi %5, %c0_i32_19 : i32
    %c12_i32 = arith.constant 12 : i32
    %38 = arith.cmpi slt, %37, %c12_i32 : i32
    %39 = arith.select %38, %33, %6 : vector<8x128xf32>
    %40 = arith.select %38, %31, %7 : vector<8x128xf32>
    %cst_20 = arith.constant dense<0.000000e+00> : vector<8x128xf32>
    %41 = tpu.matmul %40, %4, %cst_20 {dimension_numbers = #tpu.dot_dimension_numbers<[1], [0], [0], [1], [0, 0, 1, 1], [], []>} : vector<8x128xf32>, vector<128x128xf32>, vector<8x128xf32> -> vector<8x128xf32>
    %42 = math.tanh %41 : vector<8x128xf32>
    %c1 = arith.constant 1 : index
    %c0_21 = arith.constant 0 : index
    %c0_22 = arith.constant 0 : index
    %43 = vector.load %arg3[%c1, %c0_21, %c0_22] : memref<8x8x1xf32, #tpu.memory_space<vmem>>, vector<1x8x1xf32>
    %44 = vector.shape_cast %43 : vector<1x8x1xf32> to vector<8x1xf32>
    %45 = arith.subf %40, %42 : vector<8x128xf32>
    %46 = vector.broadcast %44 : vector<8x1xf32> to vector<8x128xf32>
    %47 = arith.mulf %42, %46 : vector<8x128xf32>
    %48 = arith.addf %45, %47 : vector<8x128xf32>
    %cst_23 = arith.constant dense<0.000000e+00> : vector<8x512xf32>
    %49 = tpu.matmul %39, %3, %cst_23 {dimension_numbers = #tpu.dot_dimension_numbers<[1], [0], [0], [1], [0, 0, 1, 1], [], []>} : vector<8x128xf32>, vector<128x512xf32>, vector<8x512xf32> -> vector<8x512xf32>
    %c1_24 = arith.constant 1 : index
    %c0_25 = arith.constant 0 : index
    %c0_26 = arith.constant 0 : index
    %50 = vector.load %arg2[%c1_24, %c0_25, %c0_26] : memref<8x8x512xf32, #tpu.memory_space<vmem>>, vector<1x8x512xf32>
    %51 = vector.shape_cast %50 : vector<1x8x512xf32> to vector<8x512xf32>
    %52 = arith.addf %49, %51 : vector<8x512xf32>
    %53 = arith.negf %52 : vector<8x512xf32>
    %54 = math.exp %53 : vector<8x512xf32>
    %cst_27 = arith.constant 1.000000e+00 : f32
    %55 = vector.broadcast %cst_27 : f32 to vector<8x512xf32>
    %56 = arith.addf %55, %54 : vector<8x512xf32>
    %57 = arith.divf %55, %56 : vector<8x512xf32>
    %58 = vector.extract_strided_slice %57 {offsets = [0, 0], sizes = [8, 128], strides = [1, 1]} : vector<8x512xf32> to vector<8x128xf32>
    %59 = vector.extract_strided_slice %57 {offsets = [0, 128], sizes = [8, 128], strides = [1, 1]} : vector<8x512xf32> to vector<8x128xf32>
    %60 = vector.extract_strided_slice %57 {offsets = [0, 256], sizes = [8, 128], strides = [1, 1]} : vector<8x512xf32> to vector<8x128xf32>
    %61 = vector.extract_strided_slice %57 {offsets = [0, 384], sizes = [8, 128], strides = [1, 1]} : vector<8x512xf32> to vector<8x128xf32>
    %62 = arith.mulf %58, %48 : vector<8x128xf32>
    %63 = arith.mulf %59, %61 : vector<8x128xf32>
    %64 = arith.addf %62, %63 : vector<8x128xf32>
    %65 = math.tanh %64 : vector<8x128xf32>
    %66 = arith.mulf %60, %65 : vector<8x128xf32>
    %c1_28 = arith.constant 1 : index
    %c0_29 = arith.constant 0 : index
    %c0_30 = arith.constant 0 : index
    %67 = vector.load %arg6[%c1_28, %c0_29, %c0_30] : memref<8x8x128xf32, #tpu.memory_space<vmem>>, vector<1x8x128xf32>
    %68 = vector.shape_cast %67 : vector<1x8x128xf32> to vector<8x128xf32>
    %69 = vector.shape_cast %60 : vector<8x128xf32> to vector<1x8x128xf32>
    tpu.vector_store %arg6[%c1_28, %c0_29, %c0_30], %69 {strides = array<i32>} : memref<8x8x128xf32, #tpu.memory_space<vmem>>, vector<1x8x128xf32>,
    %c1_i32 = arith.constant 1 : i32
    %70 = arith.addi %5, %c1_i32 : i32
    %c12_i32_31 = arith.constant 12 : i32
    %71 = arith.cmpi slt, %70, %c12_i32_31 : i32
    %72 = arith.select %71, %66, %39 : vector<8x128xf32>
    %73 = arith.select %71, %64, %40 : vector<8x128xf32>
    %cst_32 = arith.constant dense<0.000000e+00> : vector<8x128xf32>
    %74 = tpu.matmul %73, %4, %cst_32 {dimension_numbers = #tpu.dot_dimension_numbers<[1], [0], [0], [1], [0, 0, 1, 1], [], []>} : vector<8x128xf32>, vector<128x128xf32>, vector<8x128xf32> -> vector<8x128xf32>
    %75 = math.tanh %74 : vector<8x128xf32>
    %c2 = arith.constant 2 : index
    %c0_33 = arith.constant 0 : index
    %c0_34 = arith.constant 0 : index
    %76 = vector.load %arg3[%c2, %c0_33, %c0_34] : memref<8x8x1xf32, #tpu.memory_space<vmem>>, vector<1x8x1xf32>
    %77 = vector.shape_cast %76 : vector<1x8x1xf32> to vector<8x1xf32>
    %78 = arith.subf %73, %75 : vector<8x128xf32>
    %79 = vector.broadcast %77 : vector<8x1xf32> to vector<8x128xf32>
    %80 = arith.mulf %75, %79 : vector<8x128xf32>
    %81 = arith.addf %78, %80 : vector<8x128xf32>
    %cst_35 = arith.constant dense<0.000000e+00> : vector<8x512xf32>
    %82 = tpu.matmul %72, %3, %cst_35 {dimension_numbers = #tpu.dot_dimension_numbers<[1], [0], [0], [1], [0, 0, 1, 1], [], []>} : vector<8x128xf32>, vector<128x512xf32>, vector<8x512xf32> -> vector<8x512xf32>
    %c2_36 = arith.constant 2 : index
    %c0_37 = arith.constant 0 : index
    %c0_38 = arith.constant 0 : index
    %83 = vector.load %arg2[%c2_36, %c0_37, %c0_38] : memref<8x8x512xf32, #tpu.memory_space<vmem>>, vector<1x8x512xf32>
    %84 = vector.shape_cast %83 : vector<1x8x512xf32> to vector<8x512xf32>
    %85 = arith.addf %82, %84 : vector<8x512xf32>
    %86 = arith.negf %85 : vector<8x512xf32>
    %87 = math.exp %86 : vector<8x512xf32>
    %cst_39 = arith.constant 1.000000e+00 : f32
    %88 = vector.broadcast %cst_39 : f32 to vector<8x512xf32>
    %89 = arith.addf %88, %87 : vector<8x512xf32>
    %90 = arith.divf %88, %89 : vector<8x512xf32>
    %91 = vector.extract_strided_slice %90 {offsets = [0, 0], sizes = [8, 128], strides = [1, 1]} : vector<8x512xf32> to vector<8x128xf32>
    %92 = vector.extract_strided_slice %90 {offsets = [0, 128], sizes = [8, 128], strides = [1, 1]} : vector<8x512xf32> to vector<8x128xf32>
    %93 = vector.extract_strided_slice %90 {offsets = [0, 256], sizes = [8, 128], strides = [1, 1]} : vector<8x512xf32> to vector<8x128xf32>
    %94 = vector.extract_strided_slice %90 {offsets = [0, 384], sizes = [8, 128], strides = [1, 1]} : vector<8x512xf32> to vector<8x128xf32>
    %95 = arith.mulf %91, %81 : vector<8x128xf32>
    %96 = arith.mulf %92, %94 : vector<8x128xf32>
    %97 = arith.addf %95, %96 : vector<8x128xf32>
    %98 = math.tanh %97 : vector<8x128xf32>
    %99 = arith.mulf %93, %98 : vector<8x128xf32>
    %c2_40 = arith.constant 2 : index
    %c0_41 = arith.constant 0 : index
    %c0_42 = arith.constant 0 : index
    %100 = vector.load %arg6[%c2_40, %c0_41, %c0_42] : memref<8x8x128xf32, #tpu.memory_space<vmem>>, vector<1x8x128xf32>
    %101 = vector.shape_cast %100 : vector<1x8x128xf32> to vector<8x128xf32>
    %102 = vector.shape_cast %93 : vector<8x128xf32> to vector<1x8x128xf32>
    tpu.vector_store %arg6[%c2_40, %c0_41, %c0_42], %102 {strides = array<i32>} : memref<8x8x128xf32, #tpu.memory_space<vmem>>, vector<1x8x128xf32>,
    %c2_i32 = arith.constant 2 : i32
    %103 = arith.addi %5, %c2_i32 : i32
    %c12_i32_43 = arith.constant 12 : i32
    %104 = arith.cmpi slt, %103, %c12_i32_43 : i32
    %105 = arith.select %104, %99, %72 : vector<8x128xf32>
    %106 = arith.select %104, %97, %73 : vector<8x128xf32>
    %cst_44 = arith.constant dense<0.000000e+00> : vector<8x128xf32>
    %107 = tpu.matmul %106, %4, %cst_44 {dimension_numbers = #tpu.dot_dimension_numbers<[1], [0], [0], [1], [0, 0, 1, 1], [], []>} : vector<8x128xf32>, vector<128x128xf32>, vector<8x128xf32> -> vector<8x128xf32>
    %108 = math.tanh %107 : vector<8x128xf32>
    %c3 = arith.constant 3 : index
    %c0_45 = arith.constant 0 : index
    %c0_46 = arith.constant 0 : index
    %109 = vector.load %arg3[%c3, %c0_45, %c0_46] : memref<8x8x1xf32, #tpu.memory_space<vmem>>, vector<1x8x1xf32>
    %110 = vector.shape_cast %109 : vector<1x8x1xf32> to vector<8x1xf32>
    %111 = arith.subf %106, %108 : vector<8x128xf32>
    %112 = vector.broadcast %110 : vector<8x1xf32> to vector<8x128xf32>
    %113 = arith.mulf %108, %112 : vector<8x128xf32>
    %114 = arith.addf %111, %113 : vector<8x128xf32>
    %cst_47 = arith.constant dense<0.000000e+00> : vector<8x512xf32>
    %115 = tpu.matmul %105, %3, %cst_47 {dimension_numbers = #tpu.dot_dimension_numbers<[1], [0], [0], [1], [0, 0, 1, 1], [], []>} : vector<8x128xf32>, vector<128x512xf32>, vector<8x512xf32> -> vector<8x512xf32>
    %c3_48 = arith.constant 3 : index
    %c0_49 = arith.constant 0 : index
    %c0_50 = arith.constant 0 : index
    %116 = vector.load %arg2[%c3_48, %c0_49, %c0_50] : memref<8x8x512xf32, #tpu.memory_space<vmem>>, vector<1x8x512xf32>
    %117 = vector.shape_cast %116 : vector<1x8x512xf32> to vector<8x512xf32>
    %118 = arith.addf %115, %117 : vector<8x512xf32>
    %119 = arith.negf %118 : vector<8x512xf32>
    %120 = math.exp %119 : vector<8x512xf32>
    %cst_51 = arith.constant 1.000000e+00 : f32
    %121 = vector.broadcast %cst_51 : f32 to vector<8x512xf32>
    %122 = arith.addf %121, %120 : vector<8x512xf32>
    %123 = arith.divf %121, %122 : vector<8x512xf32>
    %124 = vector.extract_strided_slice %123 {offsets = [0, 0], sizes = [8, 128], strides = [1, 1]} : vector<8x512xf32> to vector<8x128xf32>
    %125 = vector.extract_strided_slice %123 {offsets = [0, 128], sizes = [8, 128], strides = [1, 1]} : vector<8x512xf32> to vector<8x128xf32>
    %126 = vector.extract_strided_slice %123 {offsets = [0, 256], sizes = [8, 128], strides = [1, 1]} : vector<8x512xf32> to vector<8x128xf32>
    %127 = vector.extract_strided_slice %123 {offsets = [0, 384], sizes = [8, 128], strides = [1, 1]} : vector<8x512xf32> to vector<8x128xf32>
    %128 = arith.mulf %124, %114 : vector<8x128xf32>
    %129 = arith.mulf %125, %127 : vector<8x128xf32>
    %130 = arith.addf %128, %129 : vector<8x128xf32>
    %131 = math.tanh %130 : vector<8x128xf32>
    %132 = arith.mulf %126, %131 : vector<8x128xf32>
    %c3_52 = arith.constant 3 : index
    %c0_53 = arith.constant 0 : index
    %c0_54 = arith.constant 0 : index
    %133 = vector.load %arg6[%c3_52, %c0_53, %c0_54] : memref<8x8x128xf32, #tpu.memory_space<vmem>>, vector<1x8x128xf32>
    %134 = vector.shape_cast %133 : vector<1x8x128xf32> to vector<8x128xf32>
    %135 = vector.shape_cast %126 : vector<8x128xf32> to vector<1x8x128xf32>
    tpu.vector_store %arg6[%c3_52, %c0_53, %c0_54], %135 {strides = array<i32>} : memref<8x8x128xf32, #tpu.memory_space<vmem>>, vector<1x8x128xf32>,
    %c3_i32 = arith.constant 3 : i32
    %136 = arith.addi %5, %c3_i32 : i32
    %c12_i32_55 = arith.constant 12 : i32
    %137 = arith.cmpi slt, %136, %c12_i32_55 : i32
    %138 = arith.select %137, %132, %105 : vector<8x128xf32>
    %139 = arith.select %137, %130, %106 : vector<8x128xf32>
    %cst_56 = arith.constant dense<0.000000e+00> : vector<8x128xf32>
    %140 = tpu.matmul %139, %4, %cst_56 {dimension_numbers = #tpu.dot_dimension_numbers<[1], [0], [0], [1], [0, 0, 1, 1], [], []>} : vector<8x128xf32>, vector<128x128xf32>, vector<8x128xf32> -> vector<8x128xf32>
    %141 = math.tanh %140 : vector<8x128xf32>
    %c4 = arith.constant 4 : index
    %c0_57 = arith.constant 0 : index
    %c0_58 = arith.constant 0 : index
    %142 = vector.load %arg3[%c4, %c0_57, %c0_58] : memref<8x8x1xf32, #tpu.memory_space<vmem>>, vector<1x8x1xf32>
    %143 = vector.shape_cast %142 : vector<1x8x1xf32> to vector<8x1xf32>
    %144 = arith.subf %139, %141 : vector<8x128xf32>
    %145 = vector.broadcast %143 : vector<8x1xf32> to vector<8x128xf32>
    %146 = arith.mulf %141, %145 : vector<8x128xf32>
    %147 = arith.addf %144, %146 : vector<8x128xf32>
    %cst_59 = arith.constant dense<0.000000e+00> : vector<8x512xf32>
    %148 = tpu.matmul %138, %3, %cst_59 {dimension_numbers = #tpu.dot_dimension_numbers<[1], [0], [0], [1], [0, 0, 1, 1], [], []>} : vector<8x128xf32>, vector<128x512xf32>, vector<8x512xf32> -> vector<8x512xf32>
    %c4_60 = arith.constant 4 : index
    %c0_61 = arith.constant 0 : index
    %c0_62 = arith.constant 0 : index
    %149 = vector.load %arg2[%c4_60, %c0_61, %c0_62] : memref<8x8x512xf32, #tpu.memory_space<vmem>>, vector<1x8x512xf32>
    %150 = vector.shape_cast %149 : vector<1x8x512xf32> to vector<8x512xf32>
    %151 = arith.addf %148, %150 : vector<8x512xf32>
    %152 = arith.negf %151 : vector<8x512xf32>
    %153 = math.exp %152 : vector<8x512xf32>
    %cst_63 = arith.constant 1.000000e+00 : f32
    %154 = vector.broadcast %cst_63 : f32 to vector<8x512xf32>
    %155 = arith.addf %154, %153 : vector<8x512xf32>
    %156 = arith.divf %154, %155 : vector<8x512xf32>
    %157 = vector.extract_strided_slice %156 {offsets = [0, 0], sizes = [8, 128], strides = [1, 1]} : vector<8x512xf32> to vector<8x128xf32>
    %158 = vector.extract_strided_slice %156 {offsets = [0, 128], sizes = [8, 128], strides = [1, 1]} : vector<8x512xf32> to vector<8x128xf32>
    %159 = vector.extract_strided_slice %156 {offsets = [0, 256], sizes = [8, 128], strides = [1, 1]} : vector<8x512xf32> to vector<8x128xf32>
    %160 = vector.extract_strided_slice %156 {offsets = [0, 384], sizes = [8, 128], strides = [1, 1]} : vector<8x512xf32> to vector<8x128xf32>
    %161 = arith.mulf %157, %147 : vector<8x128xf32>
    %162 = arith.mulf %158, %160 : vector<8x128xf32>
    %163 = arith.addf %161, %162 : vector<8x128xf32>
    %164 = math.tanh %163 : vector<8x128xf32>
    %165 = arith.mulf %159, %164 : vector<8x128xf32>
    %c4_64 = arith.constant 4 : index
    %c0_65 = arith.constant 0 : index
    %c0_66 = arith.constant 0 : index
    %166 = vector.load %arg6[%c4_64, %c0_65, %c0_66] : memref<8x8x128xf32, #tpu.memory_space<vmem>>, vector<1x8x128xf32>
    %167 = vector.shape_cast %166 : vector<1x8x128xf32> to vector<8x128xf32>
    %168 = vector.shape_cast %159 : vector<8x128xf32> to vector<1x8x128xf32>
    tpu.vector_store %arg6[%c4_64, %c0_65, %c0_66], %168 {strides = array<i32>} : memref<8x8x128xf32, #tpu.memory_space<vmem>>, vector<1x8x128xf32>,
    %c4_i32 = arith.constant 4 : i32
    %169 = arith.addi %5, %c4_i32 : i32
    %c12_i32_67 = arith.constant 12 : i32
    %170 = arith.cmpi slt, %169, %c12_i32_67 : i32
    %171 = arith.select %170, %165, %138 : vector<8x128xf32>
    %172 = arith.select %170, %163, %139 : vector<8x128xf32>
    %cst_68 = arith.constant dense<0.000000e+00> : vector<8x128xf32>
    %173 = tpu.matmul %172, %4, %cst_68 {dimension_numbers = #tpu.dot_dimension_numbers<[1], [0], [0], [1], [0, 0, 1, 1], [], []>} : vector<8x128xf32>, vector<128x128xf32>, vector<8x128xf32> -> vector<8x128xf32>
    %174 = math.tanh %173 : vector<8x128xf32>
    %c5 = arith.constant 5 : index
    %c0_69 = arith.constant 0 : index
    %c0_70 = arith.constant 0 : index
    %175 = vector.load %arg3[%c5, %c0_69, %c0_70] : memref<8x8x1xf32, #tpu.memory_space<vmem>>, vector<1x8x1xf32>
    %176 = vector.shape_cast %175 : vector<1x8x1xf32> to vector<8x1xf32>
    %177 = arith.subf %172, %174 : vector<8x128xf32>
    %178 = vector.broadcast %176 : vector<8x1xf32> to vector<8x128xf32>
    %179 = arith.mulf %174, %178 : vector<8x128xf32>
    %180 = arith.addf %177, %179 : vector<8x128xf32>
    %cst_71 = arith.constant dense<0.000000e+00> : vector<8x512xf32>
    %181 = tpu.matmul %171, %3, %cst_71 {dimension_numbers = #tpu.dot_dimension_numbers<[1], [0], [0], [1], [0, 0, 1, 1], [], []>} : vector<8x128xf32>, vector<128x512xf32>, vector<8x512xf32> -> vector<8x512xf32>
    %c5_72 = arith.constant 5 : index
    %c0_73 = arith.constant 0 : index
    %c0_74 = arith.constant 0 : index
    %182 = vector.load %arg2[%c5_72, %c0_73, %c0_74] : memref<8x8x512xf32, #tpu.memory_space<vmem>>, vector<1x8x512xf32>
    %183 = vector.shape_cast %182 : vector<1x8x512xf32> to vector<8x512xf32>
    %184 = arith.addf %181, %183 : vector<8x512xf32>
    %185 = arith.negf %184 : vector<8x512xf32>
    %186 = math.exp %185 : vector<8x512xf32>
    %cst_75 = arith.constant 1.000000e+00 : f32
    %187 = vector.broadcast %cst_75 : f32 to vector<8x512xf32>
    %188 = arith.addf %187, %186 : vector<8x512xf32>
    %189 = arith.divf %187, %188 : vector<8x512xf32>
    %190 = vector.extract_strided_slice %189 {offsets = [0, 0], sizes = [8, 128], strides = [1, 1]} : vector<8x512xf32> to vector<8x128xf32>
    %191 = vector.extract_strided_slice %189 {offsets = [0, 128], sizes = [8, 128], strides = [1, 1]} : vector<8x512xf32> to vector<8x128xf32>
    %192 = vector.extract_strided_slice %189 {offsets = [0, 256], sizes = [8, 128], strides = [1, 1]} : vector<8x512xf32> to vector<8x128xf32>
    %193 = vector.extract_strided_slice %189 {offsets = [0, 384], sizes = [8, 128], strides = [1, 1]} : vector<8x512xf32> to vector<8x128xf32>
    %194 = arith.mulf %190, %180 : vector<8x128xf32>
    %195 = arith.mulf %191, %193 : vector<8x128xf32>
    %196 = arith.addf %194, %195 : vector<8x128xf32>
    %197 = math.tanh %196 : vector<8x128xf32>
    %198 = arith.mulf %192, %197 : vector<8x128xf32>
    %c5_76 = arith.constant 5 : index
    %c0_77 = arith.constant 0 : index
    %c0_78 = arith.constant 0 : index
    %199 = vector.load %arg6[%c5_76, %c0_77, %c0_78] : memref<8x8x128xf32, #tpu.memory_space<vmem>>, vector<1x8x128xf32>
    %200 = vector.shape_cast %199 : vector<1x8x128xf32> to vector<8x128xf32>
    %201 = vector.shape_cast %192 : vector<8x128xf32> to vector<1x8x128xf32>
    tpu.vector_store %arg6[%c5_76, %c0_77, %c0_78], %201 {strides = array<i32>} : memref<8x8x128xf32, #tpu.memory_space<vmem>>, vector<1x8x128xf32>,
    %c5_i32 = arith.constant 5 : i32
    %202 = arith.addi %5, %c5_i32 : i32
    %c12_i32_79 = arith.constant 12 : i32
    %203 = arith.cmpi slt, %202, %c12_i32_79 : i32
    %204 = arith.select %203, %198, %171 : vector<8x128xf32>
    %205 = arith.select %203, %196, %172 : vector<8x128xf32>
    %cst_80 = arith.constant dense<0.000000e+00> : vector<8x128xf32>
    %206 = tpu.matmul %205, %4, %cst_80 {dimension_numbers = #tpu.dot_dimension_numbers<[1], [0], [0], [1], [0, 0, 1, 1], [], []>} : vector<8x128xf32>, vector<128x128xf32>, vector<8x128xf32> -> vector<8x128xf32>
    %207 = math.tanh %206 : vector<8x128xf32>
    %c6 = arith.constant 6 : index
    %c0_81 = arith.constant 0 : index
    %c0_82 = arith.constant 0 : index
    %208 = vector.load %arg3[%c6, %c0_81, %c0_82] : memref<8x8x1xf32, #tpu.memory_space<vmem>>, vector<1x8x1xf32>
    %209 = vector.shape_cast %208 : vector<1x8x1xf32> to vector<8x1xf32>
    %210 = arith.subf %205, %207 : vector<8x128xf32>
    %211 = vector.broadcast %209 : vector<8x1xf32> to vector<8x128xf32>
    %212 = arith.mulf %207, %211 : vector<8x128xf32>
    %213 = arith.addf %210, %212 : vector<8x128xf32>
    %cst_83 = arith.constant dense<0.000000e+00> : vector<8x512xf32>
    %214 = tpu.matmul %204, %3, %cst_83 {dimension_numbers = #tpu.dot_dimension_numbers<[1], [0], [0], [1], [0, 0, 1, 1], [], []>} : vector<8x128xf32>, vector<128x512xf32>, vector<8x512xf32> -> vector<8x512xf32>
    %c6_84 = arith.constant 6 : index
    %c0_85 = arith.constant 0 : index
    %c0_86 = arith.constant 0 : index
    %215 = vector.load %arg2[%c6_84, %c0_85, %c0_86] : memref<8x8x512xf32, #tpu.memory_space<vmem>>, vector<1x8x512xf32>
    %216 = vector.shape_cast %215 : vector<1x8x512xf32> to vector<8x512xf32>
    %217 = arith.addf %214, %216 : vector<8x512xf32>
    %218 = arith.negf %217 : vector<8x512xf32>
    %219 = math.exp %218 : vector<8x512xf32>
    %cst_87 = arith.constant 1.000000e+00 : f32
    %220 = vector.broadcast %cst_87 : f32 to vector<8x512xf32>
    %221 = arith.addf %220, %219 : vector<8x512xf32>
    %222 = arith.divf %220, %221 : vector<8x512xf32>
    %223 = vector.extract_strided_slice %222 {offsets = [0, 0], sizes = [8, 128], strides = [1, 1]} : vector<8x512xf32> to vector<8x128xf32>
    %224 = vector.extract_strided_slice %222 {offsets = [0, 128], sizes = [8, 128], strides = [1, 1]} : vector<8x512xf32> to vector<8x128xf32>
    %225 = vector.extract_strided_slice %222 {offsets = [0, 256], sizes = [8, 128], strides = [1, 1]} : vector<8x512xf32> to vector<8x128xf32>
    %226 = vector.extract_strided_slice %222 {offsets = [0, 384], sizes = [8, 128], strides = [1, 1]} : vector<8x512xf32> to vector<8x128xf32>
    %227 = arith.mulf %223, %213 : vector<8x128xf32>
    %228 = arith.mulf %224, %226 : vector<8x128xf32>
    %229 = arith.addf %227, %228 : vector<8x128xf32>
    %230 = math.tanh %229 : vector<8x128xf32>
    %231 = arith.mulf %225, %230 : vector<8x128xf32>
    %c6_88 = arith.constant 6 : index
    %c0_89 = arith.constant 0 : index
    %c0_90 = arith.constant 0 : index
    %232 = vector.load %arg6[%c6_88, %c0_89, %c0_90] : memref<8x8x128xf32, #tpu.memory_space<vmem>>, vector<1x8x128xf32>
    %233 = vector.shape_cast %232 : vector<1x8x128xf32> to vector<8x128xf32>
    %234 = vector.shape_cast %225 : vector<8x128xf32> to vector<1x8x128xf32>
    tpu.vector_store %arg6[%c6_88, %c0_89, %c0_90], %234 {strides = array<i32>} : memref<8x8x128xf32, #tpu.memory_space<vmem>>, vector<1x8x128xf32>,
    %c6_i32 = arith.constant 6 : i32
    %235 = arith.addi %5, %c6_i32 : i32
    %c12_i32_91 = arith.constant 12 : i32
    %236 = arith.cmpi slt, %235, %c12_i32_91 : i32
    %237 = arith.select %236, %231, %204 : vector<8x128xf32>
    %238 = arith.select %236, %229, %205 : vector<8x128xf32>
    %cst_92 = arith.constant dense<0.000000e+00> : vector<8x128xf32>
    %239 = tpu.matmul %238, %4, %cst_92 {dimension_numbers = #tpu.dot_dimension_numbers<[1], [0], [0], [1], [0, 0, 1, 1], [], []>} : vector<8x128xf32>, vector<128x128xf32>, vector<8x128xf32> -> vector<8x128xf32>
    %240 = math.tanh %239 : vector<8x128xf32>
    %c7 = arith.constant 7 : index
    %c0_93 = arith.constant 0 : index
    %c0_94 = arith.constant 0 : index
    %241 = vector.load %arg3[%c7, %c0_93, %c0_94] : memref<8x8x1xf32, #tpu.memory_space<vmem>>, vector<1x8x1xf32>
    %242 = vector.shape_cast %241 : vector<1x8x1xf32> to vector<8x1xf32>
    %243 = arith.subf %238, %240 : vector<8x128xf32>
    %244 = vector.broadcast %242 : vector<8x1xf32> to vector<8x128xf32>
    %245 = arith.mulf %240, %244 : vector<8x128xf32>
    %246 = arith.addf %243, %245 : vector<8x128xf32>
    %cst_95 = arith.constant dense<0.000000e+00> : vector<8x512xf32>
    %247 = tpu.matmul %237, %3, %cst_95 {dimension_numbers = #tpu.dot_dimension_numbers<[1], [0], [0], [1], [0, 0, 1, 1], [], []>} : vector<8x128xf32>, vector<128x512xf32>, vector<8x512xf32> -> vector<8x512xf32>
    %c7_96 = arith.constant 7 : index
    %c0_97 = arith.constant 0 : index
    %c0_98 = arith.constant 0 : index
    %248 = vector.load %arg2[%c7_96, %c0_97, %c0_98] : memref<8x8x512xf32, #tpu.memory_space<vmem>>, vector<1x8x512xf32>
    %249 = vector.shape_cast %248 : vector<1x8x512xf32> to vector<8x512xf32>
    %250 = arith.addf %247, %249 : vector<8x512xf32>
    %251 = arith.negf %250 : vector<8x512xf32>
    %252 = math.exp %251 : vector<8x512xf32>
    %cst_99 = arith.constant 1.000000e+00 : f32
    %253 = vector.broadcast %cst_99 : f32 to vector<8x512xf32>
    %254 = arith.addf %253, %252 : vector<8x512xf32>
    %255 = arith.divf %253, %254 : vector<8x512xf32>
    %256 = vector.extract_strided_slice %255 {offsets = [0, 0], sizes = [8, 128], strides = [1, 1]} : vector<8x512xf32> to vector<8x128xf32>
    %257 = vector.extract_strided_slice %255 {offsets = [0, 128], sizes = [8, 128], strides = [1, 1]} : vector<8x512xf32> to vector<8x128xf32>
    %258 = vector.extract_strided_slice %255 {offsets = [0, 256], sizes = [8, 128], strides = [1, 1]} : vector<8x512xf32> to vector<8x128xf32>
    %259 = vector.extract_strided_slice %255 {offsets = [0, 384], sizes = [8, 128], strides = [1, 1]} : vector<8x512xf32> to vector<8x128xf32>
    %260 = arith.mulf %256, %246 : vector<8x128xf32>
    %261 = arith.mulf %257, %259 : vector<8x128xf32>
    %262 = arith.addf %260, %261 : vector<8x128xf32>
    %263 = math.tanh %262 : vector<8x128xf32>
    %264 = arith.mulf %258, %263 : vector<8x128xf32>
    %c7_100 = arith.constant 7 : index
    %c0_101 = arith.constant 0 : index
    %c0_102 = arith.constant 0 : index
    %265 = vector.load %arg6[%c7_100, %c0_101, %c0_102] : memref<8x8x128xf32, #tpu.memory_space<vmem>>, vector<1x8x128xf32>
    %266 = vector.shape_cast %265 : vector<1x8x128xf32> to vector<8x128xf32>
    %267 = vector.shape_cast %258 : vector<8x128xf32> to vector<1x8x128xf32>
    tpu.vector_store %arg6[%c7_100, %c0_101, %c0_102], %267 {strides = array<i32>} : memref<8x8x128xf32, #tpu.memory_space<vmem>>, vector<1x8x128xf32>,
    %c7_i32 = arith.constant 7 : i32
    %268 = arith.addi %5, %c7_i32 : i32
    %c12_i32_103 = arith.constant 12 : i32
    %269 = arith.cmpi slt, %268, %c12_i32_103 : i32
    %270 = arith.select %269, %264, %237 : vector<8x128xf32>
    %271 = arith.select %269, %262, %238 : vector<8x128xf32>
    %c0_104 = arith.constant 0 : index
    %c0_105 = arith.constant 0 : index
    %272 = vector.load %arg9[%c0_104, %c0_105] : memref<8x128xf32, #tpu.memory_space<vmem>>, vector<8x128xf32>
    tpu.vector_store %arg9[%c0_104, %c0_105], %270 {strides = array<i32>} : memref<8x128xf32, #tpu.memory_space<vmem>>, vector<8x128xf32>,
    %c0_106 = arith.constant 0 : index
    %c0_107 = arith.constant 0 : index
    %273 = vector.load %arg10[%c0_106, %c0_107] : memref<8x128xf32, #tpu.memory_space<vmem>>, vector<8x128xf32>
    tpu.vector_store %arg10[%c0_106, %c0_107], %271 {strides = array<i32>} : memref<8x128xf32, #tpu.memory_space<vmem>>, vector<8x128xf32>,
    %c1_i32_108 = arith.constant 1 : i32
    %274 = arith.cmpi eq, %arg1, %c1_i32_108 : i32
    %275 = arith.extui %274 : i1 to i32
    %c0_i32_109 = arith.constant 0 : i32
    %276 = arith.cmpi ne, %275, %c0_i32_109 : i32
    scf.if %276 {
      %c0_110 = arith.constant 0 : index
      %c0_111 = arith.constant 0 : index
      %277 = vector.load %arg7[%c0_110, %c0_111] : memref<8x128xf32, #tpu.memory_space<vmem>>, vector<8x128xf32>
      tpu.vector_store %arg7[%c0_110, %c0_111], %270 {strides = array<i32>} : memref<8x128xf32, #tpu.memory_space<vmem>>, vector<8x128xf32>,
      %c0_112 = arith.constant 0 : index
      %c0_113 = arith.constant 0 : index
      %278 = vector.load %arg8[%c0_112, %c0_113] : memref<8x128xf32, #tpu.memory_space<vmem>>, vector<8x128xf32>
      tpu.vector_store %arg8[%c0_112, %c0_113], %271 {strides = array<i32>} : memref<8x128xf32, #tpu.memory_space<vmem>>, vector<8x128xf32>,
    } else {
    }
    return
  }
  func.func @transform_0(%arg0: i32, %arg1: i32) -> (i32, i32, i32) {
    %c0_i32 = arith.constant 0 : i32
    %c0_i32_0 = arith.constant 0 : i32
    return %arg1, %arg0, %c0_i32 : i32, i32, i32
  }
  func.func @transform_1(%arg0: i32, %arg1: i32) -> (i32, i32, i32) {
    %c0_i32 = arith.constant 0 : i32
    %c0_i32_0 = arith.constant 0 : i32
    return %arg1, %arg0, %c0_i32 : i32, i32, i32
  }
  func.func @transform_2(%arg0: i32, %arg1: i32) -> (i32, i32) {
    %c0_i32 = arith.constant 0 : i32
    %c0_i32_0 = arith.constant 0 : i32
    %c0_i32_1 = arith.constant 0 : i32
    return %c0_i32, %c0_i32_0 : i32, i32
  }
  func.func @transform_3(%arg0: i32, %arg1: i32) -> (i32, i32) {
    %c0_i32 = arith.constant 0 : i32
    %c0_i32_0 = arith.constant 0 : i32
    %c0_i32_1 = arith.constant 0 : i32
    return %c0_i32, %c0_i32_0 : i32, i32
  }
  func.func @transform_4(%arg0: i32, %arg1: i32) -> (i32, i32, i32) {
    %c0_i32 = arith.constant 0 : i32
    %c0_i32_0 = arith.constant 0 : i32
    return %arg1, %arg0, %c0_i32 : i32, i32, i32
  }
  func.func @transform_5(%arg0: i32, %arg1: i32) -> (i32, i32) {
    %c0_i32 = arith.constant 0 : i32
    %c0_i32_0 = arith.constant 0 : i32
    return %arg0, %c0_i32 : i32, i32
  }
  func.func @transform_6(%arg0: i32, %arg1: i32) -> (i32, i32) {
    %c0_i32 = arith.constant 0 : i32
    %c0_i32_0 = arith.constant 0 : i32
    return %arg0, %c0_i32 : i32, i32
  }
}

</mosaic_0001>

<bundles_post_ra>
// kernel: tpu_custom_call.1
= control target key start
LH: loop header
LB: loop body
LE: loop exit
PB: predicated region body
PF: predicated region fallthrough
CT: control target
= control target key end

     0   :  { %s5437_s0 = inlined_call_operand.hbm [shape: f32[16,8,512], index: 0, kind: input, shape index: {}]   ;;  %s5438_s1 = inlined_call_operand.vmem [shape: f32[16,8,1], index: 1, kind: input, shape index: {}]   ;;  %s5439_s2 = inlined_call_operand.hbm [shape: f32[128,512], index: 2, kind: input, shape index: {}]   ;;  %s5440_s3 = inlined_call_operand.vmem [shape: f32[128,128], index: 3, kind: input, shape index: {}]   ;;  %s5441_s4 = inlined_call_operand.hbm [shape: f32[16,8,128], index: 4, kind: output, shape index: {0}]   ;;  %s5442_s5 = inlined_call_operand.hbm [shape: f32[8,128], index: 5, kind: output, shape index: {1}]   ;;  %s5443_s6 = inlined_call_operand.hbm [shape: f32[8,128], index: 6, kind: output, shape index: {2}]  }
   0x1   :  { %5590 = sst [smem:[#allocation60_spill]] %s5439_s2 }
   0x2   :  { %12 = vsyncpa [#allocation5], 0 }
   0x3   :  { %14 = vsyncpa [#allocation5 + $0x1], 0 }
   0x4   :  { %15 = vsyncpa [#allocation8], 0 }
   0x5   :  { %16 = vsyncpa [#allocation6], 0 }
   0x6   :  { %18 = vsyncpa [#allocation6 + $0x1], 0 }
   0x7   :  { %19 = vsyncpa [#allocation11], 0  ;;  %s3870_s21 = smov 0   ;;  %s3872_s22 = smov 0  }
   0x8   :  { %s3874_s23 = smov 0   ;;  %s3876_s24 = smov 0  }
   0x9   :  { %s3878_s25 = smov 0   ;;  %s3880_s26 = smov 0  }
   0xa LB: > { %5591 = sst [smem:[#allocation17_spill]] %s3816_s25  ;;  %s2743_s27 = sadd.s32 4294967295, %s3820_s26   ;;  %s3820_s26 = sphi %s3880_s26, %s25_s26   ;;  %s3816_s25 = sphi %s3878_s25, %s5820_s25   ;;  %s3812_s24 = sphi %s3876_s24, %s5819_s24   ;;  %s3808_s23 = sphi %s3874_s23, %s5823_s23   ;;  %s3804_s22 = sphi %s3872_s22, %s5822_s22   ;;  %s3800_s21 = sphi %s3870_s21, %s5821_s21  }
   0xb   : > { %s2744_s28 = sadd.s32 4294967294, %s3820_s26   ;;  %p59_p0 = scmp.ne.s32.totalorder %s3804_s22, %s3800_s21 }
   0xc   : > { %p3904_p1 = scmp.eq.s32.totalorder %s2743_s27, 0  ;;  %p3908_p2 = scmp.eq.s32.totalorder %s2743_s27, 1 }
   0xd   : > { %p161_p3 = scmp.eq.s32.totalorder %s2744_s28, 1  ;;  %p2745_p5 = scmp.ge.s32.totalorder %s3820_s26, 1 }
   0xe   : > { %p3914_p4 = por %p3904_p1, %p59_p0  ;;  %p220_p7 = scmp.lt.s32.totalorder %s3820_s26, 3 }
   0xf   : > { %p3919_p6 = por %p161_p3, %p59_p0  ;;  %s3822_s10 = smov [#allocation7]  }
  0x10   : > { %s5594_s7 = scalar_select %p3914_p4, 1, 0 }
  0x11   : > { %s5595_s8 = scalar_select %p3919_p6, 1, 0 }
  0x12   : > { %p3924_p8 = pnand %p2745_p5, %p220_p7  ;;  %s232_s11 = sshll.u32 %s3822_s10, 4  ;;  %s233_s11 = int_to_ptr.vmem [resolvable:$true] %s232_s11 }
  0x13   : > { %5596 = sst [smem:[#allocation18_spill]] %s5595_s8  ;;  %s34_s13 = sadd.s32 1, %s3816_s25 }
  0x14   : > { %p3279_p9 = pneg %p3924_p8  ;;  %s3641_s14 = scalar_lea.vmem %s233_s11, 8192 }
  0x15   : > { %p3642_p13 = scmp.ne.s32.totalorder %s233_s11, %s3641_s14  ;;  %p3649_p5 = scmp.lt.s32.totalorder %s233_s11, %s233_s11 }
  0x16   : > { %p3933_p11 = pnand %p3279_p9, %p3904_p1  ;;  %p3650_p7 = scmp.lt.s32.totalorder %s3641_s14, %s3641_s14 }
  0x18   : > { %p3632_p12 = pneg %p3933_p11  ;;  %p3651_p6 = por %p3650_p7, %p3649_p5 }
  0x1a   : > { %p3644_p0 = pnand %p3642_p13, %p3632_p12 }
  0x1c   : > { %p3645_p3 = pneg %p3644_p0 }
  0x1e   : > { %p3652_p4 = pnand %p3651_p6, %p3645_p3 }
  0x20   : > { %3655 = shalt.err (!%p3652_p4)
}
  0x21   : > { %s5445_s15 = smov 512   ;;  %s5446_s16 = smov 32  }
  0x22   : > { %s5599_s2 = sld [smem:[#allocation60_spill]]  ;;  %p35_p4 = scmp.ge.s32.totalorder %s34_s13, 2 }
  0x23   : > { %s46_s19 = sadd.s32 1, %s3808_s23  ;;  %p53_p6 = scmp.ne.s32.totalorder %s3808_s23, %s3804_s22 }
  0x24   : > { %p54_p9 = scmp.eq.s32.totalorder %s3820_s26, 0  ;;  %s5825_s13 = smov (%p35_p4, %s34_s13), 0 }
  0x25   : > { %5600 = sst [smem:[#allocation19_spill]] %s5825_s13  ;;  %p3960_p13 = por %p3908_p2, %p53_p6 }
  0x26   : > { %p3954_p12 = por %p54_p9, %p53_p6  ;;  %s41_s28 = ssub.s32 %s3816_s25, %s5825_s13 }
  0x27   : > { %s5602_s27 = scalar_select %p3960_p13, 1, 0 }
  0x28   : > { %3282 = dma.hbm_to_vmem [thread:$0]  (!%p3933_p11), %s5599_s2, 8192, %s233_s11, [#allocation8], %s5445_s15, %s5445_s15, %s5446_s16  }
  0x29   : > { %p3292_p0 = scmp.lt.s32.totalorder %s3820_s26, 2  ;;  %p44_p11 = scmp.eq.s32.totalorder %s41_s28, 0 }
  0x2a   : > { %s249_s10 = sand.u32 1, %s3808_s23   ;;  %s2845_s14 = sshll.u32 %s3816_s25, 12 }
  0x2b   : > { %s2748_s11 = sshll.u32 %s249_s10, 8  ;;  %s262_s15 = scalar_lea.hbm %s5437_s0, %s2845_s14 }
  0x2c   : > { %s3969_s12 = scalar_select %p44_p11, %s3808_s23, %s46_s19  }
  0x2d   : > { %s253_s16 = scalar_lea.vmem [#allocation4], %s2748_s11  ;;  %p3977_p3 = pnand %p3292_p0, %p3954_p12 }
  0x2e   : > { %s263_s2 = sshll.u32 %s253_s16, 4  ;;  %s250_s13 = scalar_lea.sflag [#allocation5], %s249_s10  ;;  %s264_s2 = int_to_ptr.vmem [resolvable:$true] %s263_s2 }
  0x2f   : > { %p3658_p5 = pneg %p3977_p3  ;;  %s3669_s28 = scalar_lea.vmem %s264_s2, 4096 }
  0x30   : > { %p3670_p7 = scmp.ne.s32.totalorder %s264_s2, %s3669_s28  ;;  %s3825_s19 = smov [#allocation4]  }
  0x31   : > { %s3674_s25 = sshll.u32 %s3825_s19, 4  ;;  %s3675_s25 = int_to_ptr.vmem [resolvable:$false] %s3674_s25 }
  0x32   : > { %p3672_p4 = pnand %p3670_p7, %p3658_p5  ;;  %s3676_s14 = scalar_lea.vmem %s3675_s25, 8192 }
  0x33   : > { %p3677_p9 = scmp.lt.s32.totalorder %s264_s2, %s3675_s25  ;;  %p3678_p11 = scmp.lt.s32.totalorder %s3676_s14, %s3669_s28 }
  0x34   : > { %p3673_p6 = pneg %p3672_p4 }
  0x35   : > { %p3679_p10 = por %p3678_p11, %p3677_p9 }
  0x37   : > { %p3680_p13 = pnand %p3679_p10, %p3673_p6 }
  0x39   : > { %3683 = shalt.err (!%p3680_p13)
}
  0x3a   : > { %s5604_s16 = smov 32   ;;  %s5605_s20 = smov 512  }
  0x3b   : > { %3286 = dma.hbm_to_vmem [thread:$0]  (!%p3977_p3), %s262_s15, 4096, %s264_s2, %s250_s13, %s5605_s20, %s5605_s20, %s5604_s16  }
  0x3c   : > { %287 = sbr.rel (%p3924_p8) target bundleno = 2316 (0x90c), region = 36 }
  0x41   : > { %s3991_s10 = sand.u32 1, %s3804_s22   ;;  %p5606_p10 = scmp.ne.s32.totalorder %s5594_s7, 0 }
  0x42   : > { %s2753_s25 = sshll.u32 %s3991_s10, 8  ;;  %s290_s11 = scalar_lea.sflag [#allocation5], %s3991_s10 }
  0x43   : > { %s3995_s17 = scalar_lea.vmem [#allocation4], %s2753_s25 }
  0x44   : > { %3783 = dma.done.wait (%p5606_p10), %s290_s11, 4096  }
  0x45   : > { %3785 = vsyncadd (%p5606_p10), %s290_s11, 4294963200 }
  0x46   : > { %3787 = dma.done.wait (%p3904_p1), [#allocation8], 8192  }
  0x47   : > { %3789 = vsyncadd (%p3904_p1), [#allocation8], 4294959104  ;;  %s2755_s2 = sshll.u32 %s3991_s10, 6  ;;  %s4007_s8 = sshll.u32 %s3812_s24, 3 }
  0x48   : > { %p336_p8 = scmp.lt.s32.totalorder %s4007_s8, 15  ;;  %s4016_s28 = scalar_lea.vmem [#allocation9], %s2755_s2 }
  0x49   : > { %p2758_p12 = scmp.ne.s32.totalorder %s3812_s24, 0 }
  0x4a   : > { %s337_s9 = scalar_select %p336_p8, %s4007_s8, 15 }
  0x4b   : > { %348 = sbr.rel (%p2758_p12) target bundleno = 82 (0x52), region = 48 }
  0x4c   : > { %s2757_s13 = sshll.u32 %s337_s9, 3 }
  0x4d   : > { %s4014_s7 = scalar_lea.vmem %s5438_s1, %s2757_s13 }
  0x50   : > { %v3826_v0 = vmov 0.0  }
  0x51   : > { %349 = vst [vmem:[#allocation2] sm:$0xff] %v3826_v0  ;;  %350 = vst [vmem:[#allocation3] sm:$0xff] %v3826_v0 }
  0x52 PF: > { %v4019_v1 = vld [vmem:[#allocation7 + $0x1e8] sm:$0xff]  ;;  %v4026_v3 = vld [vmem:[#allocation7 + $0x1e0] sm:$0xff]  ;;  %v5519_v4 = vmov 0.0   ;;  %v4048_v9 = vld [vmem:[%s5440_s3 + $0x68] sm:$0xff]  ;;  %vm3828_vm0 = vmmov 0   ;;  %v5451_v58 = vmov 0  }
  0x53   : > { %v4024_v2 = vld [vmem:[%s5440_s3 + $0x78] sm:$0xff]  ;;  %2983 = vmatprep.subr.mxu0 %v5519_v4  ;;  %518 = vmatprep.subr.mxu1 %v4019_v1  ;;  %v4035_v6 = vld [vmem:[%s5440_s3 + $0x70] sm:$0xff]  ;;  %5609 = vst [vmem:[#allocation22_spill] sm:$0xff] %v4048_v9  ;;  %v4061_v12 = vld [vmem:[%s5440_s3 + $0x60] sm:$0xff]  ;;  %p690_p1 = scmp.lt.s32.totalorder %s4007_s8, 12  ;;  %s1221_s15 = sadd.s32 2, %s4007_s8 }
  0x54   : > { %5607 = vst [vmem:[#allocation20_spill] sm:$0xff] %v4024_v2  ;;  %v4030_v5 = vld [vmem:[#allocation7 + $0x1c8] sm:$0xff]  ;;  %5608 = vst [vmem:[#allocation21_spill] sm:$0xff] %v4035_v6  ;;  %v4037_v7 = vld [vmem:[#allocation7 + $0x1c0] sm:$0xff]  ;;  %2984 = vmatpush3.msra.mxu0 %v4024_v2  ;;  %519 = vmatpush1.msra.mxu1 %v4026_v3  ;;  %p1222_p0 = scmp.lt.s32.totalorder %s1221_s15, 12  ;;  %s1487_s11 = sadd.s32 3, %s4007_s8 }
  0x55   : > { %v4041_v8 = vld [vmem:[#allocation7 + $0x1a8] sm:$0xff]  ;;  %2985 = vmatprep.subr.mxu0 %v5519_v4  ;;  %520 = vmatprep.subr.mxu1 %v4030_v5  ;;  %v4050_v10 = vld [vmem:[#allocation7 + $0x1a0] sm:$0xff]  ;;  %5610 = vst [vmem:[#allocation23_spill] sm:$0xff] %v4061_v12  ;;  %v4100_v21 = vld [vmem:[%s5440_s3 + $0x48] sm:$0xff]  ;;  %s691_s9 = scalar_select %p690_p1, 1, 0 }
  0x56   : > { %2986 = vmatpush3.msra.mxu0 %v4035_v6  ;;  %521 = vmatpush1.msra.mxu1 %v4037_v7  ;;  %v4054_v11 = vld [vmem:[#allocation7 + $0x188] sm:$0xff]  ;;  %v4063_v13 = vld [vmem:[#allocation7 + $0x180] sm:$0xff]  ;;  %5613 = vst [vmem:[#allocation26_spill] sm:$0xff] %v4100_v21  ;;  %v4113_v24 = vld [vmem:[%s5440_s3 + $0x40] sm:$0xff]  ;;  %s1223_s18 = scalar_select %p1222_p0, 1, 0 }
  0x57   : > { %2987 = vmatprep.subr.mxu0 %v5519_v4  ;;  %522 = vmatprep.subr.mxu1 %v4041_v8  ;;  %v4067_v14 = vld [vmem:[#allocation7 + $0x168] sm:$0xff]  ;;  %v4076_v16 = vld [vmem:[#allocation7 + $0x160] sm:$0xff]  ;;  %5614 = vst [vmem:[#allocation27_spill] sm:$0xff] %v4113_v24  ;;  %v4152_v33 = vld [vmem:[%s5440_s3 + $0x28] sm:$0xff]  ;;  %p1488_p3 = scmp.lt.s32.totalorder %s1487_s11, 12  ;;  %p2834_p9 = scmp.ne.s32.totalorder %s3812_s24, 1 }
  0x58   : > { %2988 = vmatpush3.msra.mxu0 %v4048_v9  ;;  %523 = vmatpush1.msra.mxu1 %v4050_v10  ;;  %v4074_v15 = vld [vmem:[%s5440_s3 + $0x58] sm:$0xff]  ;;  %v4087_v18 = vld [vmem:[%s5440_s3 + $0x50] sm:$0xff]  ;;  %v4165_v36 = vld [vmem:[%s5440_s3 + $0x20] sm:$0xff] }
  0x59   : > { %2989 = vmatprep.subr.mxu0 %v5519_v4  ;;  %524 = vmatprep.subr.mxu1 %v4054_v11  ;;  %5611 = vst [vmem:[#allocation24_spill] sm:$0xff] %v4074_v15  ;;  %v4080_v17 = vld [vmem:[#allocation7 + $0x148] sm:$0xff]  ;;  %5612 = vst [vmem:[#allocation25_spill] sm:$0xff] %v4087_v18  ;;  %v4089_v19 = vld [vmem:[#allocation7 + $0x140] sm:$0xff]  ;;  %s1489_s2 = scalar_select %p1488_p3, 1, 0 }
  0x5a   : > { %2990 = vmatpush3.msra.mxu0 %v4061_v12  ;;  %525 = vmatpush1.msra.mxu1 %v4063_v13  ;;  %v4093_v20 = vld [vmem:[#allocation7 + $0x128] sm:$0xff]  ;;  %v4102_v22 = vld [vmem:[#allocation7 + $0x120] sm:$0xff]  ;;  %v4204_v45 = vld [vmem:[%s5440_s3 + $0x8] sm:$0xff] }
  0x5b   : > { %2991 = vmatprep.subr.mxu0 %v5519_v4  ;;  %526 = vmatprep.subr.mxu1 %v4067_v14  ;;  %v4106_v23 = vld [vmem:[#allocation7 + $0x108] sm:$0xff]  ;;  %v4115_v25 = vld [vmem:[#allocation7 + $0x100] sm:$0xff]  ;;  %5631 = vst [vmem:[#allocation44_spill] sm:$0xff] %v4204_v45  ;;  %v4217_v48 = vld [vmem:[%s5440_s3] sm:$0xff] }
  0x5c   : > { %2992 = vmatpush3.msra.mxu0 %v4074_v15  ;;  %527 = vmatpush1.msra.mxu1 %v4076_v16  ;;  %v4119_v26 = vld [vmem:[#allocation7 + $0xe8] sm:$0xff]  ;;  %v4128_v28 = vld [vmem:[#allocation7 + $0xe0] sm:$0xff]  ;;  %5634 = vst [vmem:[#allocation47_spill] sm:$0xff] %v4217_v48  ;;  %v4225_v50 = vld [vmem:[#allocation3] sm:$0xff] }
  0x5d   : > { %2993 = vmatprep.subr.mxu0 %v5519_v4  ;;  %528 = vmatprep.subr.mxu1 %v4080_v17  ;;  %5615 = vst [vmem:[#allocation28_spill] sm:$0xff] %v4119_v26  ;;  %v4126_v27 = vld [vmem:[%s5440_s3 + $0x38] sm:$0xff]  ;;  %5617 = vst [vmem:[#allocation30_spill] sm:$0xff] %v4128_v28  ;;  %v4139_v30 = vld [vmem:[%s5440_s3 + $0x30] sm:$0xff] }
  0x5e   : > { %2994 = vmatpush3.msra.mxu0 %v4087_v18  ;;  %529 = vmatpush1.msra.mxu1 %v4089_v19  ;;  %5616 = vst [vmem:[#allocation29_spill] sm:$0xff] %v4126_v27  ;;  %v4132_v29 = vld [vmem:[#allocation7 + $0xc8] sm:$0xff]  ;;  %v4141_v31 = vld [vmem:[#allocation7 + $0xc0] sm:$0xff]  ;;  %v4227_v51 = vld [vmem:[#allocation2] sm:$0xff] }
  0x5f   : > { %2995 = vmatprep.subr.mxu0 %v5519_v4  ;;  %530 = vmatprep.subr.mxu1 %v4093_v20  ;;  %5618 = vst [vmem:[#allocation31_spill] sm:$0xff] %v4132_v29  ;;  %5619 = vst [vmem:[#allocation32_spill] sm:$0xff] %v4141_v31  ;;  %v4145_v32 = vld [vmem:[#allocation7 + $0xa8] sm:$0xff]  ;;  %v4154_v34 = vld [vmem:[#allocation7 + $0xa0] sm:$0xff] }
  0x60   : > { %2996 = vmatpush3.msra.mxu0 %v4100_v21  ;;  %531 = vmatpush1.msra.mxu1 %v4102_v22  ;;  %5620 = vst [vmem:[#allocation33_spill] sm:$0xff] %v4145_v32  ;;  %5621 = vst [vmem:[#allocation34_spill] sm:$0xff] %v4154_v34  ;;  %v4158_v35 = vld [vmem:[#allocation7 + $0x88] sm:$0xff]  ;;  %v4167_v37 = vld [vmem:[#allocation7 + $0x80] sm:$0xff] }
  0x61   : > { %2997 = vmatprep.subr.mxu0 %v5519_v4  ;;  %532 = vmatprep.subr.mxu1 %v4106_v23  ;;  %5622 = vst [vmem:[#allocation35_spill] sm:$0xff] %v4158_v35  ;;  %5623 = vst [vmem:[#allocation36_spill] sm:$0xff] %v4167_v37  ;;  %v4171_v38 = vld [vmem:[#allocation7 + $0x68] sm:$0xff]  ;;  %v4180_v40 = vld [vmem:[#allocation7 + $0x60] sm:$0xff] }
  0x62   : > { %2998 = vmatpush3.msra.mxu0 %v4113_v24  ;;  %533 = vmatpush1.msra.mxu1 %v4115_v25  ;;  %5624 = vst [vmem:[#allocation37_spill] sm:$0xff] %v4171_v38  ;;  %v4178_v39 = vld [vmem:[%s5440_s3 + $0x18] sm:$0xff]  ;;  %5626 = vst [vmem:[#allocation39_spill] sm:$0xff] %v4180_v40  ;;  %v4191_v42 = vld [vmem:[%s5440_s3 + $0x10] sm:$0xff] }
  0x63   : > { %2999 = vmatprep.subr.mxu0 %v5519_v4  ;;  %534 = vmatprep.subr.mxu1 %v4119_v26  ;;  %5625 = vst [vmem:[#allocation38_spill] sm:$0xff] %v4178_v39  ;;  %v4184_v41 = vld [vmem:[#allocation7 + $0x48] sm:$0xff]  ;;  %5628 = vst [vmem:[#allocation41_spill] sm:$0xff] %v4191_v42  ;;  %v4193_v43 = vld [vmem:[#allocation7 + $0x40] sm:$0xff] }
  0x64   : > { %3000 = vmatpush3.msra.mxu0 %v4126_v27  ;;  %535 = vmatpush1.msra.mxu1 %v4128_v28  ;;  %5627 = vst [vmem:[#allocation40_spill] sm:$0xff] %v4184_v41  ;;  %5629 = vst [vmem:[#allocation42_spill] sm:$0xff] %v4193_v43  ;;  %v4197_v44 = vld [vmem:[#allocation7 + $0x28] sm:$0xff]  ;;  %v4206_v46 = vld [vmem:[#allocation7 + $0x20] sm:$0xff] }
  0x65   : > { %3001 = vmatprep.subr.mxu0 %v5519_v4  ;;  %536 = vmatprep.subr.mxu1 %v4132_v29  ;;  %5630 = vst [vmem:[#allocation43_spill] sm:$0xff] %v4197_v44  ;;  %5632 = vst [vmem:[#allocation45_spill] sm:$0xff] %v4206_v46  ;;  %v4210_v47 = vld [vmem:[#allocation7 + $0x8] sm:$0xff]  ;;  %v4221_v49 = vld [vmem:[#allocation7] sm:$0xff] }
  0x66   : > { %3002 = vmatpush3.msra.mxu0 %v4139_v30  ;;  %537 = vmatpush1.msra.mxu1 %v4141_v31  ;;  %5633 = vst [vmem:[#allocation46_spill] sm:$0xff] %v4210_v47  ;;  %5635 = vst [vmem:[#allocation48_spill] sm:$0xff] %v4221_v49  ;;  %v4232_v52 = vld [vmem:[#allocation7 + $0x1f8] sm:$0xff]  ;;  %v4236_v53 = vld [vmem:[#allocation7 + $0x1f0] sm:$0xff] }
  0x67   : > { %3003 = vmatprep.subr.mxu0 %v5519_v4  ;;  %538 = vmatprep.subr.mxu1 %v4145_v32  ;;  %5636 = vst [vmem:[#allocation49_spill] sm:$0xff] %v4232_v52  ;;  %v4240_v54 = vld [vmem:[#allocation7 + $0x1d8] sm:$0xff]  ;;  %v505_v55 = vld [vmem:[%s4014_s7] sm:$0xff] }
  0x68   : > { %3004 = vmatpush3.msra.mxu0 %v4152_v33  ;;  %539 = vmatpush1.msra.mxu1 %v4154_v34  ;;  %v4244_v56 = vld [vmem:[#allocation7 + $0x1d0] sm:$0xff]  ;;  %v4248_v57 = vld [vmem:[#allocation7 + $0x1b8] sm:$0xff] }
  0x69   : > { %3005 = vmatprep.subr.mxu0 %v5519_v4  ;;  %540 = vmatprep.subr.mxu1 %v4158_v35  ;;  %v4252_v59 = vld [vmem:[#allocation7 + $0x1b0] sm:$0xff]  ;;  %v4255_v60 = vld [vmem:[#allocation7 + $0x198] sm:$0xff] }
  0x6a   : > { %3006 = vmatpush3.msra.mxu0 %v4165_v36  ;;  %541 = vmatpush1.msra.mxu1 %v4167_v37  ;;  %5637 = vst [vmem:[#allocation50_spill] sm:$0xff] %v4255_v60  ;;  %v2764_v61 = vld [vmem:[%s4014_s7 + $0x8] sm:$0xff]  ;;  %v4260_v62 = vld [vmem:[#allocation7 + $0x190] sm:$0xff] }
  0x6b   : > { %3007 = vmatprep.subr.mxu0 %v5519_v4  ;;  %542 = vmatprep.subr.mxu1 %v4171_v38  ;;  %5638 = vst [vmem:[#allocation51_spill] sm:$0xff] %v4260_v62  ;;  %v4264_v63 = vld [vmem:[#allocation7 + $0x178] sm:$0xff]  ;;  %v4268_v0 = vld [vmem:[#allocation7 + $0x170] sm:$0xff] }
  0x6c   : > { %3008 = vmatpush3.msra.mxu0 %v4178_v39  ;;  %543 = vmatpush1.msra.mxu1 %v4180_v40  ;;  %5639 = vst [vmem:[#allocation52_spill] sm:$0xff] %v4264_v63 }
  0x6d   : > { %3009 = vmatprep.subr.mxu0 %v5519_v4  ;;  %544 = vmatprep.subr.mxu1 %v4184_v41 }
  0x6e   : > { %3010 = vmatpush3.msra.mxu0 %v4191_v42  ;;  %545 = vmatpush1.msra.mxu1 %v4193_v43 }
  0x6f   : > { %3011 = vmatprep.subr.mxu0 %v5519_v4  ;;  %546 = vmatprep.subr.mxu1 %v4197_v44 }
  0x70   : > { %3012 = vmatpush3.msra.mxu0 %v4204_v45  ;;  %547 = vmatpush1.msra.mxu1 %v4206_v46 }
  0x71   : > { %3013 = vmatprep.subr.mxu0 %v5519_v4  ;;  %548 = vmatprep.subr.mxu1 %v4210_v47 }
  0x72   : > { %3014 = vmatpush3.msra.mxu0 %v4217_v48  ;;  %3015 = vmatprep.mubr.msk.f32.mxu0 %vm3828_vm0, %v5519_v4 }
  0x73   : > { %549 = vmatpush1.msra.mxu1 %v4221_v49  ;;  %582 = vmatprep.mubr.f32.mxu1 %v5519_v4 }
  0x74   : > { %3016 = vmatmul.mubr.f32.vlgmr.msra.gmra.mxu0 %v4225_v50  ;;  %583 = vmatmul.mubr.f32.vlgmr.msra.gmra.mxu1 %v4227_v51 }
  0x75   : > { %589 = vmatprep.subr.mxu0 %v4232_v52  ;;  %653 = vmatprep.mubr.f32.mxu0 %v5519_v4 }
  0x76   : > { %590 = vmatpush1.msra.mxu0 %v4236_v53  ;;  %3358 = vset.pattern.permute.xlu0 %v5451_v58  ;;  %v2794_v58 = vld [vmem:[%s4014_s7 + $0x20] sm:$0xff] }
  0x77   : > { %591 = vmatprep.subr.mxu0 %v4240_v54  ;;  %509 = vperm.xlu0 %3358, %v505_v55   ;;  %v4271_v55 = vld [vmem:[#allocation7 + $0x158] sm:$0xff] }
  0x78   : > { %592 = vmatpush1.msra.mxu0 %v4244_v56  ;;  %3018 = vmatprep.subr.mxu1 %v5519_v4 }
  0x79   : > { %593 = vmatprep.subr.mxu0 %v4248_v57  ;;  %3019 = vmatpush3.msra.mxu1 %v4024_v2  ;;  %v4276_v2 = vld [vmem:[#allocation7 + $0x150] sm:$0xff] }
  0x7a   : > { %594 = vmatpush1.msra.mxu0 %v4252_v59  ;;  %3020 = vmatprep.subr.mxu1 %v5519_v4  ;;  %5640 = vst [vmem:[#allocation53_spill] sm:$0xff] %v4276_v2 }
  0x7b   : > { %595 = vmatprep.subr.mxu0 %v4255_v60  ;;  %772 = vperm.xlu0 %3358, %v2764_v61   ;;  %v4280_v60 = vld [vmem:[#allocation7 + $0x138] sm:$0xff]  ;;  %v4284_v61 = vld [vmem:[#allocation7 + $0x130] sm:$0xff] }
  0x7c   : > { %596 = vmatpush1.msra.mxu0 %v4260_v62  ;;  %3021 = vmatpush3.msra.mxu1 %v4035_v6  ;;  %5641 = vst [vmem:[#allocation54_spill] sm:$0xff] %v4284_v61  ;;  %v4287_v6 = vld [vmem:[#allocation7 + $0x118] sm:$0xff]  ;;  %v4292_v62 = vld [vmem:[#allocation7 + $0x110] sm:$0xff] }
  0x7d   : > { %597 = vmatprep.subr.mxu0 %v4264_v63  ;;  %3022 = vmatprep.subr.mxu1 %v5519_v4  ;;  %v2814_v63 = vld [vmem:[%s4014_s7 + $0x30] sm:$0xff] }
  0x7e   : > { %598 = vmatpush1.msra.mxu0 %v4268_v0  ;;  %3023 = vmatpush3.msra.mxu1 %v4048_v9  ;;  %v4296_v9 = vld [vmem:[#allocation7 + $0xf8] sm:$0xff] }
  0x7f   : > { %599 = vmatprep.subr.mxu0 %v4271_v55  ;;  %1570 = vperm.xlu0 %3358, %v2794_v58   ;;  %5642 = vst [vmem:[#allocation55_spill] sm:$0xff] %v4296_v9  ;;  %v4300_v58 = vld [vmem:[#allocation7 + $0xf0] sm:$0xff] }
  0x80   : > { %600 = vmatpush1.msra.mxu0 %v4276_v2  ;;  %3024 = vmatprep.subr.mxu1 %v5519_v4  ;;  %v4303_v2 = vld [vmem:[#allocation7 + $0xd8] sm:$0xff] }
  0x81   : > { %601 = vmatprep.subr.mxu0 %v4280_v60  ;;  %3025 = vmatpush3.msra.mxu1 %v4061_v12  ;;  %5643 = vst [vmem:[#allocation56_spill] sm:$0xff] %v4303_v2  ;;  %v4307_v12 = vld [vmem:[#allocation7 + $0xd0] sm:$0xff] }
  0x82   : > { %602 = vmatpush1.msra.mxu0 %v4284_v61  ;;  %3026 = vmatprep.subr.mxu1 %v5519_v4  ;;  %v4311_v61 = vld [vmem:[#allocation7 + $0xb8] sm:$0xff] }
  0x83   : > { %603 = vmatprep.subr.mxu0 %v4287_v6  ;;  %2102 = vperm.xlu0 %3358, %v2814_v63   ;;  %5644 = vst [vmem:[#allocation57_spill] sm:$0xff] %v4311_v61  ;;  %v4315_v63 = vld [vmem:[#allocation7 + $0xb0] sm:$0xff] }
  0x84   : > { %604 = vmatpush1.msra.mxu0 %v4292_v62  ;;  %3027 = vmatpush3.msra.mxu1 %v4074_v15  ;;  %v4319_v15 = vld [vmem:[#allocation7 + $0x98] sm:$0xff] }
  0x85   : > { %605 = vmatprep.subr.mxu0 %v4296_v9  ;;  %3028 = vmatprep.subr.mxu1 %v5519_v4  ;;  %5645 = vst [vmem:[#allocation58_spill] sm:$0xff] %v4319_v15  ;;  %v4323_v9 = vld [vmem:[#allocation7 + $0x90] sm:$0xff] }
  0x86   : > { %606 = vmatpush1.msra.mxu0 %v4300_v58  ;;  %3029 = vmatpush3.msra.mxu1 %v4087_v18  ;;  %v4327_v18 = vld [vmem:[#allocation7 + $0x78] sm:$0xff] }
  0x87   : > { %607 = vmatprep.subr.mxu0 %v4303_v2  ;;  %3030 = vmatprep.subr.mxu1 %v5519_v4  ;;  %5646 = vst [vmem:[#allocation59_spill] sm:$0xff] %v4327_v18  ;;  %v4331_v2 = vld [vmem:[#allocation7 + $0x70] sm:$0xff] }
  0x88   : > { %608 = vmatpush1.msra.mxu0 %v4307_v12  ;;  %3031 = vmatpush3.msra.mxu1 %v4100_v21  ;;  %v4335_v21 = vld [vmem:[#allocation7 + $0x58] sm:$0xff] }
  0x89   : > { %609 = vmatprep.subr.mxu0 %v4311_v61  ;;  %3032 = vmatprep.subr.mxu1 %v5519_v4  ;;  %v4339_v61 = vld [vmem:[#allocation7 + $0x50] sm:$0xff] }
  0x8a   : > { %610 = vmatpush1.msra.mxu0 %v4315_v63  ;;  %3033 = vmatpush3.msra.mxu1 %v4113_v24  ;;  %v4343_v24 = vld [vmem:[#allocation7 + $0x38] sm:$0xff] }
  0x8b   : > { %611 = vmatprep.subr.mxu0 %v4319_v15  ;;  %3034 = vmatprep.subr.mxu1 %v5519_v4  ;;  %v4347_v15 = vld [vmem:[#allocation7 + $0x30] sm:$0xff] }
  0x8c   : > { %612 = vmatpush1.msra.mxu0 %v4323_v9  ;;  %3035 = vmatpush3.msra.mxu1 %v4126_v27  ;;  %v4351_v27 = vld [vmem:[#allocation7 + $0x18] sm:$0xff] }
  0x8d   : > { %613 = vmatprep.subr.mxu0 %v4327_v18  ;;  %3036 = vmatprep.subr.mxu1 %v5519_v4  ;;  %v4355_v18 = vld [vmem:[#allocation7 + $0x10] sm:$0xff] }
  0x8e   : > { %614 = vmatpush1.msra.mxu0 %v4331_v2  ;;  %3037 = vmatpush3.msra.mxu1 %v4139_v30 }
  0x8f   : > { %615 = vmatprep.subr.mxu0 %v4335_v21  ;;  %3038 = vmatprep.subr.mxu1 %v5519_v4 }
  0x90   : > { %616 = vmatpush1.msra.mxu0 %v4339_v61  ;;  %3039 = vmatpush3.msra.mxu1 %v4152_v33 }
  0x91   : > { %617 = vmatprep.subr.mxu0 %v4343_v24  ;;  %3040 = vmatprep.subr.mxu1 %v5519_v4 }
  0x92   : > { %618 = vmatpush1.msra.mxu0 %v4347_v15  ;;  %3041 = vmatpush3.msra.mxu1 %v4165_v36 }
  0x93   : > { %619 = vmatprep.subr.mxu0 %v4351_v27  ;;  %3042 = vmatprep.subr.mxu1 %v5519_v4 }
  0x94   : > { %620 = vmatpush1.msra.mxu0 %v4355_v18  ;;  %3043 = vmatpush3.msra.mxu1 %v4178_v39 }
  0x95   : > { %654 = vmatmul.mubr.f32.vlgmr.msra.gmra.mxu0 %v4227_v51  ;;  %782 = vmatprep.subr.mxu0 %v4019_v1 }
  0x96   : > { %783 = vmatpush1.msra.mxu0 %v4026_v3  ;;  %3044 = vmatprep.subr.mxu1 %v5519_v4 }
  0x97   : > { %784 = vmatprep.subr.mxu0 %v4030_v5  ;;  %3045 = vmatpush3.msra.mxu1 %v4191_v42 }
  0x98   : > { %785 = vmatpush1.msra.mxu0 %v4037_v7  ;;  %3046 = vmatprep.subr.mxu1 %v5519_v4 }
  0x99   : > { %786 = vmatprep.subr.mxu0 %v4041_v8  ;;  %3047 = vmatpush3.msra.mxu1 %v4204_v45  ;;  %v5647_v45 = vmov 0  }
  0x9a   : > { %787 = vmatpush1.msra.mxu0 %v4050_v10  ;;  %3048 = vmatprep.subr.mxu1 %v5519_v4 }
  0x9b   : > { %788 = vmatprep.subr.mxu0 %v4054_v11  ;;  %3049 = vmatpush3.msra.mxu1 %v4217_v48 }
  0x9c   : > { %789 = vmatpush1.msra.mxu0 %v4063_v13  ;;  %3050 = vmatprep.mubr.msk.f32.mxu1 %vm3828_vm0, %v5519_v4 }
  0x9d   : > { %790 = vmatprep.subr.mxu0 %v4067_v14  ;;  %853 = vmatprep.subr.mxu1 %v4232_v52 }
  0x9e   : > { %791 = vmatpush1.msra.mxu0 %v4076_v16  ;;  %846 = vmatprep.mubr.f32.mxu0 %v5519_v4 }
  0x9f   : > { %792 = vmatprep.subr.mxu0 %v4080_v17  ;;  %3359 = vset.pattern.permute.xlu1 %v5647_v45 }
  0xa0   : > { %793 = vmatpush1.msra.mxu0 %v4089_v19 }
  0xa1   : > { %794 = vmatprep.subr.mxu0 %v4093_v20 }
  0xa2   : > { %795 = vmatpush1.msra.mxu0 %v4102_v22 }
  0xa3   : > { %796 = vmatprep.subr.mxu0 %v4106_v23 }
  0xa4   : > { %797 = vmatpush1.msra.mxu0 %v4115_v25 }
  0xa5   : > { %798 = vmatprep.subr.mxu0 %v4119_v26 }
  0xa6   : > { %799 = vmatpush1.msra.mxu0 %v4128_v28 }
  0xa7   : > { %800 = vmatprep.subr.mxu0 %v4132_v29  ;;  %v517_v29 = vld [vmem:[%s3995_s17 + $0x18] sm:$0xff] }
  0xa8   : > { %801 = vmatpush1.msra.mxu0 %v4141_v31 }
  0xa9   : > { %802 = vmatprep.subr.mxu0 %v4145_v32 }
  0xaa   : > { %803 = vmatpush1.msra.mxu0 %v4154_v34 }
  0xab   : > { %804 = vmatprep.subr.mxu0 %v4158_v35  ;;  %v515_v35 = vld [vmem:[%s3995_s17 + $0x8] sm:$0xff] }
  0xac   : > { %805 = vmatpush1.msra.mxu0 %v4167_v37  ;;  %v514_v37 = vld [vmem:[%s3995_s17] sm:$0xff] }
  0xad   : > { %806 = vmatprep.subr.mxu0 %v4171_v38 }
  0xae   : > { %807 = vmatpush1.msra.mxu0 %v4180_v40 }
  0xaf   : > { %808 = vmatprep.subr.mxu0 %v4184_v41 }
  0xb0   : > { %809 = vmatpush1.msra.mxu0 %v4193_v43 }
  0xb1   : > { %810 = vmatprep.subr.mxu0 %v4197_v44  ;;  %v516_v44 = vld [vmem:[%s3995_s17 + $0x10] sm:$0xff] }
  0xb2   : > { %811 = vmatpush1.msra.mxu0 %v4206_v46 }
  0xb3   : > { %812 = vmatprep.subr.mxu0 %v4210_v47 }
  0xb4   : > { %813 = vmatpush1.msra.mxu0 %v4221_v49 }
  0xb5   : > { %3053 = vmatprep.subr.mxu0 %v5519_v4 }
 0x134   : > { %v500_v45 = vpop.f32.mrf.mxu0  ;;  %v584_v40 = vpop.f32.mrf.mxu1 }
 0x135   : > { %v585_v34 = vadd.f32 %v584_v40, %v514_v37 }
 0x136   : > { %v3017_v38 = vpop.f32.mrf.mxu0  ;;  %v586_v41 = vpop.f32.mrf.mxu1 }
 0x137   : > { %v587_v43 = vadd.f32 %v586_v41, %v515_v35  ;;  %v2760_v32 = vmul.f32 -1.442695, %v585_v34 }
 0x139   : > { %v2761_v31 = vmul.f32 -1.442695, %v587_v43  ;;  %3360 = vpow2.f32 %v2760_v32 }
 0x13b   : > { %3362 = vpow2.f32 %v2761_v31 }
 0x146   : > { %v3361_v4 = vpop.eup %3360 }
 0x147   : > { %v672_v37 = vadd.f32 1.0, %v3361_v4 }
 0x148   : > { %v3363_v52 = vpop.eup %3362 }
 0x149   : > { %v673_v34 = vadd.f32 1.0, %v3363_v52 }
 0x155   : > { %v655_v46 = vpop.f32.mrf.mxu0 }
 0x156   : > { %v656_v47 = vadd.f32 %v655_v46, %v516_v44 }
 0x157   : > { %v657_v28 = vpop.f32.mrf.mxu0 }
 0x158   : > { %v2762_v49 = vmul.f32 -1.442695, %v656_v47  ;;  %v658_v26 = vadd.f32 %v657_v28, %v517_v29  ;;  %v510_v29 = vpop.permute.xlu0 %509  ;;  %v692_v47 = vstv %s691_s9  ;;  %s1753_s9 = sadd.s32 4, %s4007_s8 }
 0x159   : > { %vm4416_vm1 = vcmp.eq.s32.totalorder %v692_v47, 1  ;;  %v5660_v47 = vld [vmem:[#allocation57_spill] sm:$0xff]  ;;  %p1754_p5 = scmp.lt.s32.totalorder %s1753_s9, 12 }
 0x15a   : > { %3364 = vpow2.f32 %v2762_v49  ;;  %v2763_v38 = vmul.f32 -1.442695, %v658_v26 }
 0x15c   : > { %3366 = vpow2.f32 %v2763_v38  ;;  %v5665_v38 = vld [vmem:[#allocation24_spill] sm:$0xff] }
 0x15d   : > { %3368 = vtanh.f32 %v500_v45 }
 0x15e   : > { %3370 = vrcp.f32 %v672_v37 }
 0x167   : > { %v3365_v35 = vpop.eup %3364 }
 0x168   : > { %v674_v40 = vadd.f32 1.0, %v3365_v35 }
 0x169   : > { %v3367_v41 = vpop.eup %3366 }
 0x16a   : > { %3372 = vrcp.f32 %v674_v40  ;;  %v675_v32 = vadd.f32 1.0, %v3367_v41  ;;  %v3369_v28 = vpop.eup %3368  ;;  %v5651_v40 = vld [vmem:[#allocation50_spill] sm:$0xff]  ;;  %v5652_v41 = vld [vmem:[#allocation51_spill] sm:$0xff] }
 0x16b   : > { %3374 = vrcp.f32 %v673_v34  ;;  %v506_v26 = vsub.f32 %v4225_v50, %v3369_v28  ;;  %v512_v31 = vmul.f32 %v3369_v28, %v510_v29  ;;  %v3371_v43 = vpop.eup %3370  ;;  %v5650_v34 = vmov 0.0   ;;  %v5655_v29 = vld [vmem:[#allocation54_spill] sm:$0xff] }
 0x16c   : > { %3376 = vrcp.f32 %v675_v32  ;;  %v5654_v32 = vld [vmem:[#allocation53_spill] sm:$0xff] }
 0x16d   : > { %v513_v46 = vadd.f32 %v512_v31, %v506_v26 }
 0x16f   : > { %v684_v52 = vmul.f32 %v3371_v43, %v513_v46  ;;  %v5656_v43 = vld [vmem:[#allocation55_spill] sm:$0xff]  ;;  %v5658_v46 = vld [vmem:[#allocation56_spill] sm:$0xff] }
 0x177   : > { %v3373_v44 = vpop.eup %3372 }
 0x178   : > { %v3375_v4 = vpop.eup %3374  ;;  %689 = vst [vmem:[%s4016_s28] sm:$0xff] %v3373_v44 }
 0x179   : > { %v3377_v49 = vpop.eup %3376 }
 0x17a   : > { %v685_v45 = vmul.f32 %v3377_v49, %v3375_v4  ;;  %v5657_v4 = vld [vmem:[#allocation20_spill] sm:$0xff]  ;;  %v5662_v49 = vld [vmem:[#allocation58_spill] sm:$0xff] }
 0x17c   : > { %v686_v37 = vadd.f32 %v685_v45, %v684_v52  ;;  %v5663_v52 = vld [vmem:[#allocation23_spill] sm:$0xff] }
 0x17d   : > { %v5664_v45 = vld [vmem:[#allocation59_spill] sm:$0xff] }
 0x17e   : > { %3378 = vtanh.f32 %v686_v37  ;;  %v4423_v35 = vsel %vm4416_vm1, %v686_v37, %v4225_v50  ;;  %v5653_v50 = vld [vmem:[#allocation52_spill] sm:$0xff]  ;;  %v5666_v37 = vld [vmem:[#allocation25_spill] sm:$0xff] }
 0x17f   : > { %3051 = vmatmul.mubr.f32.vlgmr.msra.gmra.mxu1 %v4423_v35 }
 0x180   : > { %854 = vmatpush1.msra.mxu1 %v4236_v53  ;;  %917 = vmatprep.mubr.f32.mxu1 %v5650_v34 }
 0x181   : > { %855 = vmatprep.subr.mxu1 %v4240_v54 }
 0x182   : > { %856 = vmatpush1.msra.mxu1 %v4244_v56 }
 0x183   : > { %857 = vmatprep.subr.mxu1 %v4248_v57 }
 0x184   : > { %858 = vmatpush1.msra.mxu1 %v4252_v59 }
 0x185   : > { %859 = vmatprep.subr.mxu1 %v5651_v40 }
 0x186   : > { %860 = vmatpush1.msra.mxu1 %v5652_v41 }
 0x187   : > { %861 = vmatprep.subr.mxu1 %v5653_v50 }
 0x188   : > { %862 = vmatpush1.msra.mxu1 %v4268_v0 }
 0x189   : > { %863 = vmatprep.subr.mxu1 %v4271_v55 }
 0x18a   : > { %864 = vmatpush1.msra.mxu1 %v5654_v32 }
 0x18b   : > { %v3379_v28 = vpop.eup %3378  ;;  %865 = vmatprep.subr.mxu1 %v4280_v60 }
 0x18c   : > { %866 = vmatpush1.msra.mxu1 %v5655_v29  ;;  %v688_v26 = vmul.f32 %v3379_v28, %v3373_v44  ;;  %v5659_v44 = vld [vmem:[#allocation21_spill] sm:$0xff]  ;;  %v5667_v28 = vld [vmem:[#allocation26_spill] sm:$0xff] }
 0x18d   : > { %867 = vmatprep.subr.mxu1 %v4287_v6 }
 0x18e   : > { %868 = vmatpush1.msra.mxu1 %v4292_v62  ;;  %v4445_v31 = vsel %vm4416_vm1, %v688_v26, %v4227_v51  ;;  %v5661_v51 = vld [vmem:[#allocation22_spill] sm:$0xff]  ;;  %v5668_v26 = vld [vmem:[#allocation27_spill] sm:$0xff] }
 0x18f   : > { %869 = vmatprep.subr.mxu1 %v5656_v43  ;;  %847 = vmatmul.mubr.f32.vlgmr.msra.gmra.mxu0 %v4445_v31 }
 0x190   : > { %870 = vmatpush1.msra.mxu1 %v4300_v58  ;;  %3054 = vmatpush3.msra.mxu0 %v5657_v4 }
 0x191   : > { %871 = vmatprep.subr.mxu1 %v5658_v46  ;;  %3055 = vmatprep.subr.mxu0 %v5650_v34 }
 0x192   : > { %872 = vmatpush1.msra.mxu1 %v4307_v12  ;;  %3056 = vmatpush3.msra.mxu0 %v5659_v44 }
 0x193   : > { %873 = vmatprep.subr.mxu1 %v5660_v47  ;;  %3057 = vmatprep.subr.mxu0 %v5650_v34 }
 0x194   : > { %874 = vmatpush1.msra.mxu1 %v4315_v63  ;;  %3058 = vmatpush3.msra.mxu0 %v5661_v51 }
 0x195   : > { %875 = vmatprep.subr.mxu1 %v5662_v49  ;;  %3059 = vmatprep.subr.mxu0 %v5650_v34 }
 0x196   : > { %876 = vmatpush1.msra.mxu1 %v4323_v9  ;;  %3060 = vmatpush3.msra.mxu0 %v5663_v52 }
 0x197   : > { %877 = vmatprep.subr.mxu1 %v5664_v45  ;;  %3061 = vmatprep.subr.mxu0 %v5650_v34 }
 0x198   : > { %878 = vmatpush1.msra.mxu1 %v4331_v2  ;;  %3062 = vmatpush3.msra.mxu0 %v5665_v38 }
 0x199   : > { %879 = vmatprep.subr.mxu1 %v4335_v21  ;;  %3063 = vmatprep.subr.mxu0 %v5650_v34 }
 0x19a   : > { %880 = vmatpush1.msra.mxu1 %v4339_v61  ;;  %3064 = vmatpush3.msra.mxu0 %v5666_v37  ;;  %v5669_v37 = vld [vmem:[#allocation29_spill] sm:$0xff] }
 0x19b   : > { %881 = vmatprep.subr.mxu1 %v4343_v24  ;;  %3065 = vmatprep.subr.mxu0 %v5650_v34 }
 0x19c   : > { %882 = vmatpush1.msra.mxu1 %v4347_v15  ;;  %3066 = vmatpush3.msra.mxu0 %v5667_v28 }
 0x19d   : > { %883 = vmatprep.subr.mxu1 %v4351_v27  ;;  %3067 = vmatprep.subr.mxu0 %v5650_v34 }
 0x19e   : > { %884 = vmatpush1.msra.mxu1 %v4355_v18  ;;  %3068 = vmatpush3.msra.mxu0 %v5668_v26 }
 0x19f   : > { %918 = vmatmul.mubr.f32.vlgmr.msra.gmra.mxu1 %v4445_v31  ;;  %3069 = vmatprep.subr.mxu0 %v5650_v34 }
 0x1a0   : > { %3070 = vmatpush3.msra.mxu0 %v5669_v37  ;;  %1048 = vmatprep.subr.mxu1 %v4019_v1  ;;  %v5670_v1 = vld [vmem:[#allocation44_spill] sm:$0xff] }
 0x1a1   : > { %3071 = vmatprep.subr.mxu0 %v5650_v34  ;;  %1049 = vmatpush1.msra.mxu1 %v4026_v3  ;;  %v5671_v3 = vld [vmem:[#allocation49_spill] sm:$0xff] }
 0x1a2   : > { %3072 = vmatpush3.msra.mxu0 %v4139_v30  ;;  %1050 = vmatprep.subr.mxu1 %v4030_v5  ;;  %v5672_v5 = vld [vmem:[#allocation28_spill] sm:$0xff] }
 0x1a3   : > { %3073 = vmatprep.subr.mxu0 %v5650_v34  ;;  %1051 = vmatpush1.msra.mxu1 %v4037_v7  ;;  %v5673_v7 = vld [vmem:[#allocation30_spill] sm:$0xff] }
 0x1a4   : > { %3074 = vmatpush3.msra.mxu0 %v4152_v33  ;;  %1052 = vmatprep.subr.mxu1 %v4041_v8  ;;  %v5674_v8 = vld [vmem:[#allocation31_spill] sm:$0xff] }
 0x1a5   : > { %3075 = vmatprep.subr.mxu0 %v5650_v34  ;;  %1053 = vmatpush1.msra.mxu1 %v4050_v10  ;;  %v5675_v10 = vld [vmem:[#allocation32_spill] sm:$0xff] }
 0x1a6   : > { %3076 = vmatpush3.msra.mxu0 %v4165_v36  ;;  %1054 = vmatprep.subr.mxu1 %v4054_v11  ;;  %v5676_v11 = vld [vmem:[#allocation33_spill] sm:$0xff] }
 0x1a7   : > { %3077 = vmatprep.subr.mxu0 %v5650_v34  ;;  %1055 = vmatpush1.msra.mxu1 %v4063_v13  ;;  %v5677_v13 = vld [vmem:[#allocation34_spill] sm:$0xff] }
 0x1a8   : > { %3078 = vmatpush3.msra.mxu0 %v4178_v39  ;;  %1056 = vmatprep.subr.mxu1 %v4067_v14  ;;  %v5678_v14 = vld [vmem:[#allocation35_spill] sm:$0xff] }
 0x1a9   : > { %3079 = vmatprep.subr.mxu0 %v5650_v34  ;;  %1057 = vmatpush1.msra.mxu1 %v4076_v16  ;;  %v5679_v16 = vld [vmem:[#allocation36_spill] sm:$0xff] }
 0x1aa   : > { %3080 = vmatpush3.msra.mxu0 %v4191_v42  ;;  %1058 = vmatprep.subr.mxu1 %v4080_v17  ;;  %v5680_v17 = vld [vmem:[#allocation37_spill] sm:$0xff] }
 0x1ab   : > { %3081 = vmatprep.subr.mxu0 %v5650_v34  ;;  %1059 = vmatpush1.msra.mxu1 %v4089_v19  ;;  %v5681_v19 = vld [vmem:[#allocation39_spill] sm:$0xff] }
 0x1ac   : > { %3082 = vmatpush3.msra.mxu0 %v5670_v1  ;;  %1060 = vmatprep.subr.mxu1 %v4093_v20  ;;  %v5682_v20 = vld [vmem:[#allocation40_spill] sm:$0xff] }
 0x1ad   : > { %3083 = vmatprep.subr.mxu0 %v5650_v34  ;;  %1061 = vmatpush1.msra.mxu1 %v4102_v22  ;;  %v5683_v22 = vld [vmem:[#allocation42_spill] sm:$0xff] }
 0x1ae   : > { %3084 = vmatpush3.msra.mxu0 %v4217_v48  ;;  %1062 = vmatprep.subr.mxu1 %v4106_v23  ;;  %v5684_v23 = vld [vmem:[#allocation43_spill] sm:$0xff]  ;;  %v2768_v48 = vld [vmem:[%s3995_s17 + $0x38] sm:$0xff] }
 0x1af   : > { %3085 = vmatprep.mubr.msk.f32.mxu0 %vm3828_vm0, %v5650_v34  ;;  %1063 = vmatpush1.msra.mxu1 %v4115_v25  ;;  %v5685_v25 = vld [vmem:[#allocation45_spill] sm:$0xff] }
 0x1b0   : > { %1119 = vmatprep.subr.mxu0 %v5671_v3  ;;  %1064 = vmatprep.subr.mxu1 %v5672_v5  ;;  %v5686_v5 = vld [vmem:[#allocation46_spill] sm:$0xff] }
 0x1b1   : > { %1065 = vmatpush1.msra.mxu1 %v5673_v7  ;;  %1112 = vmatprep.mubr.f32.mxu1 %v5650_v34  ;;  %v5687_v7 = vld [vmem:[#allocation48_spill] sm:$0xff] }
 0x1b2   : > { %1066 = vmatprep.subr.mxu1 %v5674_v8  ;;  %v2774_v8 = vld [vmem:[%s4014_s7 + $0x10] sm:$0xff] }
 0x1b3   : > { %1067 = vmatpush1.msra.mxu1 %v5675_v10  ;;  %1038 = vperm.xlu1 %3359, %v2774_v8   ;;  %v2784_v10 = vld [vmem:[%s4014_s7 + $0x18] sm:$0xff] }
 0x1b4   : > { %1068 = vmatprep.subr.mxu1 %v5676_v11  ;;  %v2804_v11 = vld [vmem:[%s4014_s7 + $0x28] sm:$0xff] }
 0x1b5   : > { %1069 = vmatpush1.msra.mxu1 %v5677_v13  ;;  %v2767_v13 = vld [vmem:[%s3995_s17 + $0x30] sm:$0xff] }
 0x1b6   : > { %1070 = vmatprep.subr.mxu1 %v5678_v14 }
 0x1b7   : > { %1071 = vmatpush1.msra.mxu1 %v5679_v16  ;;  %1304 = vperm.xlu1 %3359, %v2784_v10  }
 0x1b8   : > { %1072 = vmatprep.subr.mxu1 %v5680_v17  ;;  %v2766_v17 = vld [vmem:[%s3995_s17 + $0x28] sm:$0xff] }
 0x1b9   : > { %1073 = vmatpush1.msra.mxu1 %v5681_v19  ;;  %v2765_v19 = vld [vmem:[%s3995_s17 + $0x20] sm:$0xff] }
 0x1ba   : > { %1074 = vmatprep.subr.mxu1 %v5682_v20 }
 0x1bb   : > { %1075 = vmatpush1.msra.mxu1 %v5683_v22  ;;  %1836 = vperm.xlu1 %3359, %v2804_v11   ;;  %v2824_v22 = vld [vmem:[%s4014_s7 + $0x38] sm:$0xff]  ;;  %s955_s7 = sadd.s32 1, %s4007_s8 }
 0x1bc   : > { %1076 = vmatprep.subr.mxu1 %v5684_v23  ;;  %p956_p13 = scmp.lt.s32.totalorder %s955_s7, 12 }
 0x1bd   : > { %1077 = vmatpush1.msra.mxu1 %v5685_v25  ;;  %s1755_s7 = scalar_select %p1754_p5, 1, 0 }
 0x1be   : > { %1078 = vmatprep.subr.mxu1 %v5686_v5  ;;  %s957_s13 = scalar_select %p956_p13, 1, 0 }
 0x1bf   : > { %1079 = vmatpush1.msra.mxu1 %v5687_v7  ;;  %2368 = vperm.xlu1 %3359, %v2824_v22  }
 0x1c0   : > { %3088 = vmatprep.subr.mxu1 %v5650_v34 }
 0x23f   : > { %v762_v23 = vpop.f32.mrf.mxu1 }
 0x241   : > { %v3052_v20 = vpop.f32.mrf.mxu1 }
 0x24f   : > { %v848_v25 = vpop.f32.mrf.mxu0 }
 0x250   : > { %v849_v16 = vadd.f32 %v2765_v19, %v848_v25 }
 0x251   : > { %v850_v5 = vpop.f32.mrf.mxu0 }
 0x252   : > { %v851_v7 = vadd.f32 %v2766_v17, %v850_v5  ;;  %v2769_v14 = vmul.f32 -1.442695, %v849_v16 }
 0x254   : > { %v2770_v3 = vmul.f32 -1.442695, %v851_v7  ;;  %3380 = vpow2.f32 %v2769_v14 }
 0x256   : > { %3382 = vpow2.f32 %v2770_v3 }
 0x25f   : > { %v919_v8 = vpop.f32.mrf.mxu1 }
 0x260   : > { %v920_v10 = vadd.f32 %v2767_v13, %v919_v8  ;;  %v958_v8 = vstv %s957_s13  ;;  %s2019_s13 = sadd.s32 5, %s4007_s8 }
 0x261   : > { %v921_v1 = vpop.f32.mrf.mxu1  ;;  %v3381_v20 = vpop.eup %3380  ;;  %vm959_vm2 = vcmp.eq.s32.totalorder %v958_v8, 1  ;;  %v5716_v8 = vld [vmem:[#allocation40_spill] sm:$0xff]  ;;  %p2020_p7 = scmp.lt.s32.totalorder %s2019_s13, 12 }
 0x262   : > { %v2771_v11 = vmul.f32 -1.442695, %v920_v10  ;;  %v922_v42 = vadd.f32 %v2768_v48, %v921_v1  ;;  %v936_v19 = vadd.f32 1.0, %v3381_v20  ;;  %v773_v48 = vpop.permute.xlu0 %772 }
 0x263   : > { %v3383_v39 = vpop.eup %3382  ;;  %s2021_s15 = scalar_select %p2020_p7, 1, 0 }
 0x264   : > { %v2772_v22 = vmul.f32 -1.442695, %v922_v42  ;;  %3384 = vpow2.f32 %v2771_v11  ;;  %v937_v16 = vadd.f32 1.0, %v3383_v39 }
 0x266   : > { %3386 = vpow2.f32 %v2772_v22 }
 0x267   : > { %3388 = vtanh.f32 %v762_v23 }
 0x268   : > { %3390 = vrcp.f32 %v936_v19 }
 0x271   : > { %v3385_v17 = vpop.eup %3384 }
 0x272   : > { %v938_v25 = vadd.f32 1.0, %v3385_v17  ;;  %v4660_v17 = vld [vmem:[#allocation7 + $0x108] sm:$0xff] }
 0x273   : > { %v3387_v5 = vpop.eup %3386  ;;  %5703 = vst [vmem:[#allocation22_spill] sm:$0xff] %v4660_v17 }
 0x274   : > { %3392 = vrcp.f32 %v938_v25  ;;  %v939_v13 = vadd.f32 1.0, %v3387_v5  ;;  %v3389_v42 = vpop.eup %3388  ;;  %v5705_v25 = vld [vmem:[#allocation49_spill] sm:$0xff]  ;;  %v4669_v5 = vld [vmem:[#allocation7 + $0xe8] sm:$0xff] }
 0x275   : > { %3394 = vrcp.f32 %v937_v16  ;;  %v769_v1 = vsub.f32 %v4423_v35, %v3389_v42  ;;  %v775_v3 = vmul.f32 %v3389_v42, %v773_v48  ;;  %v3391_v14 = vpop.eup %3390  ;;  %v4665_v16 = vld [vmem:[#allocation7 + $0x100] sm:$0xff]  ;;  %5706 = vst [vmem:[#allocation23_spill] sm:$0xff] %v4669_v5  ;;  %v4676_v42 = vld [vmem:[#allocation7 + $0xc8] sm:$0xff] }
 0x276   : > { %3396 = vrcp.f32 %v939_v13  ;;  %5704 = vst [vmem:[#allocation58_spill] sm:$0xff] %v4665_v16  ;;  %v4672_v13 = vld [vmem:[#allocation7 + $0xe0] sm:$0xff]  ;;  %5708 = vst [vmem:[#allocation24_spill] sm:$0xff] %v4676_v42 }
 0x277   : > { %v776_v39 = vadd.f32 %v775_v3, %v769_v1  ;;  %5707 = vst [vmem:[#allocation59_spill] sm:$0xff] %v4672_v13  ;;  %v4679_v48 = vld [vmem:[#allocation7 + $0xc0] sm:$0xff]  ;;  %v4682_v1 = vld [vmem:[#allocation7 + $0xa8] sm:$0xff] }
 0x278   : > { %5709 = vst [vmem:[#allocation26_spill] sm:$0xff] %v4679_v48  ;;  %5710 = vst [vmem:[#allocation27_spill] sm:$0xff] %v4682_v1  ;;  %v5711_v3 = vld [vmem:[#allocation34_spill] sm:$0xff] }
 0x279   : > { %v948_v11 = vmul.f32 %v3391_v14, %v776_v39  ;;  %v5712_v14 = vld [vmem:[#allocation35_spill] sm:$0xff] }
 0x27a   : > { %v5715_v39 = vld [vmem:[#allocation39_spill] sm:$0xff] }
 0x281   : > { %v3393_v23 = vpop.eup %3392 }
 0x282   : > { %v3395_v7 = vpop.eup %3394  ;;  %2773 = vst [vmem:[%s4016_s28 + $0x8] sm:$0xff] %v3393_v23 }
 0x283   : > { %v3397_v10 = vpop.eup %3396 }
 0x284   : > { %v949_v22 = vmul.f32 %v3397_v10, %v3395_v7  ;;  %v5714_v7 = vld [vmem:[#allocation37_spill] sm:$0xff]  ;;  %v5717_v10 = vld [vmem:[#allocation42_spill] sm:$0xff] }
 0x286   : > { %v950_v20 = vadd.f32 %v949_v22, %v948_v11  ;;  %v5718_v11 = vld [vmem:[#allocation43_spill] sm:$0xff]  ;;  %v5719_v22 = vld [vmem:[#allocation45_spill] sm:$0xff] }
 0x288   : > { %3398 = vtanh.f32 %v950_v20  ;;  %v4546_v19 = vsel %vm959_vm2, %v950_v20, %v4423_v35  ;;  %v4612_v35 = vld [vmem:[#allocation7 + $0x1c8] sm:$0xff]  ;;  %v5720_v20 = vld [vmem:[#allocation46_spill] sm:$0xff] }
 0x289   : > { %3086 = vmatmul.mubr.f32.vlgmr.msra.gmra.mxu0 %v4546_v19 }
 0x28a   : > { %1120 = vmatpush1.msra.mxu0 %v4236_v53  ;;  %1183 = vmatprep.mubr.f32.mxu0 %v5650_v34 }
 0x28b   : > { %1121 = vmatprep.subr.mxu0 %v4240_v54 }
 0x28c   : > { %1122 = vmatpush1.msra.mxu0 %v4244_v56 }
 0x28d   : > { %1123 = vmatprep.subr.mxu0 %v4248_v57  ;;  %v5688_v57 = vld [vmem:[#allocation25_spill] sm:$0xff] }
 0x28e   : > { %1124 = vmatpush1.msra.mxu0 %v4252_v59  ;;  %v4604_v59 = vld [vmem:[#allocation7 + $0x1e8] sm:$0xff] }
 0x28f   : > { %1125 = vmatprep.subr.mxu0 %v5651_v40  ;;  %v4616_v40 = vld [vmem:[#allocation7 + $0x1c0] sm:$0xff] }
 0x290   : > { %1126 = vmatpush1.msra.mxu0 %v5652_v41  ;;  %v4620_v41 = vld [vmem:[#allocation7 + $0x1a8] sm:$0xff] }
 0x291   : > { %1127 = vmatprep.subr.mxu0 %v5653_v50  ;;  %5689 = vst [vmem:[#allocation50_spill] sm:$0xff] %v4620_v41  ;;  %v4624_v50 = vld [vmem:[#allocation7 + $0x1a0] sm:$0xff] }
 0x292   : > { %1128 = vmatpush1.msra.mxu0 %v4268_v0  ;;  %v4608_v0 = vld [vmem:[#allocation7 + $0x1e0] sm:$0xff]  ;;  %5690 = vst [vmem:[#allocation51_spill] sm:$0xff] %v4624_v50 }
 0x293   : > { %1129 = vmatprep.subr.mxu0 %v4271_v55 }
 0x294   : > { %1130 = vmatpush1.msra.mxu0 %v5654_v32 }
 0x295   : > { %v3399_v53 = vpop.eup %3398  ;;  %1131 = vmatprep.subr.mxu0 %v4280_v60 }
 0x296   : > { %1132 = vmatpush1.msra.mxu0 %v5655_v29  ;;  %v952_v54 = vmul.f32 %v3399_v53, %v3393_v23  ;;  %v5713_v23 = vld [vmem:[#allocation36_spill] sm:$0xff] }
 0x297   : > { %1133 = vmatprep.subr.mxu0 %v4287_v6  ;;  %v5721_v53 = vld [vmem:[#allocation48_spill] sm:$0xff] }
 0x298   : > { %1134 = vmatpush1.msra.mxu0 %v4292_v62  ;;  %v4567_v56 = vsel %vm959_vm2, %v952_v54, %v4445_v31  ;;  %v4632_v31 = vld [vmem:[#allocation7 + $0x180] sm:$0xff] }
 0x299   : > { %1135 = vmatprep.subr.mxu0 %v5656_v43  ;;  %1113 = vmatmul.mubr.f32.vlgmr.msra.gmra.mxu1 %v4567_v56  ;;  %5692 = vst [vmem:[#allocation53_spill] sm:$0xff] %v4632_v31 }
 0x29a   : > { %1136 = vmatpush1.msra.mxu0 %v4300_v58  ;;  %3089 = vmatpush3.msra.mxu1 %v5657_v4  ;;  %v4636_v4 = vld [vmem:[#allocation7 + $0x168] sm:$0xff] }
 0x29b   : > { %1137 = vmatprep.subr.mxu0 %v5658_v46  ;;  %3090 = vmatprep.subr.mxu1 %v5650_v34  ;;  %5694 = vst [vmem:[#allocation54_spill] sm:$0xff] %v4636_v4 }
 0x29c   : > { %1138 = vmatpush1.msra.mxu0 %v4307_v12  ;;  %3091 = vmatpush3.msra.mxu1 %v5659_v44  ;;  %v4640_v44 = vld [vmem:[#allocation7 + $0x160] sm:$0xff] }
 0x29d   : > { %1139 = vmatprep.subr.mxu0 %v5660_v47  ;;  %3092 = vmatprep.subr.mxu1 %v5650_v34  ;;  %5695 = vst [vmem:[#allocation55_spill] sm:$0xff] %v4640_v44 }
 0x29e   : > { %1140 = vmatpush1.msra.mxu0 %v4315_v63  ;;  %3093 = vmatpush3.msra.mxu1 %v5661_v51  ;;  %v4644_v51 = vld [vmem:[#allocation7 + $0x148] sm:$0xff] }
 0x29f   : > { %1141 = vmatprep.subr.mxu0 %v5662_v49  ;;  %3094 = vmatprep.subr.mxu1 %v5650_v34  ;;  %5697 = vst [vmem:[#allocation20_spill] sm:$0xff] %v4644_v51 }
 0x2a0   : > { %1142 = vmatpush1.msra.mxu0 %v4323_v9  ;;  %3095 = vmatpush3.msra.mxu1 %v5663_v52  ;;  %v4648_v52 = vld [vmem:[#allocation7 + $0x140] sm:$0xff] }
 0x2a1   : > { %1143 = vmatprep.subr.mxu0 %v5664_v45  ;;  %3096 = vmatprep.subr.mxu1 %v5650_v34  ;;  %5698 = vst [vmem:[#allocation56_spill] sm:$0xff] %v4648_v52 }
 0x2a2   : > { %1144 = vmatpush1.msra.mxu0 %v4331_v2  ;;  %3097 = vmatpush3.msra.mxu1 %v5665_v38  ;;  %v5699_v38 = vld [vmem:[#allocation44_spill] sm:$0xff] }
 0x2a3   : > { %1145 = vmatprep.subr.mxu0 %v4335_v21  ;;  %3098 = vmatprep.subr.mxu1 %v5650_v34 }
 0x2a4   : > { %1146 = vmatpush1.msra.mxu0 %v4339_v61  ;;  %3099 = vmatpush3.msra.mxu1 %v5688_v57 }
 0x2a5   : > { %1147 = vmatprep.subr.mxu0 %v4343_v24  ;;  %3100 = vmatprep.subr.mxu1 %v5650_v34 }
 0x2a6   : > { %1148 = vmatpush1.msra.mxu0 %v4347_v15  ;;  %3101 = vmatpush3.msra.mxu1 %v5667_v28  ;;  %v4656_v28 = vld [vmem:[#allocation7 + $0x120] sm:$0xff] }
 0x2a7   : > { %1149 = vmatprep.subr.mxu0 %v4351_v27  ;;  %3102 = vmatprep.subr.mxu1 %v5650_v34  ;;  %5701 = vst [vmem:[#allocation57_spill] sm:$0xff] %v4656_v28 }
 0x2a8   : > { %1150 = vmatpush1.msra.mxu0 %v4355_v18  ;;  %3103 = vmatpush3.msra.mxu1 %v5668_v26  ;;  %v5702_v26 = vld [vmem:[#allocation47_spill] sm:$0xff] }
 0x2a9   : > { %1184 = vmatmul.mubr.f32.vlgmr.msra.gmra.mxu0 %v4567_v56  ;;  %3104 = vmatprep.subr.mxu1 %v5650_v34 }
 0x2aa   : > { %3105 = vmatpush3.msra.mxu1 %v5669_v37  ;;  %1314 = vmatprep.subr.mxu0 %v4604_v59  ;;  %v4652_v37 = vld [vmem:[#allocation7 + $0x128] sm:$0xff] }
 0x2ab   : > { %3106 = vmatprep.subr.mxu1 %v5650_v34  ;;  %1315 = vmatpush1.msra.mxu0 %v4608_v0  ;;  %5700 = vst [vmem:[#allocation21_spill] sm:$0xff] %v4652_v37 }
 0x2ac   : > { %3107 = vmatpush3.msra.mxu1 %v4139_v30  ;;  %1316 = vmatprep.subr.mxu0 %v4612_v35  ;;  %v4628_v30 = vld [vmem:[#allocation7 + $0x188] sm:$0xff] }
 0x2ad   : > { %3108 = vmatprep.subr.mxu1 %v5650_v34  ;;  %1317 = vmatpush1.msra.mxu0 %v4616_v40  ;;  %5691 = vst [vmem:[#allocation52_spill] sm:$0xff] %v4628_v30 }
 0x2ae   : > { %3109 = vmatpush3.msra.mxu1 %v4152_v33  ;;  %1318 = vmatprep.subr.mxu0 %v4620_v41  ;;  %v5693_v33 = vld [vmem:[#allocation38_spill] sm:$0xff] }
 0x2af   : > { %3110 = vmatprep.subr.mxu1 %v5650_v34  ;;  %1319 = vmatpush1.msra.mxu0 %v4624_v50 }
 0x2b0   : > { %3111 = vmatpush3.msra.mxu1 %v4165_v36  ;;  %1320 = vmatprep.subr.mxu0 %v4628_v30  ;;  %v5696_v36 = vld [vmem:[#allocation41_spill] sm:$0xff] }
 0x2b1   : > { %3112 = vmatprep.subr.mxu1 %v5650_v34  ;;  %1321 = vmatpush1.msra.mxu0 %v4632_v31 }
 0x2b2   : > { %3113 = vmatpush3.msra.mxu1 %v5693_v33  ;;  %1322 = vmatprep.subr.mxu0 %v4636_v4 }
 0x2b3   : > { %3114 = vmatprep.subr.mxu1 %v5650_v34  ;;  %1323 = vmatpush1.msra.mxu0 %v4640_v44 }
 0x2b4   : > { %3115 = vmatpush3.msra.mxu1 %v5696_v36  ;;  %1324 = vmatprep.subr.mxu0 %v4644_v51  ;;  %v2775_v36 = vld [vmem:[%s3995_s17 + $0x40] sm:$0xff] }
 0x2b5   : > { %3116 = vmatprep.subr.mxu1 %v5650_v34  ;;  %1325 = vmatpush1.msra.mxu0 %v4648_v52 }
 0x2b6   : > { %3117 = vmatpush3.msra.mxu1 %v5699_v38  ;;  %1326 = vmatprep.subr.mxu0 %v4652_v37  ;;  %v2776_v38 = vld [vmem:[%s3995_s17 + $0x48] sm:$0xff] }
 0x2b7   : > { %3118 = vmatprep.subr.mxu1 %v5650_v34  ;;  %1327 = vmatpush1.msra.mxu0 %v4656_v28 }
 0x2b8   : > { %3119 = vmatpush3.msra.mxu1 %v5702_v26  ;;  %1328 = vmatprep.subr.mxu0 %v4660_v17 }
 0x2b9   : > { %3120 = vmatprep.mubr.msk.f32.mxu1 %vm3828_vm0, %v5650_v34  ;;  %1329 = vmatpush1.msra.mxu0 %v4665_v16 }
 0x2ba   : > { %1385 = vmatprep.subr.mxu1 %v5705_v25  ;;  %1330 = vmatprep.subr.mxu0 %v4669_v5 }
 0x2bb   : > { %1331 = vmatpush1.msra.mxu0 %v4672_v13  ;;  %1378 = vmatprep.mubr.f32.mxu0 %v5650_v34 }
 0x2bc   : > { %1332 = vmatprep.subr.mxu0 %v4676_v42 }
 0x2bd   : > { %1333 = vmatpush1.msra.mxu0 %v4679_v48 }
 0x2be   : > { %1334 = vmatprep.subr.mxu0 %v4682_v1 }
 0x2bf   : > { %1335 = vmatpush1.msra.mxu0 %v5711_v3 }
 0x2c0   : > { %1336 = vmatprep.subr.mxu0 %v5712_v14 }
 0x2c1   : > { %1337 = vmatpush1.msra.mxu0 %v5713_v23  ;;  %v2777_v23 = vld [vmem:[%s3995_s17 + $0x50] sm:$0xff] }
 0x2c2   : > { %1338 = vmatprep.subr.mxu0 %v5714_v7 }
 0x2c3   : > { %1339 = vmatpush1.msra.mxu0 %v5715_v39 }
 0x2c4   : > { %1340 = vmatprep.subr.mxu0 %v5716_v8  ;;  %v2778_v8 = vld [vmem:[%s3995_s17 + $0x58] sm:$0xff] }
 0x2c5   : > { %1341 = vmatpush1.msra.mxu0 %v5717_v10 }
 0x2c6   : > { %1342 = vmatprep.subr.mxu0 %v5718_v11 }
 0x2c7   : > { %1343 = vmatpush1.msra.mxu0 %v5719_v22 }
 0x2c8   : > { %1344 = vmatprep.subr.mxu0 %v5720_v20 }
 0x2c9   : > { %1345 = vmatpush1.msra.mxu0 %v5721_v53 }
 0x2ca   : > { %3123 = vmatprep.subr.mxu0 %v5650_v34 }
 0x349   : > { %v1028_v54 = vpop.f32.mrf.mxu0 }
 0x34b   : > { %v3087_v57 = vpop.f32.mrf.mxu0 }
 0x359   : > { %v1114_v33 = vpop.f32.mrf.mxu1 }
 0x35a   : > { %v1115_v25 = vadd.f32 %v2775_v36, %v1114_v33 }
 0x35b   : > { %v1116_v26 = vpop.f32.mrf.mxu1 }
 0x35c   : > { %v1117_v3 = vadd.f32 %v2776_v38, %v1116_v26  ;;  %v2779_v14 = vmul.f32 -1.442695, %v1115_v25 }
 0x35e   : > { %v2780_v7 = vmul.f32 -1.442695, %v1117_v3  ;;  %3400 = vpow2.f32 %v2779_v14 }
 0x360   : > { %3402 = vpow2.f32 %v2780_v7 }
 0x369   : > { %v1185_v39 = vpop.f32.mrf.mxu0 }
 0x36a   : > { %v1186_v10 = vadd.f32 %v2777_v23, %v1185_v39  ;;  %v1039_v23 = vpop.permute.xlu1 %1038 }
 0x36b   : > { %v1187_v11 = vpop.f32.mrf.mxu0  ;;  %v3401_v57 = vpop.eup %3400 }
 0x36c   : > { %v2781_v22 = vmul.f32 -1.442695, %v1186_v10  ;;  %v1188_v20 = vadd.f32 %v2778_v8, %v1187_v11  ;;  %v1202_v33 = vadd.f32 1.0, %v3401_v57  ;;  %v1224_v11 = vstv %s1223_s18  ;;  %s2285_s18 = sadd.s32 6, %s4007_s8 }
 0x36d   : > { %v3403_v1 = vpop.eup %3402  ;;  %vm1225_vm3 = vcmp.eq.s32.totalorder %v1224_v11, 1  ;;  %v4924_v11 = vld [vmem:[#allocation7 + $0x28] sm:$0xff]  ;;  %p2286_p4 = scmp.lt.s32.totalorder %s2285_s18, 12 }
 0x36e   : > { %v2782_v53 = vmul.f32 -1.442695, %v1188_v20  ;;  %3404 = vpow2.f32 %v2781_v22  ;;  %v1203_v38 = vadd.f32 1.0, %v3403_v1  ;;  %5737 = vst [vmem:[#allocation36_spill] sm:$0xff] %v4924_v11 }
 0x36f   : > { %s2287_s29 = scalar_select %p2286_p4, 1, 0 }
 0x370   : > { %3406 = vpow2.f32 %v2782_v53 }
 0x371   : > { %3408 = vtanh.f32 %v1028_v54 }
 0x372   : > { %3410 = vrcp.f32 %v1202_v33 }
 0x37b   : > { %v3405_v36 = vpop.eup %3404 }
 0x37c   : > { %v1204_v26 = vadd.f32 1.0, %v3405_v36  ;;  %v4709_v36 = vld [vmem:[#allocation7 + $0x1f0] sm:$0xff] }
 0x37d   : > { %v3407_v25 = vpop.eup %3406 }
 0x37e   : > { %3412 = vrcp.f32 %v1204_v26  ;;  %v1205_v3 = vadd.f32 1.0, %v3407_v25  ;;  %v3409_v14 = vpop.eup %3408  ;;  %v4716_v26 = vld [vmem:[#allocation7 + $0x1d0] sm:$0xff]  ;;  %v4719_v25 = vld [vmem:[#allocation7 + $0x1b8] sm:$0xff] }
 0x37f   : > { %3414 = vrcp.f32 %v1203_v38  ;;  %v1035_v7 = vsub.f32 %v4546_v19, %v3409_v14  ;;  %v1041_v39 = vmul.f32 %v3409_v14, %v1039_v23  ;;  %v3411_v54 = vpop.eup %3410  ;;  %v4713_v38 = vld [vmem:[#allocation7 + $0x1d8] sm:$0xff]  ;;  %v4728_v14 = vld [vmem:[#allocation7 + $0x190] sm:$0xff] }
 0x380   : > { %3416 = vrcp.f32 %v1205_v3  ;;  %v4725_v3 = vld [vmem:[#allocation7 + $0x198] sm:$0xff] }
 0x381   : > { %v1042_v1 = vadd.f32 %v1041_v39, %v1035_v7  ;;  %v4731_v23 = vld [vmem:[#allocation7 + $0x178] sm:$0xff]  ;;  %v4734_v7 = vld [vmem:[#allocation7 + $0x170] sm:$0xff] }
 0x383   : > { %v1214_v20 = vmul.f32 %v3411_v54, %v1042_v1  ;;  %v4921_v1 = vld [vmem:[#allocation7 + $0x40] sm:$0xff] }
 0x384   : > { %5736 = vst [vmem:[#allocation35_spill] sm:$0xff] %v4921_v1 }
 0x38b   : > { %v3413_v8 = vpop.eup %3412 }
 0x38c   : > { %v3415_v10 = vpop.eup %3414  ;;  %2783 = vst [vmem:[%s4016_s28 + $0x10] sm:$0xff] %v3413_v8 }
 0x38d   : > { %v3417_v22 = vpop.eup %3416 }
 0x38e   : > { %v1215_v53 = vmul.f32 %v3417_v22, %v3415_v10  ;;  %v4927_v22 = vld [vmem:[#allocation7 + $0x20] sm:$0xff] }
 0x38f   : > { %5738 = vst [vmem:[#allocation37_spill] sm:$0xff] %v4927_v22 }
 0x390   : > { %v1216_v57 = vadd.f32 %v1215_v53, %v1214_v20  ;;  %v4930_v20 = vld [vmem:[#allocation7 + $0x8] sm:$0xff]  ;;  %v4933_v53 = vld [vmem:[#allocation7] sm:$0xff] }
 0x391   : > { %5739 = vst [vmem:[#allocation39_spill] sm:$0xff] %v4930_v20  ;;  %5740 = vst [vmem:[#allocation40_spill] sm:$0xff] %v4933_v53 }
 0x392   : > { %3418 = vtanh.f32 %v1216_v57  ;;  %v4706_v33 = vsel %vm1225_vm3, %v1216_v57, %v4546_v19  ;;  %v4722_v19 = vld [vmem:[#allocation7 + $0x1b0] sm:$0xff] }
 0x393   : > { %3121 = vmatmul.mubr.f32.vlgmr.msra.gmra.mxu1 %v4706_v33 }
 0x394   : > { %1386 = vmatpush1.msra.mxu1 %v4709_v36  ;;  %1449 = vmatprep.mubr.f32.mxu1 %v5650_v34 }
 0x395   : > { %1387 = vmatprep.subr.mxu1 %v4713_v38 }
 0x396   : > { %1388 = vmatpush1.msra.mxu1 %v4716_v26 }
 0x397   : > { %1389 = vmatprep.subr.mxu1 %v4719_v25 }
 0x398   : > { %1390 = vmatpush1.msra.mxu1 %v4722_v19 }
 0x399   : > { %1391 = vmatprep.subr.mxu1 %v4725_v3 }
 0x39a   : > { %1392 = vmatpush1.msra.mxu1 %v4728_v14 }
 0x39b   : > { %1393 = vmatprep.subr.mxu1 %v4731_v23 }
 0x39c   : > { %1394 = vmatpush1.msra.mxu1 %v4734_v7 }
 0x39d   : > { %1395 = vmatprep.subr.mxu1 %v4271_v55  ;;  %v4789_v55 = vld [vmem:[%s5440_s3 + $0x58] sm:$0xff] }
 0x39e   : > { %1396 = vmatpush1.msra.mxu1 %v5654_v32  ;;  %v4887_v32 = vld [vmem:[%s5440_s3] sm:$0xff] }
 0x39f   : > { %v3419_v39 = vpop.eup %3418  ;;  %1397 = vmatprep.subr.mxu1 %v4280_v60  ;;  %v4753_v60 = vld [vmem:[%s5440_s3 + $0x78] sm:$0xff]  ;;  %5727 = vst [vmem:[#allocation33_spill] sm:$0xff] %v4887_v32 }
 0x3a0   : > { %1398 = vmatpush1.msra.mxu1 %v5655_v29  ;;  %v1218_v54 = vmul.f32 %v3419_v39, %v3413_v8  ;;  %v4894_v29 = vld [vmem:[#allocation7 + $0x1f8] sm:$0xff]  ;;  %v4918_v8 = vld [vmem:[#allocation7 + $0x48] sm:$0xff] }
 0x3a1   : > { %1399 = vmatprep.subr.mxu1 %v4287_v6  ;;  %v4762_v6 = vld [vmem:[%s5440_s3 + $0x70] sm:$0xff]  ;;  %5728 = vst [vmem:[#allocation25_spill] sm:$0xff] %v4894_v29  ;;  %5735 = vst [vmem:[#allocation34_spill] sm:$0xff] %v4918_v8 }
 0x3a2   : > { %1400 = vmatpush1.msra.mxu1 %v4292_v62  ;;  %v4745_v10 = vsel %vm1225_vm3, %v1218_v54, %v4567_v56  ;;  %v4771_v62 = vld [vmem:[%s5440_s3 + $0x68] sm:$0xff]  ;;  %v4915_v56 = vld [vmem:[#allocation7 + $0x60] sm:$0xff] }
 0x3a3   : > { %1401 = vmatprep.subr.mxu1 %v5656_v43  ;;  %1379 = vmatmul.mubr.f32.vlgmr.msra.gmra.mxu0 %v4745_v10  ;;  %v5729_v43 = vld [vmem:[#allocation27_spill] sm:$0xff]  ;;  %5734 = vst [vmem:[#allocation49_spill] sm:$0xff] %v4915_v56 }
 0x3a4   : > { %1402 = vmatpush1.msra.mxu1 %v4300_v58  ;;  %3124 = vmatpush3.msra.mxu0 %v4753_v60  ;;  %v4869_v58 = vld [vmem:[%s5440_s3 + $0x10] sm:$0xff] }
 0x3a5   : > { %1403 = vmatprep.subr.mxu1 %v5658_v46  ;;  %3125 = vmatprep.subr.mxu0 %v5650_v34  ;;  %5725 = vst [vmem:[#allocation31_spill] sm:$0xff] %v4869_v58  ;;  %v4903_v46 = vld [vmem:[#allocation7 + $0xa0] sm:$0xff] }
 0x3a6   : > { %1404 = vmatpush1.msra.mxu1 %v4307_v12  ;;  %3126 = vmatpush3.msra.mxu0 %v4762_v6  ;;  %v4780_v12 = vld [vmem:[%s5440_s3 + $0x60] sm:$0xff]  ;;  %5730 = vst [vmem:[#allocation38_spill] sm:$0xff] %v4903_v46 }
 0x3a7   : > { %1405 = vmatprep.subr.mxu1 %v5660_v47  ;;  %3127 = vmatprep.subr.mxu0 %v5650_v34  ;;  %v4906_v47 = vld [vmem:[#allocation7 + $0x88] sm:$0xff] }
 0x3a8   : > { %1406 = vmatpush1.msra.mxu1 %v4315_v63  ;;  %3128 = vmatpush3.msra.mxu0 %v4771_v62  ;;  %v4878_v63 = vld [vmem:[%s5440_s3 + $0x8] sm:$0xff]  ;;  %5731 = vst [vmem:[#allocation41_spill] sm:$0xff] %v4906_v47 }
 0x3a9   : > { %1407 = vmatprep.subr.mxu1 %v5662_v49  ;;  %3129 = vmatprep.subr.mxu0 %v5650_v34  ;;  %5726 = vst [vmem:[#allocation32_spill] sm:$0xff] %v4878_v63  ;;  %v4909_v49 = vld [vmem:[#allocation7 + $0x80] sm:$0xff] }
 0x3aa   : > { %1408 = vmatpush1.msra.mxu1 %v4323_v9  ;;  %3130 = vmatpush3.msra.mxu0 %v4780_v12  ;;  %v4798_v9 = vld [vmem:[%s5440_s3 + $0x50] sm:$0xff]  ;;  %5732 = vst [vmem:[#allocation44_spill] sm:$0xff] %v4909_v49 }
 0x3ab   : > { %1409 = vmatprep.subr.mxu1 %v5664_v45  ;;  %3131 = vmatprep.subr.mxu0 %v5650_v34  ;;  %v4912_v45 = vld [vmem:[#allocation7 + $0x68] sm:$0xff] }
 0x3ac   : > { %1410 = vmatpush1.msra.mxu1 %v4331_v2  ;;  %3132 = vmatpush3.msra.mxu0 %v4789_v55  ;;  %v4807_v2 = vld [vmem:[%s5440_s3 + $0x48] sm:$0xff]  ;;  %5733 = vst [vmem:[#allocation47_spill] sm:$0xff] %v4912_v45 }
 0x3ad   : > { %1411 = vmatprep.subr.mxu1 %v4335_v21  ;;  %3133 = vmatprep.subr.mxu0 %v5650_v34  ;;  %v4816_v21 = vld [vmem:[%s5440_s3 + $0x40] sm:$0xff] }
 0x3ae   : > { %1412 = vmatpush1.msra.mxu1 %v4339_v61  ;;  %3134 = vmatpush3.msra.mxu0 %v4798_v9  ;;  %v4860_v61 = vld [vmem:[%s5440_s3 + $0x18] sm:$0xff] }
 0x3af   : > { %1413 = vmatprep.subr.mxu1 %v4343_v24  ;;  %3135 = vmatprep.subr.mxu0 %v5650_v34  ;;  %v4842_v24 = vld [vmem:[%s5440_s3 + $0x28] sm:$0xff]  ;;  %5724 = vst [vmem:[#allocation30_spill] sm:$0xff] %v4860_v61 }
 0x3b0   : > { %1414 = vmatpush1.msra.mxu1 %v4347_v15  ;;  %3136 = vmatpush3.msra.mxu0 %v4807_v2  ;;  %v4824_v15 = vld [vmem:[%s5440_s3 + $0x38] sm:$0xff]  ;;  %5722 = vst [vmem:[#allocation29_spill] sm:$0xff] %v4842_v24 }
 0x3b1   : > { %1415 = vmatprep.subr.mxu1 %v4351_v27  ;;  %3137 = vmatprep.subr.mxu0 %v5650_v34  ;;  %v4851_v27 = vld [vmem:[%s5440_s3 + $0x20] sm:$0xff] }
 0x3b2   : > { %1416 = vmatpush1.msra.mxu1 %v4355_v18  ;;  %3138 = vmatpush3.msra.mxu0 %v4816_v21  ;;  %v4833_v18 = vld [vmem:[%s5440_s3 + $0x30] sm:$0xff]  ;;  %5723 = vst [vmem:[#allocation28_spill] sm:$0xff] %v4851_v27 }
 0x3b3   : > { %1450 = vmatmul.mubr.f32.vlgmr.msra.gmra.mxu1 %v4745_v10  ;;  %3139 = vmatprep.subr.mxu0 %v5650_v34 }
 0x3b4   : > { %3140 = vmatpush3.msra.mxu0 %v4824_v15  ;;  %1580 = vmatprep.subr.mxu1 %v4604_v59 }
 0x3b5   : > { %3141 = vmatprep.subr.mxu0 %v5650_v34  ;;  %1581 = vmatpush1.msra.mxu1 %v4608_v0 }
 0x3b6   : > { %3142 = vmatpush3.msra.mxu0 %v4833_v18  ;;  %1582 = vmatprep.subr.mxu1 %v4612_v35 }
 0x3b7   : > { %3143 = vmatprep.subr.mxu0 %v5650_v34  ;;  %1583 = vmatpush1.msra.mxu1 %v4616_v40 }
 0x3b8   : > { %3144 = vmatpush3.msra.mxu0 %v4842_v24  ;;  %1584 = vmatprep.subr.mxu1 %v4620_v41 }
 0x3b9   : > { %3145 = vmatprep.subr.mxu0 %v5650_v34  ;;  %1585 = vmatpush1.msra.mxu1 %v4624_v50 }
 0x3ba   : > { %3146 = vmatpush3.msra.mxu0 %v4851_v27  ;;  %1586 = vmatprep.subr.mxu1 %v4628_v30 }
 0x3bb   : > { %3147 = vmatprep.subr.mxu0 %v5650_v34  ;;  %1587 = vmatpush1.msra.mxu1 %v4632_v31 }
 0x3bc   : > { %3148 = vmatpush3.msra.mxu0 %v4860_v61  ;;  %1588 = vmatprep.subr.mxu1 %v4636_v4 }
 0x3bd   : > { %3149 = vmatprep.subr.mxu0 %v5650_v34  ;;  %1589 = vmatpush1.msra.mxu1 %v4640_v44 }
 0x3be   : > { %3150 = vmatpush3.msra.mxu0 %v4869_v58  ;;  %1590 = vmatprep.subr.mxu1 %v4644_v51 }
 0x3bf   : > { %3151 = vmatprep.subr.mxu0 %v5650_v34  ;;  %1591 = vmatpush1.msra.mxu1 %v4648_v52 }
 0x3c0   : > { %3152 = vmatpush3.msra.mxu0 %v4878_v63  ;;  %1592 = vmatprep.subr.mxu1 %v4652_v37 }
 0x3c1   : > { %3153 = vmatprep.subr.mxu0 %v5650_v34  ;;  %1593 = vmatpush1.msra.mxu1 %v4656_v28 }
 0x3c2   : > { %3154 = vmatpush3.msra.mxu0 %v4887_v32  ;;  %1594 = vmatprep.subr.mxu1 %v4660_v17 }
 0x3c3   : > { %3155 = vmatprep.mubr.msk.f32.mxu0 %vm3828_vm0, %v5650_v34  ;;  %1595 = vmatpush1.msra.mxu1 %v4665_v16 }
 0x3c4   : > { %1651 = vmatprep.subr.mxu0 %v4894_v29  ;;  %1596 = vmatprep.subr.mxu1 %v4669_v5 }
 0x3c5   : > { %1597 = vmatpush1.msra.mxu1 %v4672_v13  ;;  %1644 = vmatprep.mubr.f32.mxu1 %v5650_v34 }
 0x3c6   : > { %1598 = vmatprep.subr.mxu1 %v4676_v42 }
 0x3c7   : > { %1599 = vmatpush1.msra.mxu1 %v4679_v48 }
 0x3c8   : > { %1600 = vmatprep.subr.mxu1 %v5729_v43 }
 0x3c9   : > { %1601 = vmatpush1.msra.mxu1 %v4903_v46 }
 0x3ca   : > { %1602 = vmatprep.subr.mxu1 %v4906_v47 }
 0x3cb   : > { %1603 = vmatpush1.msra.mxu1 %v4909_v49  ;;  %v2787_v49 = vld [vmem:[%s3995_s17 + $0x70] sm:$0xff] }
 0x3cc   : > { %1604 = vmatprep.subr.mxu1 %v4912_v45 }
 0x3cd   : > { %1605 = vmatpush1.msra.mxu1 %v4915_v56 }
 0x3ce   : > { %1606 = vmatprep.subr.mxu1 %v4918_v8 }
 0x3cf   : > { %1607 = vmatpush1.msra.mxu1 %v4921_v1  ;;  %v2786_v1 = vld [vmem:[%s3995_s17 + $0x68] sm:$0xff] }
 0x3d0   : > { %1608 = vmatprep.subr.mxu1 %v4924_v11  ;;  %v2785_v11 = vld [vmem:[%s3995_s17 + $0x60] sm:$0xff] }
 0x3d1   : > { %1609 = vmatpush1.msra.mxu1 %v4927_v22 }
 0x3d2   : > { %1610 = vmatprep.subr.mxu1 %v4930_v20  ;;  %v2788_v20 = vld [vmem:[%s3995_s17 + $0x78] sm:$0xff] }
 0x3d3   : > { %1611 = vmatpush1.msra.mxu1 %v4933_v53 }
 0x3d4   : > { %3158 = vmatprep.subr.mxu1 %v5650_v34 }
 0x453   : > { %v1294_v57 = vpop.f32.mrf.mxu1 }
 0x455   : > { %v3122_v39 = vpop.f32.mrf.mxu1 }
 0x463   : > { %v1380_v54 = vpop.f32.mrf.mxu0 }
 0x464   : > { %v1381_v56 = vadd.f32 %v2785_v11, %v1380_v54 }
 0x465   : > { %v1382_v8 = vpop.f32.mrf.mxu0 }
 0x466   : > { %v1383_v45 = vadd.f32 %v2786_v1, %v1382_v8  ;;  %v2789_v22 = vmul.f32 -1.442695, %v1381_v56 }
 0x468   : > { %v2790_v47 = vmul.f32 -1.442695, %v1383_v45  ;;  %3420 = vpow2.f32 %v2789_v22 }
 0x46a   : > { %3422 = vpow2.f32 %v2790_v47 }
 0x473   : > { %v1451_v46 = vpop.f32.mrf.mxu1 }
 0x474   : > { %v1452_v43 = vadd.f32 %v2787_v49, %v1451_v46 }
 0x475   : > { %v1453_v48 = vpop.f32.mrf.mxu1  ;;  %v3421_v39 = vpop.eup %3420 }
 0x476   : > { %v2791_v53 = vmul.f32 -1.442695, %v1452_v43  ;;  %v1454_v42 = vadd.f32 %v2788_v20, %v1453_v48  ;;  %v1468_v11 = vadd.f32 1.0, %v3421_v39  ;;  %v1305_v48 = vpop.permute.xlu1 %1304  ;;  %v1490_v20 = vstv %s1489_s2 }
 0x477   : > { %v3423_v5 = vpop.eup %3422  ;;  %vm1491_vm4 = vcmp.eq.s32.totalorder %v1490_v20, 1  ;;  %v5005_v20 = vld [vmem:[#allocation7 + $0x98] sm:$0xff] }
 0x478   : > { %v2792_v13 = vmul.f32 -1.442695, %v1454_v42  ;;  %3424 = vpow2.f32 %v2791_v53  ;;  %v1469_v56 = vadd.f32 1.0, %v3423_v5 }
 0x47a   : > { %3426 = vpow2.f32 %v2792_v13 }
 0x47b   : > { %3428 = vtanh.f32 %v1294_v57 }
 0x47c   : > { %3430 = vrcp.f32 %v1468_v11 }
 0x485   : > { %v3425_v8 = vpop.eup %3424 }
 0x486   : > { %v1470_v1 = vadd.f32 1.0, %v3425_v8  ;;  %v4962_v8 = vld [vmem:[#allocation7 + $0x150] sm:$0xff] }
 0x487   : > { %v3427_v45 = vpop.eup %3426 }
 0x488   : > { %3432 = vrcp.f32 %v1470_v1  ;;  %v1471_v46 = vadd.f32 1.0, %v3427_v45  ;;  %v3429_v42 = vpop.eup %3428  ;;  %v4965_v1 = vld [vmem:[#allocation7 + $0x138] sm:$0xff]  ;;  %v4968_v45 = vld [vmem:[#allocation7 + $0x130] sm:$0xff] }
 0x489   : > { %3434 = vrcp.f32 %v1469_v56  ;;  %v1301_v13 = vsub.f32 %v4706_v33, %v3429_v42  ;;  %v1307_v43 = vmul.f32 %v3429_v42, %v1305_v48  ;;  %v3431_v47 = vpop.eup %3430  ;;  %v4971_v42 = vld [vmem:[#allocation7 + $0x118] sm:$0xff]  ;;  %v4974_v48 = vld [vmem:[#allocation7 + $0x110] sm:$0xff] }
 0x48a   : > { %3436 = vrcp.f32 %v1471_v46 }
 0x48b   : > { %v1308_v5 = vadd.f32 %v1307_v43, %v1301_v13  ;;  %v4981_v43 = vld [vmem:[#allocation7 + $0xf8] sm:$0xff] }
 0x48d   : > { %v1480_v57 = vmul.f32 %v3431_v47, %v1308_v5  ;;  %v4985_v47 = vld [vmem:[#allocation7 + $0xf0] sm:$0xff] }
 0x48e   : > { %v5001_v5 = vld [vmem:[#allocation7 + $0xb0] sm:$0xff] }
 0x495   : > { %v3433_v49 = vpop.eup %3432 }
 0x496   : > { %v3435_v22 = vpop.eup %3434  ;;  %2793 = vst [vmem:[%s4016_s28 + $0x18] sm:$0xff] %v3433_v49 }
 0x497   : > { %v3437_v53 = vpop.eup %3436 }
 0x498   : > { %v1481_v54 = vmul.f32 %v3437_v53, %v3435_v22  ;;  %v4997_v22 = vld [vmem:[#allocation7 + $0xb8] sm:$0xff]  ;;  %v5009_v53 = vld [vmem:[#allocation7 + $0x90] sm:$0xff] }
 0x49a   : > { %v1482_v39 = vadd.f32 %v1481_v54, %v1480_v57  ;;  %v5013_v57 = vld [vmem:[#allocation7 + $0x78] sm:$0xff]  ;;  %v5017_v54 = vld [vmem:[#allocation7 + $0x70] sm:$0xff] }
 0x49b   : > { %5741 = vst [vmem:[#allocation42_spill] sm:$0xff] %v5017_v54 }
 0x49c   : > { %3438 = vtanh.f32 %v1482_v39  ;;  %v4946_v11 = vsel %vm1491_vm4, %v1482_v39, %v4706_v33  ;;  %v4959_v33 = vld [vmem:[#allocation7 + $0x158] sm:$0xff] }
 0x49d   : > { %3156 = vmatmul.mubr.f32.vlgmr.msra.gmra.mxu0 %v4946_v11  ;;  %v5021_v39 = vld [vmem:[#allocation7 + $0x58] sm:$0xff] }
 0x49e   : > { %1652 = vmatpush1.msra.mxu0 %v4709_v36  ;;  %1715 = vmatprep.mubr.f32.mxu0 %v5650_v34  ;;  %5742 = vst [vmem:[#allocation43_spill] sm:$0xff] %v5021_v39 }
 0x49f   : > { %1653 = vmatprep.subr.mxu0 %v4713_v38 }
 0x4a0   : > { %1654 = vmatpush1.msra.mxu0 %v4716_v26 }
 0x4a1   : > { %1655 = vmatprep.subr.mxu0 %v4719_v25 }
 0x4a2   : > { %1656 = vmatpush1.msra.mxu0 %v4722_v19 }
 0x4a3   : > { %1657 = vmatprep.subr.mxu0 %v4725_v3 }
 0x4a4   : > { %1658 = vmatpush1.msra.mxu0 %v4728_v14 }
 0x4a5   : > { %1659 = vmatprep.subr.mxu0 %v4731_v23 }
 0x4a6   : > { %1660 = vmatpush1.msra.mxu0 %v4734_v7 }
 0x4a7   : > { %1661 = vmatprep.subr.mxu0 %v4959_v33 }
 0x4a8   : > { %1662 = vmatpush1.msra.mxu0 %v4962_v8 }
 0x4a9   : > { %v3439_v56 = vpop.eup %3438  ;;  %1663 = vmatprep.subr.mxu0 %v4965_v1 }
 0x4aa   : > { %1664 = vmatpush1.msra.mxu0 %v4968_v45  ;;  %v1484_v46 = vmul.f32 %v3439_v56, %v3433_v49  ;;  %v4989_v49 = vld [vmem:[#allocation7 + $0xd8] sm:$0xff]  ;;  %v5025_v56 = vld [vmem:[#allocation7 + $0x50] sm:$0xff] }
 0x4ab   : > { %1665 = vmatprep.subr.mxu0 %v4971_v42  ;;  %5743 = vst [vmem:[#allocation45_spill] sm:$0xff] %v5025_v56 }
 0x4ac   : > { %1666 = vmatpush1.msra.mxu0 %v4974_v48  ;;  %v4979_v13 = vsel %vm1491_vm4, %v1484_v46, %v4745_v10  ;;  %v4993_v10 = vld [vmem:[#allocation7 + $0xd0] sm:$0xff]  ;;  %v5029_v46 = vld [vmem:[#allocation7 + $0x38] sm:$0xff] }
 0x4ad   : > { %1667 = vmatprep.subr.mxu0 %v4981_v43  ;;  %1645 = vmatmul.mubr.f32.vlgmr.msra.gmra.mxu1 %v4979_v13 }
 0x4ae   : > { %1668 = vmatpush1.msra.mxu0 %v4985_v47  ;;  %3159 = vmatpush3.msra.mxu1 %v4753_v60 }
 0x4af   : > { %1669 = vmatprep.subr.mxu0 %v4989_v49  ;;  %3160 = vmatprep.subr.mxu1 %v5650_v34 }
 0x4b0   : > { %1670 = vmatpush1.msra.mxu0 %v4993_v10  ;;  %3161 = vmatpush3.msra.mxu1 %v4762_v6 }
 0x4b1   : > { %1671 = vmatprep.subr.mxu0 %v4997_v22  ;;  %3162 = vmatprep.subr.mxu1 %v5650_v34 }
 0x4b2   : > { %1672 = vmatpush1.msra.mxu0 %v5001_v5  ;;  %3163 = vmatpush3.msra.mxu1 %v4771_v62 }
 0x4b3   : > { %1673 = vmatprep.subr.mxu0 %v5005_v20  ;;  %3164 = vmatprep.subr.mxu1 %v5650_v34 }
 0x4b4   : > { %1674 = vmatpush1.msra.mxu0 %v5009_v53  ;;  %3165 = vmatpush3.msra.mxu1 %v4780_v12 }
 0x4b5   : > { %1675 = vmatprep.subr.mxu0 %v5013_v57  ;;  %3166 = vmatprep.subr.mxu1 %v5650_v34 }
 0x4b6   : > { %1676 = vmatpush1.msra.mxu0 %v5017_v54  ;;  %3167 = vmatpush3.msra.mxu1 %v4789_v55  ;;  %v5033_v54 = vld [vmem:[#allocation7 + $0x30] sm:$0xff] }
 0x4b7   : > { %1677 = vmatprep.subr.mxu0 %v5021_v39  ;;  %3168 = vmatprep.subr.mxu1 %v5650_v34  ;;  %v5037_v39 = vld [vmem:[#allocation7 + $0x18] sm:$0xff] }
 0x4b8   : > { %1678 = vmatpush1.msra.mxu0 %v5025_v56  ;;  %3169 = vmatpush3.msra.mxu1 %v4798_v9  ;;  %v5041_v56 = vld [vmem:[#allocation7 + $0x10] sm:$0xff] }
 0x4b9   : > { %1679 = vmatprep.subr.mxu0 %v5029_v46  ;;  %3170 = vmatprep.subr.mxu1 %v5650_v34 }
 0x4ba   : > { %1680 = vmatpush1.msra.mxu0 %v5033_v54  ;;  %3171 = vmatpush3.msra.mxu1 %v4807_v2 }
 0x4bb   : > { %1681 = vmatprep.subr.mxu0 %v5037_v39  ;;  %3172 = vmatprep.subr.mxu1 %v5650_v34 }
 0x4bc   : > { %1682 = vmatpush1.msra.mxu0 %v5041_v56  ;;  %3173 = vmatpush3.msra.mxu1 %v4816_v21 }
 0x4bd   : > { %1716 = vmatmul.mubr.f32.vlgmr.msra.gmra.mxu0 %v4979_v13  ;;  %3174 = vmatprep.subr.mxu1 %v5650_v34 }
 0x4be   : > { %3175 = vmatpush3.msra.mxu1 %v4824_v15  ;;  %1846 = vmatprep.subr.mxu0 %v4604_v59 }
 0x4bf   : > { %3176 = vmatprep.subr.mxu1 %v5650_v34  ;;  %1847 = vmatpush1.msra.mxu0 %v4608_v0 }
 0x4c0   : > { %3177 = vmatpush3.msra.mxu1 %v4833_v18  ;;  %1848 = vmatprep.subr.mxu0 %v4612_v35 }
 0x4c1   : > { %3178 = vmatprep.subr.mxu1 %v5650_v34  ;;  %1849 = vmatpush1.msra.mxu0 %v4616_v40 }
 0x4c2   : > { %3179 = vmatpush3.msra.mxu1 %v4842_v24  ;;  %1850 = vmatprep.subr.mxu0 %v4620_v41 }
 0x4c3   : > { %3180 = vmatprep.subr.mxu1 %v5650_v34  ;;  %1851 = vmatpush1.msra.mxu0 %v4624_v50 }
 0x4c4   : > { %3181 = vmatpush3.msra.mxu1 %v4851_v27  ;;  %1852 = vmatprep.subr.mxu0 %v4628_v30 }
 0x4c5   : > { %3182 = vmatprep.subr.mxu1 %v5650_v34  ;;  %1853 = vmatpush1.msra.mxu0 %v4632_v31  ;;  %v2797_v31 = vld [vmem:[%s3995_s17 + $0x90] sm:$0xff] }
 0x4c6   : > { %3183 = vmatpush3.msra.mxu1 %v4860_v61  ;;  %1854 = vmatprep.subr.mxu0 %v4636_v4 }
 0x4c7   : > { %3184 = vmatprep.subr.mxu1 %v5650_v34  ;;  %1855 = vmatpush1.msra.mxu0 %v4640_v44  ;;  %v2796_v44 = vld [vmem:[%s3995_s17 + $0x88] sm:$0xff] }
 0x4c8   : > { %3185 = vmatpush3.msra.mxu1 %v4869_v58  ;;  %1856 = vmatprep.subr.mxu0 %v4644_v51  ;;  %v5750_v51 = vld [vmem:[#allocation41_spill] sm:$0xff]  ;;  %v5755_v58 = vld [vmem:[#allocation35_spill] sm:$0xff] }
 0x4c9   : > { %3186 = vmatprep.subr.mxu1 %v5650_v34  ;;  %1857 = vmatpush1.msra.mxu0 %v4648_v52  ;;  %v5744_v52 = vld [vmem:[#allocation23_spill] sm:$0xff] }
 0x4ca   : > { %3187 = vmatpush3.msra.mxu1 %v4878_v63  ;;  %1858 = vmatprep.subr.mxu0 %v4652_v37  ;;  %v5745_v63 = vld [vmem:[#allocation59_spill] sm:$0xff]  ;;  %v5746_v37 = vld [vmem:[#allocation24_spill] sm:$0xff] }
 0x4cb   : > { %3188 = vmatprep.subr.mxu1 %v5650_v34  ;;  %1859 = vmatpush1.msra.mxu0 %v4656_v28  ;;  %v5747_v28 = vld [vmem:[#allocation26_spill] sm:$0xff] }
 0x4cc   : > { %3189 = vmatpush3.msra.mxu1 %v4887_v32  ;;  %1860 = vmatprep.subr.mxu0 %v4660_v17  ;;  %v5748_v32 = vld [vmem:[#allocation27_spill] sm:$0xff]  ;;  %v5749_v17 = vld [vmem:[#allocation38_spill] sm:$0xff] }
 0x4cd   : > { %3190 = vmatprep.mubr.msk.f32.mxu1 %vm3828_vm0, %v5650_v34  ;;  %1861 = vmatpush1.msra.mxu0 %v4665_v16  ;;  %v5751_v16 = vld [vmem:[#allocation44_spill] sm:$0xff] }
 0x4ce   : > { %1917 = vmatprep.subr.mxu1 %v4894_v29  ;;  %1862 = vmatprep.subr.mxu0 %v5744_v52  ;;  %v5752_v29 = vld [vmem:[#allocation47_spill] sm:$0xff]  ;;  %v5753_v52 = vld [vmem:[#allocation49_spill] sm:$0xff] }
 0x4cf   : > { %1863 = vmatpush1.msra.mxu0 %v5745_v63  ;;  %1910 = vmatprep.mubr.f32.mxu0 %v5650_v34  ;;  %v5754_v63 = vld [vmem:[#allocation34_spill] sm:$0xff] }
 0x4d0   : > { %1864 = vmatprep.subr.mxu0 %v5746_v37  ;;  %v5758_v37 = vld [vmem:[#allocation39_spill] sm:$0xff] }
 0x4d1   : > { %1865 = vmatpush1.msra.mxu0 %v5747_v28  ;;  %v5756_v28 = vld [vmem:[#allocation36_spill] sm:$0xff] }
 0x4d2   : > { %1866 = vmatprep.subr.mxu0 %v5748_v32  ;;  %v5757_v32 = vld [vmem:[#allocation37_spill] sm:$0xff] }
 0x4d3   : > { %1867 = vmatpush1.msra.mxu0 %v5749_v17  ;;  %v5759_v17 = vld [vmem:[#allocation40_spill] sm:$0xff] }
 0x4d4   : > { %1868 = vmatprep.subr.mxu0 %v5750_v51 }
 0x4d5   : > { %1869 = vmatpush1.msra.mxu0 %v5751_v16 }
 0x4d6   : > { %1870 = vmatprep.subr.mxu0 %v5752_v29 }
 0x4d7   : > { %1871 = vmatpush1.msra.mxu0 %v5753_v52  ;;  %v2795_v52 = vld [vmem:[%s3995_s17 + $0x80] sm:$0xff] }
 0x4d8   : > { %1872 = vmatprep.subr.mxu0 %v5754_v63 }
 0x4d9   : > { %1873 = vmatpush1.msra.mxu0 %v5755_v58 }
 0x4da   : > { %1874 = vmatprep.subr.mxu0 %v5756_v28 }
 0x4db   : > { %1875 = vmatpush1.msra.mxu0 %v5757_v32  ;;  %v2798_v32 = vld [vmem:[%s3995_s17 + $0x98] sm:$0xff] }
 0x4dc   : > { %1876 = vmatprep.subr.mxu0 %v5758_v37 }
 0x4dd   : > { %1877 = vmatpush1.msra.mxu0 %v5759_v17 }
 0x4de   : > { %3193 = vmatprep.subr.mxu0 %v5650_v34 }
 0x55d   : > { %v1560_v16 = vpop.f32.mrf.mxu0 }
 0x55f   : > { %v3157_v29 = vpop.f32.mrf.mxu0 }
 0x56d   : > { %v1646_v51 = vpop.f32.mrf.mxu1 }
 0x56e   : > { %v1647_v4 = vadd.f32 %v2795_v52, %v1646_v51 }
 0x56f   : > { %v1648_v63 = vpop.f32.mrf.mxu1 }
 0x570   : > { %v1649_v61 = vadd.f32 %v2796_v44, %v1648_v63  ;;  %v2799_v58 = vmul.f32 -1.442695, %v1647_v4 }
 0x572   : > { %v2800_v28 = vmul.f32 -1.442695, %v1649_v61  ;;  %3440 = vpow2.f32 %v2799_v58 }
 0x574   : > { %3442 = vpow2.f32 %v2800_v28 }
 0x57d   : > { %v1717_v30 = vpop.f32.mrf.mxu0 }
 0x57e   : > { %v1718_v27 = vadd.f32 %v2797_v31, %v1717_v30  ;;  %v1571_v31 = vpop.permute.xlu0 %1570 }
 0x57f   : > { %v1719_v37 = vpop.f32.mrf.mxu0  ;;  %v3441_v29 = vpop.eup %3440 }
 0x580   : > { %v2801_v17 = vmul.f32 -1.442695, %v1718_v27  ;;  %v1720_v50 = vadd.f32 %v2798_v32, %v1719_v37  ;;  %v1734_v51 = vadd.f32 1.0, %v3441_v29  ;;  %v1756_v27 = vstv %s1755_s7 }
 0x581   : > { %v3443_v24 = vpop.eup %3442  ;;  %vm1757_vm5 = vcmp.eq.s32.totalorder %v1756_v27, 1  ;;  %v5776_v27 = vld [vmem:[#allocation21_spill] sm:$0xff] }
 0x582   : > { %v2802_v41 = vmul.f32 -1.442695, %v1720_v50  ;;  %3444 = vpow2.f32 %v2801_v17  ;;  %v1735_v4 = vadd.f32 1.0, %v3443_v24 }
 0x584   : > { %3446 = vpow2.f32 %v2802_v41 }
 0x585   : > { %3448 = vtanh.f32 %v1560_v16 }
 0x586   : > { %3450 = vrcp.f32 %v1734_v51 }
 0x58f   : > { %v3445_v44 = vpop.eup %3444 }
 0x590   : > { %v1736_v52 = vadd.f32 1.0, %v3445_v44 }
 0x591   : > { %v3447_v61 = vpop.eup %3446 }
 0x592   : > { %3452 = vrcp.f32 %v1736_v52  ;;  %v1737_v30 = vadd.f32 1.0, %v3447_v61  ;;  %v3449_v50 = vpop.eup %3448  ;;  %v5761_v52 = vld [vmem:[#allocation43_spill] sm:$0xff]  ;;  %v5762_v61 = vld [vmem:[#allocation45_spill] sm:$0xff] }
 0x593   : > { %3454 = vrcp.f32 %v1735_v4  ;;  %v1567_v41 = vsub.f32 %v4946_v11, %v3449_v50  ;;  %v1573_v37 = vmul.f32 %v3449_v50, %v1571_v31  ;;  %v3451_v28 = vpop.eup %3450  ;;  %v5764_v50 = vld [vmem:[#allocation50_spill] sm:$0xff]  ;;  %v5765_v31 = vld [vmem:[#allocation51_spill] sm:$0xff] }
 0x594   : > { %3456 = vrcp.f32 %v1737_v30  ;;  %v5763_v30 = vld [vmem:[#allocation29_spill] sm:$0xff] }
 0x595   : > { %v1574_v24 = vadd.f32 %v1573_v37, %v1567_v41  ;;  %v5767_v41 = vld [vmem:[#allocation52_spill] sm:$0xff]  ;;  %v5770_v37 = vld [vmem:[#allocation54_spill] sm:$0xff] }
 0x597   : > { %v1746_v63 = vmul.f32 %v3451_v28, %v1574_v24  ;;  %v5772_v28 = vld [vmem:[#allocation31_spill] sm:$0xff]  ;;  %v5775_v24 = vld [vmem:[#allocation32_spill] sm:$0xff] }
 0x59f   : > { %v3453_v17 = vpop.eup %3452 }
 0x5a0   : > { %v3455_v16 = vpop.eup %3454  ;;  %2803 = vst [vmem:[%s4016_s28 + $0x20] sm:$0xff] %v3453_v17 }
 0x5a1   : > { %v3457_v58 = vpop.eup %3456 }
 0x5a2   : > { %v1747_v32 = vmul.f32 %v3457_v58, %v3455_v16  ;;  %v5774_v16 = vld [vmem:[#allocation56_spill] sm:$0xff]  ;;  %v5777_v58 = vld [vmem:[#allocation57_spill] sm:$0xff] }
 0x5a4   : > { %v1748_v29 = vadd.f32 %v1747_v32, %v1746_v63  ;;  %v5778_v63 = vld [vmem:[#allocation33_spill] sm:$0xff]  ;;  %v5779_v32 = vld [vmem:[#allocation22_spill] sm:$0xff] }
 0x5a6   : > { %3458 = vtanh.f32 %v1748_v29  ;;  %v5108_v51 = vsel %vm1757_vm5, %v1748_v29, %v4946_v11  ;;  %v5780_v29 = vld [vmem:[#allocation58_spill] sm:$0xff] }
 0x5a7   : > { %3191 = vmatmul.mubr.f32.vlgmr.msra.gmra.mxu1 %v5108_v51 }
 0x5a8   : > { %1918 = vmatpush1.msra.mxu1 %v4709_v36  ;;  %1981 = vmatprep.mubr.f32.mxu1 %v5650_v34 }
 0x5a9   : > { %1919 = vmatprep.subr.mxu1 %v4713_v38 }
 0x5aa   : > { %1920 = vmatpush1.msra.mxu1 %v4716_v26 }
 0x5ab   : > { %1921 = vmatprep.subr.mxu1 %v4719_v25 }
 0x5ac   : > { %1922 = vmatpush1.msra.mxu1 %v4722_v19 }
 0x5ad   : > { %1923 = vmatprep.subr.mxu1 %v4725_v3 }
 0x5ae   : > { %1924 = vmatpush1.msra.mxu1 %v4728_v14 }
 0x5af   : > { %1925 = vmatprep.subr.mxu1 %v4731_v23 }
 0x5b0   : > { %1926 = vmatpush1.msra.mxu1 %v4734_v7 }
 0x5b1   : > { %1927 = vmatprep.subr.mxu1 %v4959_v33 }
 0x5b2   : > { %1928 = vmatpush1.msra.mxu1 %v4962_v8 }
 0x5b3   : > { %v3459_v11 = vpop.eup %3458  ;;  %1929 = vmatprep.subr.mxu1 %v4965_v1 }
 0x5b4   : > { %1930 = vmatpush1.msra.mxu1 %v4968_v45  ;;  %v1750_v44 = vmul.f32 %v3459_v11, %v3453_v17  ;;  %v5773_v17 = vld [vmem:[#allocation20_spill] sm:$0xff]  ;;  %v5781_v11 = vld [vmem:[#allocation25_spill] sm:$0xff] }
 0x5b5   : > { %1931 = vmatprep.subr.mxu1 %v4971_v42 }
 0x5b6   : > { %1932 = vmatpush1.msra.mxu1 %v4974_v48  ;;  %v5129_v4 = vsel %vm1757_vm5, %v1750_v44, %v4979_v13  ;;  %v5760_v13 = vld [vmem:[#allocation42_spill] sm:$0xff]  ;;  %v5782_v44 = vld [vmem:[#allocation23_spill] sm:$0xff] }
 0x5b7   : > { %1933 = vmatprep.subr.mxu1 %v4981_v43  ;;  %1911 = vmatmul.mubr.f32.vlgmr.msra.gmra.mxu0 %v5129_v4 }
 0x5b8   : > { %1934 = vmatpush1.msra.mxu1 %v4985_v47  ;;  %3194 = vmatpush3.msra.mxu0 %v4753_v60 }
 0x5b9   : > { %1935 = vmatprep.subr.mxu1 %v4989_v49  ;;  %3195 = vmatprep.subr.mxu0 %v5650_v34 }
 0x5ba   : > { %1936 = vmatpush1.msra.mxu1 %v4993_v10  ;;  %3196 = vmatpush3.msra.mxu0 %v4762_v6 }
 0x5bb   : > { %1937 = vmatprep.subr.mxu1 %v4997_v22  ;;  %3197 = vmatprep.subr.mxu0 %v5650_v34 }
 0x5bc   : > { %1938 = vmatpush1.msra.mxu1 %v5001_v5  ;;  %3198 = vmatpush3.msra.mxu0 %v4771_v62 }
 0x5bd   : > { %1939 = vmatprep.subr.mxu1 %v5005_v20  ;;  %3199 = vmatprep.subr.mxu0 %v5650_v34 }
 0x5be   : > { %1940 = vmatpush1.msra.mxu1 %v5009_v53  ;;  %3200 = vmatpush3.msra.mxu0 %v4780_v12 }
 0x5bf   : > { %1941 = vmatprep.subr.mxu1 %v5013_v57  ;;  %3201 = vmatprep.subr.mxu0 %v5650_v34 }
 0x5c0   : > { %1942 = vmatpush1.msra.mxu1 %v5760_v13  ;;  %3202 = vmatpush3.msra.mxu0 %v4789_v55 }
 0x5c1   : > { %1943 = vmatprep.subr.mxu1 %v5761_v52  ;;  %3203 = vmatprep.subr.mxu0 %v5650_v34 }
 0x5c2   : > { %1944 = vmatpush1.msra.mxu1 %v5762_v61  ;;  %3204 = vmatpush3.msra.mxu0 %v4798_v9 }
 0x5c3   : > { %1945 = vmatprep.subr.mxu1 %v5029_v46  ;;  %3205 = vmatprep.subr.mxu0 %v5650_v34 }
 0x5c4   : > { %1946 = vmatpush1.msra.mxu1 %v5033_v54  ;;  %3206 = vmatpush3.msra.mxu0 %v4807_v2 }
 0x5c5   : > { %1947 = vmatprep.subr.mxu1 %v5037_v39  ;;  %3207 = vmatprep.subr.mxu0 %v5650_v34 }
 0x5c6   : > { %1948 = vmatpush1.msra.mxu1 %v5041_v56  ;;  %3208 = vmatpush3.msra.mxu0 %v4816_v21 }
 0x5c7   : > { %1982 = vmatmul.mubr.f32.vlgmr.msra.gmra.mxu1 %v5129_v4  ;;  %3209 = vmatprep.subr.mxu0 %v5650_v34 }
 0x5c8   : > { %3210 = vmatpush3.msra.mxu0 %v4824_v15  ;;  %2112 = vmatprep.subr.mxu1 %v4604_v59  ;;  %v5766_v59 = vld [vmem:[#allocation28_spill] sm:$0xff] }
 0x5c9   : > { %3211 = vmatprep.subr.mxu0 %v5650_v34  ;;  %2113 = vmatpush1.msra.mxu1 %v4608_v0  ;;  %v5768_v0 = vld [vmem:[#allocation53_spill] sm:$0xff] }
 0x5ca   : > { %3212 = vmatpush3.msra.mxu0 %v4833_v18  ;;  %2114 = vmatprep.subr.mxu1 %v4612_v35  ;;  %v5769_v35 = vld [vmem:[#allocation30_spill] sm:$0xff] }
 0x5cb   : > { %3213 = vmatprep.subr.mxu0 %v5650_v34  ;;  %2115 = vmatpush1.msra.mxu1 %v4616_v40  ;;  %v5771_v40 = vld [vmem:[#allocation55_spill] sm:$0xff] }
 0x5cc   : > { %3214 = vmatpush3.msra.mxu0 %v5763_v30  ;;  %2116 = vmatprep.subr.mxu1 %v5764_v50  ;;  %v5783_v50 = vld [vmem:[#allocation59_spill] sm:$0xff] }
 0x5cd   : > { %3215 = vmatprep.subr.mxu0 %v5650_v34  ;;  %2117 = vmatpush1.msra.mxu1 %v5765_v31  ;;  %v5784_v31 = vld [vmem:[#allocation24_spill] sm:$0xff] }
 0x5ce   : > { %3216 = vmatpush3.msra.mxu0 %v5766_v59  ;;  %2118 = vmatprep.subr.mxu1 %v5767_v41  ;;  %v5785_v41 = vld [vmem:[#allocation26_spill] sm:$0xff] }
 0x5cf   : > { %3217 = vmatprep.subr.mxu0 %v5650_v34  ;;  %2119 = vmatpush1.msra.mxu1 %v5768_v0  ;;  %v5786_v0 = vld [vmem:[#allocation27_spill] sm:$0xff] }
 0x5d0   : > { %3218 = vmatpush3.msra.mxu0 %v5769_v35  ;;  %2120 = vmatprep.subr.mxu1 %v5770_v37  ;;  %v5787_v37 = vld [vmem:[#allocation38_spill] sm:$0xff] }
 0x5d1   : > { %3219 = vmatprep.subr.mxu0 %v5650_v34  ;;  %2121 = vmatpush1.msra.mxu1 %v5771_v40  ;;  %v5788_v40 = vld [vmem:[#allocation41_spill] sm:$0xff] }
 0x5d2   : > { %3220 = vmatpush3.msra.mxu0 %v5772_v28  ;;  %2122 = vmatprep.subr.mxu1 %v5773_v17  ;;  %v5789_v17 = vld [vmem:[#allocation44_spill] sm:$0xff] }
 0x5d3   : > { %3221 = vmatprep.subr.mxu0 %v5650_v34  ;;  %2123 = vmatpush1.msra.mxu1 %v5774_v16  ;;  %v5790_v16 = vld [vmem:[#allocation47_spill] sm:$0xff] }
 0x5d4   : > { %3222 = vmatpush3.msra.mxu0 %v5775_v24  ;;  %2124 = vmatprep.subr.mxu1 %v5776_v27  ;;  %v5791_v27 = vld [vmem:[#allocation49_spill] sm:$0xff] }
 0x5d5   : > { %3223 = vmatprep.subr.mxu0 %v5650_v34  ;;  %2125 = vmatpush1.msra.mxu1 %v5777_v58  ;;  %v5792_v58 = vld [vmem:[#allocation34_spill] sm:$0xff] }
 0x5d6   : > { %3224 = vmatpush3.msra.mxu0 %v5778_v63  ;;  %2126 = vmatprep.subr.mxu1 %v5779_v32  ;;  %v5793_v32 = vld [vmem:[#allocation35_spill] sm:$0xff] }
 0x5d7   : > { %3225 = vmatprep.mubr.msk.f32.mxu0 %vm3828_vm0, %v5650_v34  ;;  %2127 = vmatpush1.msra.mxu1 %v5780_v29  ;;  %v5794_v29 = vld [vmem:[#allocation36_spill] sm:$0xff] }
 0x5d8   : > { %2183 = vmatprep.subr.mxu0 %v5781_v11  ;;  %2128 = vmatprep.subr.mxu1 %v5782_v44  ;;  %v5795_v44 = vld [vmem:[#allocation37_spill] sm:$0xff]  ;;  %v2807_v11 = vld [vmem:[%s3995_s17 + $0xb0] sm:$0xff] }
 0x5d9   : > { %2129 = vmatpush1.msra.mxu1 %v5783_v50  ;;  %2176 = vmatprep.mubr.f32.mxu1 %v5650_v34  ;;  %v5796_v50 = vld [vmem:[#allocation39_spill] sm:$0xff] }
 0x5da   : > { %2130 = vmatprep.subr.mxu1 %v5784_v31  ;;  %v5797_v31 = vld [vmem:[#allocation40_spill] sm:$0xff] }
 0x5db   : > { %2131 = vmatpush1.msra.mxu1 %v5785_v41 }
 0x5dc   : > { %2132 = vmatprep.subr.mxu1 %v5786_v0 }
 0x5dd   : > { %2133 = vmatpush1.msra.mxu1 %v5787_v37 }
 0x5de   : > { %2134 = vmatprep.subr.mxu1 %v5788_v40 }
 0x5df   : > { %2135 = vmatpush1.msra.mxu1 %v5789_v17  ;;  %v2806_v17 = vld [vmem:[%s3995_s17 + $0xa8] sm:$0xff] }
 0x5e0   : > { %2136 = vmatprep.subr.mxu1 %v5790_v16 }
 0x5e1   : > { %2137 = vmatpush1.msra.mxu1 %v5791_v27  ;;  %v2805_v27 = vld [vmem:[%s3995_s17 + $0xa0] sm:$0xff] }
 0x5e2   : > { %2138 = vmatprep.subr.mxu1 %v5792_v58 }
 0x5e3   : > { %2139 = vmatpush1.msra.mxu1 %v5793_v32 }
 0x5e4   : > { %2140 = vmatprep.subr.mxu1 %v5794_v29 }
 0x5e5   : > { %2141 = vmatpush1.msra.mxu1 %v5795_v44  ;;  %v2808_v44 = vld [vmem:[%s3995_s17 + $0xb8] sm:$0xff] }
 0x5e6   : > { %2142 = vmatprep.subr.mxu1 %v5796_v50 }
 0x5e7   : > { %2143 = vmatpush1.msra.mxu1 %v5797_v31 }
 0x5e8   : > { %3228 = vmatprep.subr.mxu1 %v5650_v34 }
 0x667   : > { %v1826_v41 = vpop.f32.mrf.mxu1 }
 0x669   : > { %v3192_v0 = vpop.f32.mrf.mxu1 }
 0x677   : > { %v1912_v16 = vpop.f32.mrf.mxu0 }
 0x678   : > { %v1913_v40 = vadd.f32 %v2805_v27, %v1912_v16 }
 0x679   : > { %v1914_v58 = vpop.f32.mrf.mxu0 }
 0x67a   : > { %v1915_v37 = vadd.f32 %v2806_v17, %v1914_v58  ;;  %v2809_v32 = vmul.f32 -1.442695, %v1913_v40 }
 0x67c   : > { %v2810_v29 = vmul.f32 -1.442695, %v1915_v37  ;;  %3460 = vpow2.f32 %v2809_v32 }
 0x67e   : > { %3462 = vpow2.f32 %v2810_v29 }
 0x687   : > { %v1983_v63 = vpop.f32.mrf.mxu1 }
 0x688   : > { %v1984_v24 = vadd.f32 %v2807_v11, %v1983_v63 }
 0x689   : > { %v1985_v50 = vpop.f32.mrf.mxu1  ;;  %v3461_v0 = vpop.eup %3460 }
 0x68a   : > { %v2811_v31 = vmul.f32 -1.442695, %v1984_v24  ;;  %v1986_v28 = vadd.f32 %v2808_v44, %v1985_v50  ;;  %v2000_v16 = vadd.f32 1.0, %v3461_v0  ;;  %v1837_v24 = vpop.permute.xlu1 %1836  ;;  %v2022_v44 = vstv %s2021_s15 }
 0x68b   : > { %v3463_v59 = vpop.eup %3462  ;;  %vm2023_vm6 = vcmp.eq.s32.totalorder %v2022_v44, 1  ;;  %v5809_v44 = vld [vmem:[#allocation34_spill] sm:$0xff] }
 0x68c   : > { %v2812_v35 = vmul.f32 -1.442695, %v1986_v28  ;;  %3464 = vpow2.f32 %v2811_v31  ;;  %v2001_v40 = vadd.f32 1.0, %v3463_v59 }
 0x68e   : > { %3466 = vpow2.f32 %v2812_v35 }
 0x68f   : > { %3468 = vtanh.f32 %v1826_v41 }
 0x690   : > { %3470 = vrcp.f32 %v2000_v16 }
 0x699   : > { %v3465_v17 = vpop.eup %3464 }
 0x69a   : > { %v2002_v27 = vadd.f32 1.0, %v3465_v17  ;;  %v3614_v17 = vld [vmem:[#allocation7 + $0x108] sm:$0xff] }
 0x69b   : > { %v3467_v37 = vpop.eup %3466 }
 0x69c   : > { %3472 = vrcp.f32 %v2002_v27  ;;  %v2003_v63 = vadd.f32 1.0, %v3467_v37  ;;  %v3469_v28 = vpop.eup %3468  ;;  %v5803_v27 = vld [vmem:[#allocation25_spill] sm:$0xff]  ;;  %v3616_v37 = vld [vmem:[#allocation7 + $0xe8] sm:$0xff] }
 0x69d   : > { %3474 = vrcp.f32 %v2001_v40  ;;  %v1833_v35 = vsub.f32 %v5108_v51, %v3469_v28  ;;  %v1839_v11 = vmul.f32 %v3469_v28, %v1837_v24  ;;  %v3471_v58 = vpop.eup %3470  ;;  %v3615_v40 = vld [vmem:[#allocation7 + $0x100] sm:$0xff]  ;;  %v3618_v28 = vld [vmem:[#allocation7 + $0xc8] sm:$0xff] }
 0x69e   : > { %3476 = vrcp.f32 %v2003_v63  ;;  %v3617_v63 = vld [vmem:[#allocation7 + $0xe0] sm:$0xff] }
 0x69f   : > { %v1840_v59 = vadd.f32 %v1839_v11, %v1833_v35  ;;  %v3619_v24 = vld [vmem:[#allocation7 + $0xc0] sm:$0xff]  ;;  %v3620_v35 = vld [vmem:[#allocation7 + $0xa8] sm:$0xff] }
 0x6a0   : > { %v5804_v11 = vld [vmem:[#allocation38_spill] sm:$0xff] }
 0x6a1   : > { %v2012_v31 = vmul.f32 %v3471_v58, %v1840_v59  ;;  %v5805_v58 = vld [vmem:[#allocation41_spill] sm:$0xff] }
 0x6a2   : > { %v5808_v59 = vld [vmem:[#allocation49_spill] sm:$0xff] }
 0x6a9   : > { %v3473_v32 = vpop.eup %3472 }
 0x6aa   : > { %v3475_v29 = vpop.eup %3474  ;;  %2813 = vst [vmem:[%s4016_s28 + $0x28] sm:$0xff] %v3473_v32 }
 0x6ab   : > { %v3477_v50 = vpop.eup %3476 }
 0x6ac   : > { %v2013_v41 = vmul.f32 %v3477_v50, %v3475_v29  ;;  %v5807_v29 = vld [vmem:[#allocation47_spill] sm:$0xff] }
 0x6ad   : > { %v5810_v50 = vld [vmem:[#allocation35_spill] sm:$0xff] }
 0x6ae   : > { %v2014_v0 = vadd.f32 %v2013_v41, %v2012_v31  ;;  %v5811_v31 = vld [vmem:[#allocation36_spill] sm:$0xff]  ;;  %v5812_v41 = vld [vmem:[#allocation37_spill] sm:$0xff] }
 0x6b0   : > { %3478 = vtanh.f32 %v2014_v0  ;;  %v5226_v16 = vsel %vm2023_vm6, %v2014_v0, %v5108_v51  ;;  %v3612_v51 = vld [vmem:[#allocation7 + $0x128] sm:$0xff] }
 0x6b1   : > { %3226 = vmatmul.mubr.f32.vlgmr.msra.gmra.mxu0 %v5226_v16  ;;  %v5813_v0 = vld [vmem:[#allocation39_spill] sm:$0xff] }
 0x6b2   : > { %2184 = vmatpush1.msra.mxu0 %v4709_v36  ;;  %2247 = vmatprep.mubr.f32.mxu0 %v5650_v34 }
 0x6b3   : > { %2185 = vmatprep.subr.mxu0 %v4713_v38 }
 0x6b4   : > { %2186 = vmatpush1.msra.mxu0 %v4716_v26 }
 0x6b5   : > { %2187 = vmatprep.subr.mxu0 %v4719_v25  ;;  %v3600_v25 = vld [vmem:[#allocation7 + $0x1e8] sm:$0xff] }
 0x6b6   : > { %2188 = vmatpush1.msra.mxu0 %v4722_v19  ;;  %v3601_v19 = vld [vmem:[#allocation7 + $0x1e0] sm:$0xff] }
 0x6b7   : > { %2189 = vmatprep.subr.mxu0 %v4725_v3  ;;  %v3602_v3 = vld [vmem:[#allocation7 + $0x1c8] sm:$0xff] }
 0x6b8   : > { %2190 = vmatpush1.msra.mxu0 %v4728_v14  ;;  %v3603_v14 = vld [vmem:[#allocation7 + $0x1c0] sm:$0xff] }
 0x6b9   : > { %2191 = vmatprep.subr.mxu0 %v4731_v23  ;;  %v3604_v23 = vld [vmem:[#allocation7 + $0x1a8] sm:$0xff] }
 0x6ba   : > { %2192 = vmatpush1.msra.mxu0 %v4734_v7  ;;  %v3605_v7 = vld [vmem:[#allocation7 + $0x1a0] sm:$0xff] }
 0x6bb   : > { %2193 = vmatprep.subr.mxu0 %v4959_v33 }
 0x6bc   : > { %2194 = vmatpush1.msra.mxu0 %v4962_v8 }
 0x6bd   : > { %v3479_v36 = vpop.eup %3478  ;;  %2195 = vmatprep.subr.mxu0 %v4965_v1 }
 0x6be   : > { %2196 = vmatpush1.msra.mxu0 %v4968_v45  ;;  %v2016_v38 = vmul.f32 %v3479_v36, %v3473_v32  ;;  %v5806_v32 = vld [vmem:[#allocation44_spill] sm:$0xff] }
 0x6bf   : > { %2197 = vmatprep.subr.mxu0 %v4971_v42  ;;  %v5814_v36 = vld [vmem:[#allocation40_spill] sm:$0xff] }
 0x6c0   : > { %2198 = vmatpush1.msra.mxu0 %v4974_v48  ;;  %v5247_v26 = vsel %vm2023_vm6, %v2016_v38, %v5129_v4  ;;  %v3613_v4 = vld [vmem:[#allocation7 + $0x120] sm:$0xff] }
 0x6c1   : > { %2199 = vmatprep.subr.mxu0 %v4981_v43  ;;  %2177 = vmatmul.mubr.f32.vlgmr.msra.gmra.mxu1 %v5247_v26 }
 0x6c2   : > { %2200 = vmatpush1.msra.mxu0 %v4985_v47  ;;  %3229 = vmatpush3.msra.mxu1 %v4753_v60  ;;  %v5798_v60 = vld [vmem:[#allocation28_spill] sm:$0xff] }
 0x6c3   : > { %2201 = vmatprep.subr.mxu0 %v4989_v49  ;;  %3230 = vmatprep.subr.mxu1 %v5650_v34 }
 0x6c4   : > { %2202 = vmatpush1.msra.mxu0 %v4993_v10  ;;  %3231 = vmatpush3.msra.mxu1 %v4762_v6  ;;  %v3606_v6 = vld [vmem:[#allocation7 + $0x188] sm:$0xff] }
 0x6c5   : > { %2203 = vmatprep.subr.mxu0 %v4997_v22  ;;  %3232 = vmatprep.subr.mxu1 %v5650_v34 }
 0x6c6   : > { %2204 = vmatpush1.msra.mxu0 %v5001_v5  ;;  %3233 = vmatpush3.msra.mxu1 %v4771_v62  ;;  %v3607_v62 = vld [vmem:[#allocation7 + $0x180] sm:$0xff] }
 0x6c7   : > { %2205 = vmatprep.subr.mxu0 %v5005_v20  ;;  %3234 = vmatprep.subr.mxu1 %v5650_v34 }
 0x6c8   : > { %2206 = vmatpush1.msra.mxu0 %v5009_v53  ;;  %3235 = vmatpush3.msra.mxu1 %v4780_v12  ;;  %v5799_v12 = vld [vmem:[#allocation30_spill] sm:$0xff] }
 0x6c9   : > { %2207 = vmatprep.subr.mxu0 %v5013_v57  ;;  %3236 = vmatprep.subr.mxu1 %v5650_v34 }
 0x6ca   : > { %2208 = vmatpush1.msra.mxu0 %v5760_v13  ;;  %3237 = vmatpush3.msra.mxu1 %v4789_v55  ;;  %v3608_v55 = vld [vmem:[#allocation7 + $0x168] sm:$0xff] }
 0x6cb   : > { %2209 = vmatprep.subr.mxu0 %v5761_v52  ;;  %3238 = vmatprep.subr.mxu1 %v5650_v34 }
 0x6cc   : > { %2210 = vmatpush1.msra.mxu0 %v5762_v61  ;;  %3239 = vmatpush3.msra.mxu1 %v4798_v9  ;;  %v3609_v9 = vld [vmem:[#allocation7 + $0x160] sm:$0xff] }
 0x6cd   : > { %2211 = vmatprep.subr.mxu0 %v5029_v46  ;;  %3240 = vmatprep.subr.mxu1 %v5650_v34 }
 0x6ce   : > { %2212 = vmatpush1.msra.mxu0 %v5033_v54  ;;  %3241 = vmatpush3.msra.mxu1 %v4807_v2  ;;  %v5800_v2 = vld [vmem:[#allocation31_spill] sm:$0xff] }
 0x6cf   : > { %2213 = vmatprep.subr.mxu0 %v5037_v39  ;;  %3242 = vmatprep.subr.mxu1 %v5650_v34 }
 0x6d0   : > { %2214 = vmatpush1.msra.mxu0 %v5041_v56  ;;  %3243 = vmatpush3.msra.mxu1 %v4816_v21  ;;  %v3610_v21 = vld [vmem:[#allocation7 + $0x148] sm:$0xff] }
 0x6d1   : > { %2248 = vmatmul.mubr.f32.vlgmr.msra.gmra.mxu0 %v5247_v26  ;;  %3244 = vmatprep.subr.mxu1 %v5650_v34 }
 0x6d2   : > { %3245 = vmatpush3.msra.mxu1 %v4824_v15  ;;  %2378 = vmatprep.subr.mxu0 %v3600_v25  ;;  %v3611_v15 = vld [vmem:[#allocation7 + $0x140] sm:$0xff] }
 0x6d3   : > { %3246 = vmatprep.subr.mxu1 %v5650_v34  ;;  %2379 = vmatpush1.msra.mxu0 %v3601_v19 }
 0x6d4   : > { %3247 = vmatpush3.msra.mxu1 %v4833_v18  ;;  %2380 = vmatprep.subr.mxu0 %v3602_v3  ;;  %v5801_v18 = vld [vmem:[#allocation32_spill] sm:$0xff]  ;;  %v2815_v3 = vld [vmem:[%s3995_s17 + $0xc0] sm:$0xff] }
 0x6d5   : > { %3248 = vmatprep.subr.mxu1 %v5650_v34  ;;  %2381 = vmatpush1.msra.mxu0 %v3603_v14  ;;  %v2816_v14 = vld [vmem:[%s3995_s17 + $0xc8] sm:$0xff] }
 0x6d6   : > { %3249 = vmatpush3.msra.mxu1 %v5763_v30  ;;  %2382 = vmatprep.subr.mxu0 %v3604_v23  ;;  %v5802_v30 = vld [vmem:[#allocation33_spill] sm:$0xff] }
 0x6d7   : > { %3250 = vmatprep.subr.mxu1 %v5650_v34  ;;  %2383 = vmatpush1.msra.mxu0 %v3605_v7 }
 0x6d8   : > { %3251 = vmatpush3.msra.mxu1 %v5798_v60  ;;  %2384 = vmatprep.subr.mxu0 %v3606_v6 }
 0x6d9   : > { %3252 = vmatprep.subr.mxu1 %v5650_v34  ;;  %2385 = vmatpush1.msra.mxu0 %v3607_v62  ;;  %v2817_v62 = vld [vmem:[%s3995_s17 + $0xd0] sm:$0xff] }
 0x6da   : > { %3253 = vmatpush3.msra.mxu1 %v5799_v12  ;;  %2386 = vmatprep.subr.mxu0 %v3608_v55 }
 0x6db   : > { %3254 = vmatprep.subr.mxu1 %v5650_v34  ;;  %2387 = vmatpush1.msra.mxu0 %v3609_v9  ;;  %v2818_v9 = vld [vmem:[%s3995_s17 + $0xd8] sm:$0xff] }
 0x6dc   : > { %3255 = vmatpush3.msra.mxu1 %v5800_v2  ;;  %2388 = vmatprep.subr.mxu0 %v3610_v21 }
 0x6dd   : > { %3256 = vmatprep.subr.mxu1 %v5650_v34  ;;  %2389 = vmatpush1.msra.mxu0 %v3611_v15 }
 0x6de   : > { %3257 = vmatpush3.msra.mxu1 %v5801_v18  ;;  %2390 = vmatprep.subr.mxu0 %v3612_v51 }
 0x6df   : > { %3258 = vmatprep.subr.mxu1 %v5650_v34  ;;  %2391 = vmatpush1.msra.mxu0 %v3613_v4 }
 0x6e0   : > { %3259 = vmatpush3.msra.mxu1 %v5802_v30  ;;  %2392 = vmatprep.subr.mxu0 %v3614_v17 }
 0x6e1   : > { %3260 = vmatprep.mubr.msk.f32.mxu1 %vm3828_vm0, %v5650_v34  ;;  %2393 = vmatpush1.msra.mxu0 %v3615_v40 }
 0x6e2   : > { %2449 = vmatprep.subr.mxu1 %v5803_v27  ;;  %2394 = vmatprep.subr.mxu0 %v3616_v37 }
 0x6e3   : > { %2395 = vmatpush1.msra.mxu0 %v3617_v63  ;;  %2442 = vmatprep.mubr.f32.mxu0 %v5650_v34 }
 0x6e4   : > { %2396 = vmatprep.subr.mxu0 %v3618_v28 }
 0x6e5   : > { %2397 = vmatpush1.msra.mxu0 %v3619_v24 }
 0x6e6   : > { %2398 = vmatprep.subr.mxu0 %v3620_v35  ;;  %v2103_v35 = vpop.permute.xlu0 %2102 }
 0x6e7   : > { %2399 = vmatpush1.msra.mxu0 %v5804_v11 }
 0x6e8   : > { %2400 = vmatprep.subr.mxu0 %v5805_v58 }
 0x6e9   : > { %2401 = vmatpush1.msra.mxu0 %v5806_v32 }
 0x6ea   : > { %2402 = vmatprep.subr.mxu0 %v5807_v29 }
 0x6eb   : > { %2403 = vmatpush1.msra.mxu0 %v5808_v59 }
 0x6ec   : > { %2404 = vmatprep.subr.mxu0 %v5809_v44 }
 0x6ed   : > { %2405 = vmatpush1.msra.mxu0 %v5810_v50  ;;  %v2288_v50 = vstv %s2287_s29 }
 0x6ee   : > { %2406 = vmatprep.subr.mxu0 %v5811_v31  ;;  %vm2289_vm7 = vcmp.eq.s32.totalorder %v2288_v50, 1 }
 0x6ef   : > { %2407 = vmatpush1.msra.mxu0 %v5812_v41 }
 0x6f0   : > { %2408 = vmatprep.subr.mxu0 %v5813_v0 }
 0x6f1   : > { %2409 = vmatpush1.msra.mxu0 %v5814_v36 }
 0x771   : > { %v2092_v38 = vpop.f32.mrf.mxu0 }
 0x773   : > { %v3227_v25 = vpop.f32.mrf.mxu0 }
 0x774   : > { %v3621_v25 = vld [vmem:[#allocation7 + $0x1f0] sm:$0xff] }
 0x781   : > { %v2178_v19 = vpop.f32.mrf.mxu1 }
 0x782   : > { %v2179_v7 = vadd.f32 %v2815_v3, %v2178_v19  ;;  %v3622_v19 = vld [vmem:[#allocation7 + $0x1d8] sm:$0xff]  ;;  %v3623_v3 = vld [vmem:[#allocation7 + $0x1d0] sm:$0xff] }
 0x783   : > { %v2180_v23 = vpop.f32.mrf.mxu1 }
 0x784   : > { %v2181_v60 = vadd.f32 %v2816_v14, %v2180_v23  ;;  %v2819_v6 = vmul.f32 -1.442695, %v2179_v7  ;;  %v3624_v14 = vld [vmem:[#allocation7 + $0x1b8] sm:$0xff]  ;;  %v3625_v23 = vld [vmem:[#allocation7 + $0x1b0] sm:$0xff] }
 0x785   : > { %v3626_v7 = vld [vmem:[#allocation7 + $0x198] sm:$0xff] }
 0x786   : > { %v2820_v12 = vmul.f32 -1.442695, %v2181_v60  ;;  %3480 = vpow2.f32 %v2819_v6  ;;  %v3627_v60 = vld [vmem:[#allocation7 + $0x190] sm:$0xff] }
 0x787   : > { %v3629_v6 = vld [vmem:[#allocation7 + $0x170] sm:$0xff] }
 0x788   : > { %3482 = vpow2.f32 %v2820_v12 }
 0x791   : > { %v2249_v55 = vpop.f32.mrf.mxu0 }
 0x792   : > { %v2250_v2 = vadd.f32 %v2817_v62, %v2249_v55 }
 0x793   : > { %v2251_v21 = vpop.f32.mrf.mxu0  ;;  %v3481_v4 = vpop.eup %3480 }
 0x794   : > { %v2821_v15 = vmul.f32 -1.442695, %v2250_v2  ;;  %v2252_v18 = vadd.f32 %v2818_v9, %v2251_v21  ;;  %v2266_v17 = vadd.f32 1.0, %v3481_v4 }
 0x795   : > { %v3483_v30 = vpop.eup %3482 }
 0x796   : > { %v2822_v51 = vmul.f32 -1.442695, %v2252_v18  ;;  %3484 = vpow2.f32 %v2821_v15  ;;  %v2267_v27 = vadd.f32 1.0, %v3483_v30  ;;  %v2369_v15 = vpop.permute.xlu1 %2368 }
 0x798   : > { %3486 = vpow2.f32 %v2822_v51 }
 0x799   : > { %3488 = vtanh.f32 %v2092_v38 }
 0x79a   : > { %3490 = vrcp.f32 %v2266_v17 }
 0x7a3   : > { %v3485_v40 = vpop.eup %3484 }
 0x7a4   : > { %v2268_v37 = vadd.f32 1.0, %v3485_v40 }
 0x7a5   : > { %v3487_v63 = vpop.eup %3486 }
 0x7a6   : > { %3492 = vrcp.f32 %v2268_v37  ;;  %v2269_v28 = vadd.f32 1.0, %v3487_v63  ;;  %v3489_v24 = vpop.eup %3488 }
 0x7a7   : > { %3494 = vrcp.f32 %v2267_v27  ;;  %v2099_v11 = vsub.f32 %v5226_v16, %v3489_v24  ;;  %v2105_v58 = vmul.f32 %v3489_v24, %v2103_v35  ;;  %v3491_v32 = vpop.eup %3490 }
 0x7a8   : > { %3496 = vrcp.f32 %v2269_v28 }
 0x7a9   : > { %v2106_v44 = vadd.f32 %v2105_v58, %v2099_v11 }
 0x7ab   : > { %v2278_v41 = vmul.f32 %v3491_v32, %v2106_v44 }
 0x7b3   : > { %v3493_v29 = vpop.eup %3492 }
 0x7b4   : > { %v3495_v59 = vpop.eup %3494  ;;  %2823 = vst [vmem:[%s4016_s28 + $0x30] sm:$0xff] %v3493_v29 }
 0x7b5   : > { %v3497_v31 = vpop.eup %3496 }
 0x7b6   : > { %v2279_v0 = vmul.f32 %v3497_v31, %v3495_v59 }
 0x7b8   : > { %v2280_v36 = vadd.f32 %v2279_v0, %v2278_v41 }
 0x7ba   : > { %3498 = vtanh.f32 %v2280_v36  ;;  %v5322_v38 = vsel %vm2289_vm7, %v2280_v36, %v5226_v16  ;;  %v3628_v16 = vld [vmem:[#allocation7 + $0x178] sm:$0xff] }
 0x7bb   : > { %3261 = vmatmul.mubr.f32.vlgmr.msra.gmra.mxu1 %v5322_v38 }
 0x7bc   : > { %2450 = vmatpush1.msra.mxu1 %v3621_v25  ;;  %2513 = vmatprep.mubr.f32.mxu1 %v5650_v34 }
 0x7bd   : > { %2451 = vmatprep.subr.mxu1 %v3622_v19 }
 0x7be   : > { %2452 = vmatpush1.msra.mxu1 %v3623_v3 }
 0x7bf   : > { %2453 = vmatprep.subr.mxu1 %v3624_v14 }
 0x7c0   : > { %2454 = vmatpush1.msra.mxu1 %v3625_v23 }
 0x7c1   : > { %2455 = vmatprep.subr.mxu1 %v3626_v7 }
 0x7c2   : > { %2456 = vmatpush1.msra.mxu1 %v3627_v60 }
 0x7c3   : > { %2457 = vmatprep.subr.mxu1 %v3628_v16 }
 0x7c4   : > { %2458 = vmatpush1.msra.mxu1 %v3629_v6 }
 0x7c5   : > { %2459 = vmatprep.subr.mxu1 %v4959_v33 }
 0x7c6   : > { %2460 = vmatpush1.msra.mxu1 %v4962_v8 }
 0x7c7   : > { %v3499_v34 = vpop.eup %3498  ;;  %2461 = vmatprep.subr.mxu1 %v4965_v1 }
 0x7c8   : > { %2462 = vmatpush1.msra.mxu1 %v4968_v45  ;;  %v2282_v62 = vmul.f32 %v3499_v34, %v3493_v29  ;;  %v2825_v45 = vld [vmem:[%s3995_s17 + $0xe0] sm:$0xff] }
 0x7c9   : > { %2463 = vmatprep.subr.mxu1 %v4971_v42  ;;  %v2826_v42 = vld [vmem:[%s3995_s17 + $0xe8] sm:$0xff] }
 0x7ca   : > { %2464 = vmatpush1.msra.mxu1 %v4974_v48  ;;  %v5334_v12 = vsel %vm2289_vm7, %v2282_v62, %v5247_v26 }
 0x7cb   : > { %2465 = vmatprep.subr.mxu1 %v4981_v43  ;;  %2443 = vmatmul.mubr.f32.vlgmr.msra.gmra.mxu0 %v5334_v12 }
 0x7cc   : > { %2466 = vmatpush1.msra.mxu1 %v4985_v47 }
 0x7cd   : > { %2467 = vmatprep.subr.mxu1 %v4989_v49 }
 0x7ce   : > { %2468 = vmatpush1.msra.mxu1 %v4993_v10  ;;  %v2827_v10 = vld [vmem:[%s3995_s17 + $0xf0] sm:$0xff] }
 0x7cf   : > { %2469 = vmatprep.subr.mxu1 %v4997_v22 }
 0x7d0   : > { %2470 = vmatpush1.msra.mxu1 %v5001_v5 }
 0x7d1   : > { %2471 = vmatprep.subr.mxu1 %v5005_v20  ;;  %v2828_v20 = vld [vmem:[%s3995_s17 + $0xf8] sm:$0xff]  ;;  %s2551_s17 = sadd.s32 7, %s4007_s8 }
 0x7d2   : > { %2472 = vmatpush1.msra.mxu1 %v5009_v53  ;;  %p2552_p6 = scmp.lt.s32.totalorder %s2551_s17, 12 }
 0x7d3   : > { %2473 = vmatprep.subr.mxu1 %v5013_v57 }
 0x7d4   : > { %2474 = vmatpush1.msra.mxu1 %v5760_v13  ;;  %s2553_s19 = scalar_select %p2552_p6, 1, 0 }
 0x7d5   : > { %2475 = vmatprep.subr.mxu1 %v5761_v52 }
 0x7d6   : > { %2476 = vmatpush1.msra.mxu1 %v5762_v61  ;;  %v2554_v27 = vstv %s2553_s19 }
 0x7d7   : > { %2477 = vmatprep.subr.mxu1 %v5029_v46  ;;  %vm2555_vm8 = vcmp.eq.s32.totalorder %v2554_v27, 1 }
 0x7d8   : > { %2478 = vmatpush1.msra.mxu1 %v5033_v54 }
 0x7d9   : > { %2479 = vmatprep.subr.mxu1 %v5037_v39 }
 0x7da   : > { %2480 = vmatpush1.msra.mxu1 %v5041_v56 }
 0x7db   : > { %2514 = vmatmul.mubr.f32.vlgmr.msra.gmra.mxu1 %v5334_v12 }
 0x87b   : > { %v2358_v33 = vpop.f32.mrf.mxu1 }
 0x87d   : > { %v3262_v8 = vpop.f32.mrf.mxu1 }
 0x88b   : > { %v2444_v1 = vpop.f32.mrf.mxu0 }
 0x88c   : > { %v2445_v43 = vadd.f32 %v2825_v45, %v2444_v1 }
 0x88d   : > { %v2446_v48 = vpop.f32.mrf.mxu0 }
 0x88e   : > { %v2447_v47 = vadd.f32 %v2826_v42, %v2446_v48  ;;  %v2829_v49 = vmul.f32 -1.442695, %v2445_v43 }
 0x890   : > { %v2830_v22 = vmul.f32 -1.442695, %v2447_v47  ;;  %3500 = vpow2.f32 %v2829_v49 }
 0x892   : > { %3502 = vpow2.f32 %v2830_v22 }
 0x89b   : > { %v2515_v5 = vpop.f32.mrf.mxu1 }
 0x89c   : > { %v2516_v53 = vadd.f32 %v2827_v10, %v2515_v5 }
 0x89d   : > { %v2517_v57 = vpop.f32.mrf.mxu1  ;;  %v3501_v46 = vpop.eup %3500 }
 0x89e   : > { %v2831_v54 = vmul.f32 -1.442695, %v2516_v53  ;;  %v2518_v39 = vadd.f32 %v2828_v20, %v2517_v57  ;;  %v2532_v52 = vadd.f32 1.0, %v3501_v46 }
 0x89f   : > { %v3503_v13 = vpop.eup %3502 }
 0x8a0   : > { %v2832_v56 = vmul.f32 -1.442695, %v2518_v39  ;;  %3504 = vpow2.f32 %v2831_v54  ;;  %v2533_v26 = vadd.f32 1.0, %v3503_v13 }
 0x8a2   : > { %3506 = vpow2.f32 %v2832_v56 }
 0x8a3   : > { %3508 = vtanh.f32 %v2358_v33 }
 0x8a4   : > { %3510 = vrcp.f32 %v2532_v52 }
 0x8ad   : > { %v3505_v61 = vpop.eup %3504 }
 0x8ae   : > { %v2534_v55 = vadd.f32 1.0, %v3505_v61 }
 0x8af   : > { %v3507_v9 = vpop.eup %3506 }
 0x8b0   : > { %3512 = vrcp.f32 %v2534_v55  ;;  %v2535_v2 = vadd.f32 1.0, %v3507_v9  ;;  %v3509_v21 = vpop.eup %3508 }
 0x8b1   : > { %3514 = vrcp.f32 %v2533_v26  ;;  %v2365_v18 = vsub.f32 %v5322_v38, %v3509_v21  ;;  %v2371_v51 = vmul.f32 %v3509_v21, %v2369_v15  ;;  %v3511_v4 = vpop.eup %3510 }
 0x8b2   : > { %3516 = vrcp.f32 %v2535_v2 }
 0x8b3   : > { %v2372_v40 = vadd.f32 %v2371_v51, %v2365_v18 }
 0x8b5   : > { %v2544_v63 = vmul.f32 %v3511_v4, %v2372_v40 }
 0x8bd   : > { %v3513_v30 = vpop.eup %3512 }
 0x8be   : > { %v3515_v17 = vpop.eup %3514  ;;  %2833 = vst [vmem:[%s4016_s28 + $0x38] sm:$0xff] %v3513_v30 }
 0x8bf   : > { %v3517_v37 = vpop.eup %3516 }
 0x8c0   : > { %v2545_v28 = vmul.f32 %v3517_v37, %v3515_v17 }
 0x8c2   : > { %v2546_v24 = vadd.f32 %v2545_v28, %v2544_v63 }
 0x8c4   : > { %3518 = vtanh.f32 %v2546_v24  ;;  %v2557_v35 = vsel %vm2555_vm8, %v2546_v24, %v5322_v38 }
 0x8c5   : > { %2559 = vst [vmem:[#allocation3] sm:$0xff] %v2557_v35 }
 0x8d1   : > { %v3519_v11 = vpop.eup %3518  ;;  %2563 = sbr.rel (%p2834_p9) target bundleno = 2263 (0x8d7), region = 52 }
 0x8d2   : > { %v2548_v58 = vmul.f32 %v3519_v11, %v3513_v30 }
 0x8d4   : > { %v2556_v32 = vsel %vm2555_vm8, %v2548_v58, %v5334_v12 }
 0x8d5   : > { %2558 = vst [vmem:[#allocation2] sm:$0xff] %v2556_v32 }
 0x8d6   : > { %2564 = vst [vmem:[#allocation10] sm:$0xff] %v2556_v32  ;;  %2565 = vst [vmem:[#allocation12] sm:$0xff] %v2557_v35 }
 0x8d7 PF: > { %s3830_s8 = smov [#allocation10]   ;;  %s2846_s16 = sshll.u32 %s3812_s24, 10 }
 0x8d8   : > { %s2597_s14 = sshll.u32 %s3830_s8, 4  ;;  %s2598_s14 = int_to_ptr.vmem [resolvable:$true] %s2597_s14 }
 0x8d9   : > { %s3684_s20 = scalar_lea.vmem %s2598_s14, 128  ;;  %p3691_p12 = scmp.lt.s32.totalorder %s2598_s14, %s2598_s14 }
 0x8da   : > { %p3685_p11 = scmp.ne.s32.totalorder %s2598_s14, %s3684_s20  ;;  %p3692_p1 = scmp.lt.s32.totalorder %s3684_s20, %s3684_s20 }
 0x8dc   : > { %p3686_p10 = pnand %p3685_p11, %p3908_p2  ;;  %p3693_p13 = por %p3692_p1, %p3691_p12 }
 0x8de   : > { %p3687_p8 = pneg %p3686_p10 }
 0x8e0   : > { %p3694_p0 = pnand %p3693_p13, %p3687_p8 }
 0x8e2   : > { %3697 = shalt.err (!%p3694_p0)
}
 0x8e3   : > { %3271 = dma.vmem_to_hbm [thread:$0]  (%p3908_p2), %s2598_s14, 128, %s5442_s5, [#allocation11]  }
 0x8e4   : > { %s5375_s9 = scalar_lea.hbm %s5441_s4, %s2846_s16  ;;  %s2581_s7 = sshll.u32 %s4016_s28, 4  ;;  %s5378_s7 = int_to_ptr.vmem [resolvable:$true] %s2581_s7 }
 0x8e5   : > { %s2567_s13 = scalar_lea.sflag [#allocation6], %s3991_s10  ;;  %s3708_s15 = scalar_lea.vmem %s5378_s7, 1024 }
 0x8e6   : > { %p3709_p3 = scmp.ne.s32.totalorder %s5378_s7, %s3708_s15  ;;  %p5815_p5 = scmp.ne.s32.totalorder %s5602_s27, 0 }
 0x8e7   : > { %s3831_s18 = smov [#allocation9]  }
 0x8e8   : > { %p3710_p7 = pnand %p3709_p3, %p5815_p5  ;;  %s3712_s29 = sshll.u32 %s3831_s18, 4  ;;  %s3713_s29 = int_to_ptr.vmem [resolvable:$false] %s3712_s29 }
 0x8e9   : > { %s3714_s17 = scalar_lea.vmem %s3713_s29, 2048  ;;  %p3715_p6 = scmp.lt.s32.totalorder %s5378_s7, %s3713_s29 }
 0x8ea   : > { %p3711_p4 = pneg %p3710_p7  ;;  %p3716_p9 = scmp.lt.s32.totalorder %s3714_s17, %s3708_s15 }
 0x8ec   : > { %p3717_p11 = por %p3716_p9, %p3715_p6 }
 0x8ee   : > { %p3718_p10 = pnand %p3717_p11, %p3711_p4 }
 0x8f0   : > { %3721 = shalt.err (!%p3718_p10)
}
 0x8f1   : > { %s3722_s28 = scalar_lea.hbm %s5375_s9, 1024  ;;  %s3726_s14 = scalar_lea.hbm %s5441_s4, 2048 }
 0x8f2   : > { %p3723_p8 = scmp.ne.s32.totalorder %s5375_s9, %s3722_s28  ;;  %p3727_p13 = scmp.lt.s32.totalorder %s5375_s9, %s5441_s4 }
 0x8f3   : > { %p3728_p0 = scmp.lt.s32.totalorder %s3726_s14, %s3722_s28 }
 0x8f4   : > { %p3724_p12 = pnand %p3723_p8, %p5815_p5 }
 0x8f5   : > { %p3729_p3 = por %p3728_p0, %p3727_p13 }
 0x8f6   : > { %p3725_p1 = pneg %p3724_p12 }
 0x8f8   : > { %p3730_p7 = pnand %p3729_p3, %p3725_p1 }
 0x8fa   : > { %3733 = shalt.err (!%p3730_p7)
}
 0x8fb   : > { %s3832_s25 = smov 128   ;;  %s3833_s11 = smov 8  }
 0x8fc   : > { %3269 = dma.vmem_to_hbm [thread:$0]  (%p5815_p5), %s5378_s7, 1024, %s5375_s9, %s2567_s13, %s3832_s25, %s3832_s25, %s3833_s11  }
 0x8fd   : > { %s3834_s24 = smov [#allocation12]  }
 0x8fe   : > { %s2610_s2 = sshll.u32 %s3834_s24, 4  ;;  %s2611_s2 = int_to_ptr.vmem [resolvable:$true] %s2610_s2 }
 0x8ff   : > { %s3734_s15 = scalar_lea.vmem %s2611_s2, 128  ;;  %p3741_p11 = scmp.lt.s32.totalorder %s2611_s2, %s2611_s2 }
 0x900   : > { %p3735_p4 = scmp.ne.s32.totalorder %s2611_s2, %s3734_s15  ;;  %p3742_p10 = scmp.lt.s32.totalorder %s3734_s15, %s3734_s15 }
 0x902   : > { %p3736_p6 = pnand %p3735_p4, %p3908_p2  ;;  %p3743_p8 = por %p3742_p10, %p3741_p11 }
 0x904   : > { %p3737_p9 = pneg %p3736_p6 }
 0x906   : > { %p3744_p12 = pnand %p3743_p8, %p3737_p9 }
 0x908   : > { %3747 = shalt.err (!%p3744_p12)
}
 0x909   : > { %3273 = dma.vmem_to_hbm [thread:$0]  (%p3908_p2), %s2611_s2, 128, %s5443_s6, [#allocation11]  }
 0x90a   : > { %3791 = dma.done.wait (%p3908_p2), [#allocation11], 256  }
 0x90b   : > { %3793 = vsyncadd (%p3908_p2), [#allocation11], 4294967040 }
 0x90c PF: > { %s5816_s27 = sld [smem:[#allocation18_spill]]  ;;  %s2630_s10 = sand.u32 1, %s3800_s21  }
 0x90d   : > { %p5818_p1 = scmp.ge.s32.totalorder %s3820_s26, 2  ;;  %s2631_s9 = scalar_lea.sflag [#allocation6], %s2630_s10 }
 0x912   : > { %p5817_p5 = scmp.ne.s32.totalorder %s5816_s27, 0 }
 0x914   : > { %p3288_p13 = pnand %p5818_p1, %p5817_p5 }
 0x916   : > { %p3289_p0 = pneg %p3288_p13 }
 0x918   : > { %3795 = dma.done.wait (%p3289_p0), %s2631_s9, 1024  }
 0x919   : > { %3797 = vsyncadd (%p3289_p0), %s2631_s9, 4294966272  ;;  %s25_s26 = sadd.s32 1, %s3820_s26   ;;  %s5819_s24 = sld [smem:[#allocation17_spill]] }
 0x91a   : > { %p22_p3 = scmp.ge.s32.totalorder %s25_s26, 4   ;;  %s5820_s25 = sld [smem:[#allocation19_spill]] }
 0x91b   : > { %s5821_s21 = smov %s3804_s22  ;;  %s5822_s22 = smov %s3808_s23 }
 0x91c   : > { %s5823_s23 = smov %s3969_s12  ;;  %24 = sbr.rel (!%p22_p3) target bundleno = 10 (0xa), region = 135 }
 0x921   :  { %2636 = vsyncpa [#allocation5], 1 }
 0x922   :  { %2638 = vsyncpa [#allocation5 + $0x1], 1 }
 0x923   :  { %2639 = vsyncpa [#allocation8], 1 }
 0x924   :  { %2640 = vsyncpa [#allocation6], 1 }
 0x925   :  { %2642 = vsyncpa [#allocation6 + $0x1], 1 }
 0x926   :  { %2643 = vsyncpa [#allocation11], 1 }

</bundles_post_ra>
